<compile_context>
chip_gen: v6e
topology: v6e:2x2x1
jax: 0.10.0
libtpu: 0.0.40
codegen_flags: <defaults>
</compile_context>

<pallas_src>
import math
from functools import partial

import numpy as np
import jax
import jax.numpy as jnp
from jax import lax
from jax.experimental import pallas as pl
from jax.experimental.pallas import tpu as pltpu


# -----------------------------------------------------------------------------
# cos(2*pi*r) for r in [-0.5, 0.5] as an even polynomial in r (8 coefficients,
# degree 14 in r).  Least-squares fit in the scaled variable w = (2r)^2 in [0,1]
# (well conditioned), converted back to coefficients in z = r^2.  Max abs error
# ~1e-9, far below f32 evaluation noise.
def _fit_cos2pi_coeffs(n_terms: int = 8):
    r = np.linspace(0.0, 0.5, 4097)
    w = (2.0 * r) ** 2                                    # = z / 0.25, in [0, 1]
    A = np.stack([w ** k for k in range(n_terms)], axis=1)
    cw, *_ = np.linalg.lstsq(A, np.cos(2.0 * np.pi * r), rcond=None)
    coeffs = tuple(float(cw[k] * (4.0 ** k)) for k in range(n_terms))  # back to z = r^2
    # Sanity: the fit must be far tighter than the kernel's f32 tolerance.
    z = r * r
    approx = sum(c * z ** k for k, c in enumerate(coeffs))
    assert float(np.max(np.abs(approx - np.cos(2.0 * np.pi * r)))) < 5e-7
    return coeffs


_COS2PI_COEFFS = _fit_cos2pi_coeffs()


# -----------------------------------------------------------------------------
def _fourier_kernel(x_ref, b_ref, o_ref, *, sin_start, n_lanes, coeffs):
    """x_ref: (tile, 1) f32, b_ref: (1, n_lanes) f32, o_ref: (tile, n_lanes).

    out[r, f] = cos(2*pi * (x[r] * b[f] + shift[f])), shift[f] = -0.25 turns on
    the sin lanes.  Phases are kept in turns, reduced exactly with floor(t+0.5),
    and cos(2*pi*r) is an even polynomial.  Pure VPU outer product — a K=1
    matmul would waste the MXU.
    """
    t = x_ref[...] * b_ref[...]                       # (tile, n_lanes), in turns
    if sin_start <= 0:                                # 'sin': every lane shifted
        t = t - 0.25
    elif sin_start < n_lanes:                         # 'both': lanes >= F shifted
        lane = lax.broadcasted_iota(jnp.int32, (1, n_lanes), 1)
        t = t + jnp.where(lane >= sin_start, -0.25, 0.0).astype(jnp.float32)
    # else 'cos': no shift at all.
    r = t - jnp.floor(t + 0.5)                        # exact reduction to [-0.5, 0.5]
    z = r * r
    acc = coeffs[-1] * z + coeffs[-2]
    for c in coeffs[-3::-1]:
        acc = acc * z + c
    o_ref[...] = acc.astype(o_ref.dtype)


def _num_tensorcores() -> int:
    """Best-effort TensorCore count of the local device (perf-only heuristic)."""
    try:
        kind = str(jax.devices()[0].device_kind).lower()
    except Exception:
        return 1
    if "v5 lite" in kind or "v5e" in kind or "v6" in kind:
        return 1                                   # single-TC chips
    if "v4" in kind or "v5p" in kind or "v5 p" in kind or "v7" in kind or "tpu7" in kind:
        return 2                                   # megacore / dual-TC chips
    return 1


def fourier_features(x, b, *, funcs="both", tile_n=4096, out_dtype=jnp.float32):
    """Pallas-TPU forward of FourierFeatures.

    x: (..., 1) float; b: (1, F) float (UNSCALED frequencies, as in the torch
    module).  Returns (..., 2F) for funcs='both', (..., F) for 'cos'/'sin'.
    out_dtype=jnp.bfloat16 halves writeback bytes (useful on v5e).
    """
    assert funcs in {"both", "cos", "sin"}
    assert x.shape[-1] == 1
    F = b.shape[1]
    lead = x.shape[:-1]
    N = math.prod(lead) if lead else 1
    x2 = x.reshape(N, 1).astype(jnp.float32)
    bf = b.astype(jnp.float32)

    # Lane layout: ['both' -> cos|sin duplication of b], padded to a multiple of
    # 128 lanes so every output store is an unmasked, full-width vst.
    if funcs == "both":
        b_cat, Fout = jnp.concatenate([bf, bf], axis=1), 2 * F
    else:
        b_cat, Fout = bf, F
    Fout_pad = pl.cdiv(Fout, 128) * 128
    if Fout_pad != Fout:
        b_cat = jnp.pad(b_cat, ((0, 0), (0, Fout_pad - Fout)))
    if funcs == "both":
        sin_start = F                 # lanes [F, ...) get the -0.25 turn shift
    elif funcs == "cos":
        sin_start = Fout_pad          # sentinel: no lane shifted
    else:                             # 'sin'
        sin_start = 0                 # every lane shifted
    out_dtype = jnp.dtype(out_dtype)

    # ---- generation-aware row tile -----------------------------------------
    # Per-step pipeline overhead is ~0.35 us, so prefer big tiles (up to 4096
    # rows).  Dual-TC chips keep >= 2 blocks per core for per-core pipelining;
    # single-TC chips (v5e/v6e) are not split just to have many steps.  The
    # (tile,1) x block costs tile*512 B in VMEM once (8,128)-tiled, so cap the
    # tile with 2x(x + out) double buffers against a conservative budget.
    num_cores = _num_tensorcores()
    min_blocks = 2 * num_cores if num_cores > 1 else 1
    row_bytes = 2 * (512 + Fout_pad * out_dtype.itemsize)   # double-buffered x + out
    vmem_budget = 24 * 1024 * 1024                           # < 32 MiB scoped default
    tile = 8
    while (tile * 2 <= tile_n
           and tile < N
           and pl.cdiv(N, tile * 2) >= min_blocks
           and (tile * 2) * row_bytes <= vmem_budget):
        tile *= 2

    n_blocks = pl.cdiv(N, tile)
    N_pad = n_blocks * tile
    if N_pad != N:
        x2 = jnp.pad(x2, ((0, N_pad - N), (0, 0)))

    kernel = partial(_fourier_kernel, sin_start=sin_start, n_lanes=Fout_pad,
                     coeffs=_COS2PI_COEFFS)
    out = pl.pallas_call(
        kernel,
        out_shape=jax.ShapeDtypeStruct((N_pad, Fout_pad), out_dtype),
        grid_spec=pltpu.PrefetchScalarGridSpec(
            num_scalar_prefetch=0,
            grid=(n_blocks,),
            in_specs=[
                pl.BlockSpec((tile, 1), lambda i: (i, 0)),
                pl.BlockSpec((1, Fout_pad), lambda i: (0, 0)),
            ],
            out_specs=pl.BlockSpec((tile, Fout_pad), lambda i: (i, 0)),
        ),
        compiler_params=pltpu.CompilerParams(
            dimension_semantics=("parallel",)),
    )(x2, b_cat)

    if N_pad != N:
        out = out[:N]
    if Fout_pad != Fout:
        out = out[:, :Fout]
    return out.reshape(*lead, Fout)


def make_fourier_freqs(strategy, x_min, x_max, sigma, num_freqs, key):
    """Deterministic replica of FourierFeatures.__init__ parameter b, shape (1, F)."""
    if strategy == "random":
        b = jax.random.normal(key, (num_freqs,), dtype=jnp.float32) * sigma
    elif strategy == "voronov_et_al":
        # NOTE: like the torch module, this yields num_freqs - 1 frequencies.
        b = jnp.array(
            [1.0 / (x_min * (x_max / x_min) ** (2 * i / (num_freqs - 2)))
             for i in range(1, num_freqs)],
            dtype=jnp.float32)
    elif strategy == "lin_float_int":
        b = jnp.array(
            [1.0 / (x_min * i) for i in range(2, math.ceil(1.0 / x_min), 2)]
            + [1.0 / (1.0 * i) for i in range(2, math.ceil(x_max), 1)],
            dtype=jnp.float32)
    else:
        raise ValueError(strategy)
    return b[None, :]  # (1, F)


def _ref(x, b, funcs):
    """float64 reference of the torch forward: cos/sin of 2*pi*(x @ b) (K=1)."""
    ph = 2.0 * np.pi * (np.asarray(x, np.float64) * np.asarray(b, np.float64))
    if funcs == "both":
        return np.concatenate([np.cos(ph), np.sin(ph)], axis=-1)
    return np.cos(ph) if funcs == "cos" else np.sin(ph)


if __name__ == "__main__":
    key = jax.random.PRNGKey(0)
    k_b, k_x, k_x2 = jax.random.split(key, 3)

    # strategy='random', F=64: funcs='both' output is exactly 128 lanes wide.
    num_freqs = 64
    b = make_fourier_freqs("random", x_min=0.01, x_max=100.0, sigma=10.0,
                           num_freqs=num_freqs, key=k_b)
    x = jax.random.uniform(k_x, (4, 256, 1), dtype=jnp.float32)

    # Tighter than the old 5e-4: exact frac-based reduction removes the
    # large-argument range-reduction error of the previous jnp.cos path.
    tol = 3e-4

    out = jax.block_until_ready(fourier_features(x, b, funcs="both"))
    assert out.shape == (4, 256, 2 * num_freqs), out.shape
    err = float(np.max(np.abs(np.asarray(out) - _ref(x, b, "both"))))
    assert err < tol, err

    # 'cos' / 'sin' only: Fout=64 -> lane-padded to 128 inside, sliced back out.
    out_c = jax.block_until_ready(fourier_features(x, b, funcs="cos"))
    assert float(np.max(np.abs(np.asarray(out_c) - _ref(x, b, "cos")))) < tol
    out_s = jax.block_until_ready(fourier_features(x, b, funcs="sin"))
    assert float(np.max(np.abs(np.asarray(out_s) - _ref(x, b, "sin")))) < tol

    # 'voronov_et_al' (F = num_freqs-1 = 63 -> odd lane count) + ragged row
    # count exercises both the lane-pad and the row-pad paths.
    bv = make_fourier_freqs("voronov_et_al", x_min=0.01, x_max=100.0, sigma=10.0,
                            num_freqs=64, key=k_b)
    xv = jax.random.uniform(k_x2, (5, 37, 1), dtype=jnp.float32)
    out_v = jax.block_until_ready(fourier_features(xv, bv, funcs="both"))
    assert out_v.shape == (5, 37, 2 * bv.shape[1]), out_v.shape
    assert float(np.max(np.abs(np.asarray(out_v) - _ref(xv, bv, "both")))) < tol

    # Optional bf16 store (writeback-bound v5e); bound dominated by bf16 rounding.
    out_bf = jax.block_until_ready(
        fourier_features(x, b, funcs="both", out_dtype=jnp.bfloat16))
    assert float(np.max(np.abs(np.asarray(out_bf, np.float64)
                               - _ref(x, b, "both")))) < 8e-3

    print("KERNEL_OK")
</pallas_src>

<mosaic_0001>
module attributes {stable_mosaic.version = 11 : i64} {
  func.func @_fourier_kernel(%arg0: i32, %arg1: memref<1024x1xf32, #tpu.memory_space<vmem>>, %arg2: memref<1x128xf32, #tpu.memory_space<vmem>>, %arg3: memref<1024x128xf32, #tpu.memory_space<vmem>>) attributes {dimension_semantics = [#tpu.dimension_semantics<parallel>], iteration_bounds = array<i64: 1>, scalar_prefetch = 0 : i64, scratch_operands = 0 : i64, tpu.core_type = #tpu.core_type<tc>, window_params = [{transform_indices = @transform_0, window_bounds = array<i64: 1024, 1>}, {pipeline_mode = #tpu.pipeline_mode<synchronous>, transform_indices = @transform_1, window_bounds = array<i64: 1, 128>}, {transform_indices = @transform_2, window_bounds = array<i64: 1024, 128>}]} {
    %c0 = arith.constant 0 : index
    %c0_0 = arith.constant 0 : index
    %0 = vector.load %arg1[%c0, %c0_0] : memref<1024x1xf32, #tpu.memory_space<vmem>>, vector<1024x1xf32>
    %c0_1 = arith.constant 0 : index
    %c0_2 = arith.constant 0 : index
    %1 = vector.load %arg2[%c0_1, %c0_2] : memref<1x128xf32, #tpu.memory_space<vmem>>, vector<1x128xf32>
    %2 = vector.broadcast %0 : vector<1024x1xf32> to vector<1024x128xf32>
    %3 = vector.broadcast %1 : vector<1x128xf32> to vector<1024x128xf32>
    %4 = arith.mulf %2, %3 : vector<1024x128xf32>
    %5 = tpu.iota {dimensions = array<i32: 1>} : vector<1x128xi32>
    %c64_i32 = arith.constant 64 : i32
    %6 = vector.broadcast %c64_i32 : i32 to vector<1x128xi32>
    %7 = arith.cmpi sge, %5, %6 : vector<1x128xi32>
    %cst = arith.constant -2.500000e-01 : f32
    %cst_3 = arith.constant 0.000000e+00 : f32
    %8 = vector.broadcast %cst : f32 to vector<1x128xf32>
    %9 = vector.broadcast %cst_3 : f32 to vector<1x128xf32>
    %10 = arith.select %7, %8, %9 : vector<1x128xi1>, vector<1x128xf32>
    %11 = vector.broadcast %10 : vector<1x128xf32> to vector<1024x128xf32>
    %12 = arith.addf %4, %11 : vector<1024x128xf32>
    %cst_4 = arith.constant 5.000000e-01 : f32
    %13 = vector.broadcast %cst_4 : f32 to vector<1024x128xf32>
    %14 = arith.addf %12, %13 : vector<1024x128xf32>
    %15 = math.floor %14 : vector<1024x128xf32>
    %16 = arith.subf %12, %15 : vector<1024x128xf32>
    %17 = arith.mulf %16, %16 : vector<1024x128xf32>
    %cst_5 = arith.constant -1.4609046 : f32
    %18 = vector.broadcast %cst_5 : f32 to vector<1024x128xf32>
    %19 = arith.mulf %18, %17 : vector<1024x128xf32>
    %cst_6 = arith.constant 7.80657482 : f32
    %20 = vector.broadcast %cst_6 : f32 to vector<1024x128xf32>
    %21 = arith.addf %19, %20 : vector<1024x128xf32>
    %22 = arith.mulf %21, %17 : vector<1024x128xf32>
    %cst_7 = arith.constant -26.4067516 : f32
    %23 = vector.broadcast %cst_7 : f32 to vector<1024x128xf32>
    %24 = arith.addf %22, %23 : vector<1024x128xf32>
    %25 = arith.mulf %24, %17 : vector<1024x128xf32>
    %cst_8 = arith.constant 60.2424622 : f32
    %26 = vector.broadcast %cst_8 : f32 to vector<1024x128xf32>
    %27 = arith.addf %25, %26 : vector<1024x128xf32>
    %28 = arith.mulf %27, %17 : vector<1024x128xf32>
    %cst_9 = arith.constant -85.4566879 : f32
    %29 = vector.broadcast %cst_9 : f32 to vector<1024x128xf32>
    %30 = arith.addf %28, %29 : vector<1024x128xf32>
    %31 = arith.mulf %30, %17 : vector<1024x128xf32>
    %cst_10 = arith.constant 64.9393921 : f32
    %32 = vector.broadcast %cst_10 : f32 to vector<1024x128xf32>
    %33 = arith.addf %31, %32 : vector<1024x128xf32>
    %34 = arith.mulf %33, %17 : vector<1024x128xf32>
    %cst_11 = arith.constant -19.7392082 : f32
    %35 = vector.broadcast %cst_11 : f32 to vector<1024x128xf32>
    %36 = arith.addf %34, %35 : vector<1024x128xf32>
    %37 = arith.mulf %36, %17 : vector<1024x128xf32>
    %cst_12 = arith.constant 1.000000e+00 : f32
    %38 = vector.broadcast %cst_12 : f32 to vector<1024x128xf32>
    %39 = arith.addf %37, %38 : vector<1024x128xf32>
    %c0_13 = arith.constant 0 : index
    %c0_14 = arith.constant 0 : index
    %40 = vector.load %arg3[%c0_13, %c0_14] : memref<1024x128xf32, #tpu.memory_space<vmem>>, vector<1024x128xf32>
    tpu.vector_store %arg3[%c0_13, %c0_14], %39 {strides = array<i32>} : memref<1024x128xf32, #tpu.memory_space<vmem>>, vector<1024x128xf32>,
    return
  }
  func.func @transform_0(%arg0: i32) -> (i32, i32) {
    %c0_i32 = arith.constant 0 : i32
    %c0_i32_0 = arith.constant 0 : i32
    return %arg0, %c0_i32 : i32, i32
  }
  func.func @transform_1(%arg0: i32) -> (i32, i32) {
    %c0_i32 = arith.constant 0 : i32
    %c0_i32_0 = arith.constant 0 : i32
    %c0_i32_1 = arith.constant 0 : i32
    return %c0_i32, %c0_i32_0 : i32, i32
  }
  func.func @transform_2(%arg0: i32) -> (i32, i32) {
    %c0_i32 = arith.constant 0 : i32
    %c0_i32_0 = arith.constant 0 : i32
    return %arg0, %c0_i32 : i32, i32
  }
}

</mosaic_0001>

<bundles_post_ra>
// kernel: tpu_custom_call.1
= control target key start
LH: loop header
LB: loop body
LE: loop exit
PB: predicated region body
PF: predicated region fallthrough
CT: control target
= control target key end

     0   :  { %v3530_v2 = vmov 0   ;;  %s5380_s0 = inlined_call_operand.vmem [shape: f32[1024,1], index: 0, kind: input, shape index: {}]   ;;  %s5381_s1 = inlined_call_operand.vmem [shape: f32[1,128], index: 1, kind: input, shape index: {}]   ;;  %s5382_s2 = inlined_call_operand.hbm [shape: f32[1024,128], index: 2, kind: output, shape index: {}]  }
   0x1   :  { %v14_v0 = vld [vmem:[%s5380_s0 + $0x10] sm:$0xff]  ;;  %v12_v1 = vld [vmem:[%s5380_s0] sm:$0xff]  ;;  %3502 = vset.pattern.permute.xlu1 %v3530_v2  ;;  %3501 = vset.pattern.permute.xlu0 %v3530_v2  ;;  %v15_v3 = vld [vmem:[%s5380_s0 + $0x18] sm:$0xff] }
   0x2   :  { %153 = vperm.xlu1 %3502, %v14_v0   ;;  %143 = vperm.xlu0 %3501, %v12_v1   ;;  %v13_v4 = vld [vmem:[%s5380_s0 + $0x8] sm:$0xff]  ;;  %v16_v6 = vld [vmem:[%s5380_s0 + $0x20] sm:$0xff]  ;;  %v19_v7 = vld [vmem:[%s5380_s0 + $0x38] sm:$0xff] }
   0x3   :  { %v17_v5 = vld [vmem:[%s5380_s0 + $0x28] sm:$0xff]  ;;  %v18_v8 = vld [vmem:[%s5380_s0 + $0x30] sm:$0xff]  ;;  %v20_v10 = vld [vmem:[%s5380_s0 + $0x40] sm:$0xff] }
   0x4   :  { %v21_v9 = vld [vmem:[%s5380_s0 + $0x48] sm:$0xff]  ;;  %v23_v11 = vld [vmem:[%s5380_s0 + $0x58] sm:$0xff]  ;;  %v22_v12 = vld [vmem:[%s5380_s0 + $0x50] sm:$0xff] }
   0x5   :  { %v25_v13 = vld [vmem:[%s5380_s0 + $0x68] sm:$0xff]  ;;  %v24_v14 = vld [vmem:[%s5380_s0 + $0x60] sm:$0xff] }
   0x6   :  { %158 = vperm.xlu1 %3502, %v15_v3   ;;  %148 = vperm.xlu0 %3501, %v13_v4  }
   0xa   :  { %168 = vperm.xlu1 %3502, %v17_v5   ;;  %163 = vperm.xlu0 %3501, %v16_v6  }
   0xe   :  { %178 = vperm.xlu1 %3502, %v19_v7   ;;  %173 = vperm.xlu0 %3501, %v18_v8  }
  0x12   :  { %188 = vperm.xlu1 %3502, %v21_v9   ;;  %183 = vperm.xlu0 %3501, %v20_v10  }
  0x16   :  { %198 = vperm.xlu1 %3502, %v23_v11   ;;  %193 = vperm.xlu0 %3501, %v22_v12  }
  0x17   :  { %7 = vsyncpa [#allocation3], 0  ;;  %v27_v15 = vld [vmem:[%s5380_s0 + $0x78] sm:$0xff]  ;;  %v26_v16 = vld [vmem:[%s5380_s0 + $0x70] sm:$0xff]  ;;  %v915_v59 = vlaneseq  ;;  %v3531_v4 = vmov 0.0  }
  0x18   :  { %v29_v17 = vld [vmem:[%s5380_s0 + $0x88] sm:$0xff]  ;;  %v28_v18 = vld [vmem:[%s5380_s0 + $0x80] sm:$0xff]  ;;  %v31_v19 = vld [vmem:[%s5380_s0 + $0x98] sm:$0xff] }
  0x19   :  { %v30_v20 = vld [vmem:[%s5380_s0 + $0x90] sm:$0xff]  ;;  %v33_v21 = vld [vmem:[%s5380_s0 + $0xa8] sm:$0xff]  ;;  %v32_v22 = vld [vmem:[%s5380_s0 + $0xa0] sm:$0xff]  ;;  %v916_v62 = vand.u32 127, %v915_v59 }
  0x1a   :  { %208 = vperm.xlu1 %3502, %v25_v13   ;;  %203 = vperm.xlu0 %3501, %v24_v14   ;;  %v35_v23 = vld [vmem:[%s5380_s0 + $0xb8] sm:$0xff]  ;;  %v34_v24 = vld [vmem:[%s5380_s0 + $0xb0] sm:$0xff]  ;;  %v37_v25 = vld [vmem:[%s5380_s0 + $0xc8] sm:$0xff] }
  0x1b   :  { %v36_v26 = vld [vmem:[%s5380_s0 + $0xc0] sm:$0xff]  ;;  %v39_v27 = vld [vmem:[%s5380_s0 + $0xd8] sm:$0xff]  ;;  %v38_v28 = vld [vmem:[%s5380_s0 + $0xd0] sm:$0xff]  ;;  %vm917_vm0 = vcmp.ge.s32.totalorder %v916_v62, 64 }
  0x1c   :  { %v41_v29 = vld [vmem:[%s5380_s0 + $0xe8] sm:$0xff]  ;;  %v40_v30 = vld [vmem:[%s5380_s0 + $0xe0] sm:$0xff]  ;;  %v43_v31 = vld [vmem:[%s5380_s0 + $0xf8] sm:$0xff]  ;;  %v3747_v5 = vsel %vm917_vm0, -0.25, %v3531_v4 }
  0x1d   :  { %v42_v32 = vld [vmem:[%s5380_s0 + $0xf0] sm:$0xff]  ;;  %v45_v33 = vld [vmem:[%s5380_s0 + $0x108] sm:$0xff]  ;;  %v44_v34 = vld [vmem:[%s5380_s0 + $0x100] sm:$0xff] }
  0x1e   :  { %218 = vperm.xlu1 %3502, %v27_v15   ;;  %213 = vperm.xlu0 %3501, %v26_v16   ;;  %v47_v35 = vld [vmem:[%s5380_s0 + $0x118] sm:$0xff]  ;;  %v46_v36 = vld [vmem:[%s5380_s0 + $0x110] sm:$0xff]  ;;  %v49_v37 = vld [vmem:[%s5380_s0 + $0x128] sm:$0xff] }
  0x1f   :  { %v48_v38 = vld [vmem:[%s5380_s0 + $0x120] sm:$0xff]  ;;  %v51_v39 = vld [vmem:[%s5380_s0 + $0x138] sm:$0xff]  ;;  %v50_v40 = vld [vmem:[%s5380_s0 + $0x130] sm:$0xff] }
  0x20   :  { %v53_v41 = vld [vmem:[%s5380_s0 + $0x148] sm:$0xff]  ;;  %v52_v42 = vld [vmem:[%s5380_s0 + $0x140] sm:$0xff]  ;;  %v55_v43 = vld [vmem:[%s5380_s0 + $0x158] sm:$0xff] }
  0x21   :  { %v54_v44 = vld [vmem:[%s5380_s0 + $0x150] sm:$0xff]  ;;  %v57_v45 = vld [vmem:[%s5380_s0 + $0x168] sm:$0xff]  ;;  %v56_v46 = vld [vmem:[%s5380_s0 + $0x160] sm:$0xff] }
  0x22   :  { %228 = vperm.xlu1 %3502, %v29_v17   ;;  %223 = vperm.xlu0 %3501, %v28_v18   ;;  %v59_v47 = vld [vmem:[%s5380_s0 + $0x178] sm:$0xff]  ;;  %v58_v48 = vld [vmem:[%s5380_s0 + $0x170] sm:$0xff]  ;;  %v61_v49 = vld [vmem:[%s5380_s0 + $0x188] sm:$0xff] }
  0x23   :  { %v60_v50 = vld [vmem:[%s5380_s0 + $0x180] sm:$0xff]  ;;  %v63_v51 = vld [vmem:[%s5380_s0 + $0x198] sm:$0xff]  ;;  %v62_v52 = vld [vmem:[%s5380_s0 + $0x190] sm:$0xff] }
  0x24   :  { %v65_v53 = vld [vmem:[%s5380_s0 + $0x1a8] sm:$0xff]  ;;  %v64_v54 = vld [vmem:[%s5380_s0 + $0x1a0] sm:$0xff]  ;;  %v67_v55 = vld [vmem:[%s5380_s0 + $0x1b8] sm:$0xff] }
  0x25   :  { %v66_v56 = vld [vmem:[%s5380_s0 + $0x1b0] sm:$0xff]  ;;  %v69_v57 = vld [vmem:[%s5380_s0 + $0x1c8] sm:$0xff]  ;;  %v68_v58 = vld [vmem:[%s5380_s0 + $0x1c0] sm:$0xff] }
  0x26   :  { %238 = vperm.xlu1 %3502, %v31_v19   ;;  %233 = vperm.xlu0 %3501, %v30_v20   ;;  %v71_v60 = vld [vmem:[%s5380_s0 + $0x1d8] sm:$0xff]  ;;  %v70_v61 = vld [vmem:[%s5380_s0 + $0x1d0] sm:$0xff]  ;;  %v73_v63 = vld [vmem:[%s5380_s0 + $0x1e8] sm:$0xff] }
  0x27   :  { %v72_v0 = vld [vmem:[%s5380_s0 + $0x1e0] sm:$0xff]  ;;  %v75_v2 = vld [vmem:[%s5380_s0 + $0x1f8] sm:$0xff]  ;;  %v74_v3 = vld [vmem:[%s5380_s0 + $0x1f0] sm:$0xff] }
  0x28   :  { %v3739_v1 = vld [vmem:[%s5381_s1] ss:$0 sm:$0xff]  ;;  %v77_v10 = vld [vmem:[%s5380_s0 + $0x208] sm:$0xff]  ;;  %v79_v20 = vld [vmem:[%s5380_s0 + $0x218] sm:$0xff] }
  0x29   :  { %v76_v11 = vld [vmem:[%s5380_s0 + $0x200] sm:$0xff] }
  0x2a   :  { %248 = vperm.xlu1 %3502, %v33_v21   ;;  %243 = vperm.xlu0 %3501, %v32_v22   ;;  %v78_v21 = vld [vmem:[%s5380_s0 + $0x210] sm:$0xff] }
  0x2e   :  { %258 = vperm.xlu1 %3502, %v35_v23   ;;  %253 = vperm.xlu0 %3501, %v34_v24  }
  0x32   :  { %268 = vperm.xlu1 %3502, %v37_v25   ;;  %263 = vperm.xlu0 %3501, %v36_v26  }
  0x36   :  { %278 = vperm.xlu1 %3502, %v39_v27   ;;  %273 = vperm.xlu0 %3501, %v38_v28  }
  0x3a   :  { %288 = vperm.xlu1 %3502, %v41_v29   ;;  %283 = vperm.xlu0 %3501, %v40_v30  }
  0x3e   :  { %298 = vperm.xlu1 %3502, %v43_v31   ;;  %293 = vperm.xlu0 %3501, %v42_v32  }
  0x42   :  { %308 = vperm.xlu1 %3502, %v45_v33   ;;  %303 = vperm.xlu0 %3501, %v44_v34   ;;  %v81_v34 = vld [vmem:[%s5380_s0 + $0x228] sm:$0xff] }
  0x46   :  { %318 = vperm.xlu1 %3502, %v47_v35   ;;  %313 = vperm.xlu0 %3501, %v46_v36   ;;  %v80_v35 = vld [vmem:[%s5380_s0 + $0x220] sm:$0xff] }
  0x4a   :  { %328 = vperm.xlu1 %3502, %v49_v37   ;;  %323 = vperm.xlu0 %3501, %v48_v38  }
  0x4e   :  { %338 = vperm.xlu1 %3502, %v51_v39   ;;  %333 = vperm.xlu0 %3501, %v50_v40  }
  0x52   :  { %348 = vperm.xlu1 %3502, %v53_v41   ;;  %343 = vperm.xlu0 %3501, %v52_v42  }
  0x56   :  { %358 = vperm.xlu1 %3502, %v55_v43   ;;  %353 = vperm.xlu0 %3501, %v54_v44  }
  0x5a   :  { %368 = vperm.xlu1 %3502, %v57_v45   ;;  %363 = vperm.xlu0 %3501, %v56_v46  }
  0x5e   :  { %378 = vperm.xlu1 %3502, %v59_v47   ;;  %373 = vperm.xlu0 %3501, %v58_v48  }
  0x62   :  { %388 = vperm.xlu1 %3502, %v61_v49   ;;  %383 = vperm.xlu0 %3501, %v60_v50  }
  0x66   :  { %398 = vperm.xlu1 %3502, %v63_v51   ;;  %393 = vperm.xlu0 %3501, %v62_v52   ;;  %v83_v52 = vld [vmem:[%s5380_s0 + $0x238] sm:$0xff] }
  0x6a   :  { %408 = vperm.xlu1 %3502, %v65_v53   ;;  %403 = vperm.xlu0 %3501, %v64_v54   ;;  %v82_v53 = vld [vmem:[%s5380_s0 + $0x230] sm:$0xff] }
  0x6e   :  { %418 = vperm.xlu1 %3502, %v67_v55   ;;  %413 = vperm.xlu0 %3501, %v66_v56  }
  0x72   :  { %428 = vperm.xlu1 %3502, %v69_v57   ;;  %423 = vperm.xlu0 %3501, %v68_v58  }
  0x76   :  { %438 = vperm.xlu1 %3502, %v71_v60   ;;  %433 = vperm.xlu0 %3501, %v70_v61  }
  0x7a   :  { %448 = vperm.xlu1 %3502, %v73_v63   ;;  %443 = vperm.xlu0 %3501, %v72_v0  }
  0x7d   :  { %v154_v6 = vpop.permute.xlu1 %153  ;;  %v144_v7 = vpop.permute.xlu0 %143 }
  0x7e   :  { %v789_v8 = vmul.f32 %v3739_v1, %v154_v6  ;;  %v787_v9 = vmul.f32 %v3739_v1, %v144_v7  ;;  %458 = vperm.xlu1 %3502, %v75_v2   ;;  %453 = vperm.xlu0 %3501, %v74_v3  }
  0x80   :  { %v921_v12 = vadd.f32 %v3747_v5, %v789_v8  ;;  %v919_v13 = vadd.f32 %v3747_v5, %v787_v9  ;;  %v85_v9 = vld [vmem:[%s5380_s0 + $0x248] sm:$0xff] }
  0x81   :  { %v159_v14 = vpop.permute.xlu1 %158  ;;  %v149_v15 = vpop.permute.xlu0 %148 }
  0x82   :  { %v1049_v16 = vadd.f32 0.5, %v921_v12  ;;  %v1047_v17 = vadd.f32 0.5, %v919_v13  ;;  %v790_v18 = vmul.f32 %v3739_v1, %v159_v14  ;;  %v788_v19 = vmul.f32 %v3739_v1, %v149_v15  ;;  %468 = vperm.xlu1 %3502, %v77_v10   ;;  %463 = vperm.xlu0 %3501, %v76_v11   ;;  %v84_v10 = vld [vmem:[%s5380_s0 + $0x240] sm:$0xff] }
  0x84   :  { %v1177_v22 = vfloor.f32 %v1049_v16  ;;  %v1175_v23 = vfloor.f32 %v1047_v17  ;;  %v922_v24 = vadd.f32 %v3747_v5, %v790_v18  ;;  %v920_v25 = vadd.f32 %v3747_v5, %v788_v19 }
  0x85   :  { %v169_v26 = vpop.permute.xlu1 %168  ;;  %v164_v27 = vpop.permute.xlu0 %163 }
  0x86   :  { %v1305_v28 = vsub.f32 %v921_v12, %v1177_v22  ;;  %v1303_v29 = vsub.f32 %v919_v13, %v1175_v23  ;;  %v1050_v30 = vadd.f32 0.5, %v922_v24  ;;  %v1048_v31 = vadd.f32 0.5, %v920_v25  ;;  %478 = vperm.xlu1 %3502, %v79_v20   ;;  %473 = vperm.xlu0 %3501, %v78_v21  }
  0x87   :  { %v792_v32 = vmul.f32 %v3739_v1, %v169_v26  ;;  %v791_v33 = vmul.f32 %v3739_v1, %v164_v27  ;;  %v87_v27 = vld [vmem:[%s5380_s0 + $0x258] sm:$0xff] }
  0x88   :  { %v3777_v36 = vmul.f32 %v1305_v28, %v1305_v28  ;;  %v3779_v37 = vmul.f32 %v1303_v29, %v1303_v29  ;;  %v1178_v38 = vfloor.f32 %v1050_v30  ;;  %v1176_v39 = vfloor.f32 %v1048_v31  ;;  %v86_v28 = vld [vmem:[%s5380_s0 + $0x250] sm:$0xff] }
  0x89   :  { %v924_v40 = vadd.f32 %v3747_v5, %v792_v32  ;;  %v923_v41 = vadd.f32 %v3747_v5, %v791_v33  ;;  %v179_v42 = vpop.permute.xlu1 %178  ;;  %v174_v43 = vpop.permute.xlu0 %173 }
  0x8a   :  { %v1561_v44 = vmul.f32 -1.4609046, %v3777_v36  ;;  %v1559_v45 = vmul.f32 -1.4609046, %v3779_v37  ;;  %v1306_v46 = vsub.f32 %v922_v24, %v1178_v38  ;;  %v1304_v47 = vsub.f32 %v920_v25, %v1176_v39  ;;  %488 = vperm.xlu1 %3502, %v81_v34   ;;  %483 = vperm.xlu0 %3501, %v80_v35  }
  0x8b   :  { %v1052_v48 = vadd.f32 0.5, %v924_v40  ;;  %v1051_v49 = vadd.f32 0.5, %v923_v41  ;;  %v794_v50 = vmul.f32 %v3739_v1, %v179_v42  ;;  %v793_v51 = vmul.f32 %v3739_v1, %v174_v43 }
  0x8c   :  { %v1689_v54 = vadd.f32 7.806575, %v1561_v44  ;;  %v1687_v55 = vadd.f32 7.806575, %v1559_v45  ;;  %v3793_v56 = vmul.f32 %v1306_v46, %v1306_v46  ;;  %v3795_v57 = vmul.f32 %v1304_v47, %v1304_v47 }
  0x8d   :  { %v1180_v58 = vfloor.f32 %v1052_v48  ;;  %v1179_v59 = vfloor.f32 %v1051_v49  ;;  %v926_v60 = vadd.f32 %v3747_v5, %v794_v50  ;;  %v925_v61 = vadd.f32 %v3747_v5, %v793_v51  ;;  %v189_v62 = vpop.permute.xlu1 %188  ;;  %v184_v43 = vpop.permute.xlu0 %183  ;;  %v89_v48 = vld [vmem:[%s5380_s0 + $0x268] sm:$0xff]  ;;  %v88_v49 = vld [vmem:[%s5380_s0 + $0x260] sm:$0xff] }
  0x8e   :  { %v1817_v63 = vmul.f32 %v1689_v54, %v3777_v36  ;;  %v1815_v0 = vmul.f32 %v1687_v55, %v3779_v37  ;;  %v1562_v2 = vmul.f32 -1.4609046, %v3793_v56  ;;  %v1560_v3 = vmul.f32 -1.4609046, %v3795_v57  ;;  %498 = vperm.xlu1 %3502, %v83_v52   ;;  %493 = vperm.xlu0 %3501, %v82_v53  }
  0x8f   :  { %v1308_v4 = vsub.f32 %v924_v40, %v1180_v58  ;;  %v1307_v6 = vsub.f32 %v923_v41, %v1179_v59  ;;  %v1054_v7 = vadd.f32 0.5, %v926_v60  ;;  %v1053_v8 = vadd.f32 0.5, %v925_v61 }
  0x90   :  { %v1945_v11 = vadd.f32 -26.406752, %v1817_v63  ;;  %v1943_v12 = vadd.f32 -26.406752, %v1815_v0  ;;  %v1690_v13 = vadd.f32 7.806575, %v1562_v2  ;;  %v796_v14 = vmul.f32 %v3739_v1, %v189_v62 }
  0x91   :  { %v1688_v15 = vadd.f32 7.806575, %v1560_v3  ;;  %v3810_v16 = vmul.f32 %v1308_v4, %v1308_v4  ;;  %v3812_v17 = vmul.f32 %v1307_v6, %v1307_v6  ;;  %v1182_v18 = vfloor.f32 %v1054_v7  ;;  %v91_v6 = vld [vmem:[%s5380_s0 + $0x278] sm:$0xff]  ;;  %v90_v7 = vld [vmem:[%s5380_s0 + $0x270] sm:$0xff] }
  0x92   :  { %v2073_v19 = vmul.f32 %v1945_v11, %v3777_v36  ;;  %v2071_v20 = vmul.f32 %v1943_v12, %v3779_v37  ;;  %v1818_v21 = vmul.f32 %v1690_v13, %v3793_v56  ;;  %v1181_v22 = vfloor.f32 %v1053_v8  ;;  %508 = vperm.xlu1 %3502, %v85_v9   ;;  %503 = vperm.xlu0 %3501, %v84_v10  }
  0x93   :  { %v1816_v23 = vmul.f32 %v1688_v15, %v3795_v57  ;;  %v1564_v24 = vmul.f32 -1.4609046, %v3810_v16  ;;  %v1563_v25 = vmul.f32 -1.4609046, %v3812_v17  ;;  %v1310_v26 = vsub.f32 %v926_v60, %v1182_v18 }
  0x94   :  { %v2201_v29 = vadd.f32 60.242462, %v2073_v19  ;;  %v2199_v30 = vadd.f32 60.242462, %v2071_v20  ;;  %v1946_v31 = vadd.f32 -26.406752, %v1818_v21  ;;  %v1309_v32 = vsub.f32 %v925_v61, %v1181_v22 }
  0x95   :  { %v1944_v33 = vadd.f32 -26.406752, %v1816_v23  ;;  %v1692_v34 = vadd.f32 7.806575, %v1564_v24  ;;  %v1691_v35 = vadd.f32 7.806575, %v1563_v25  ;;  %v3826_v38 = vmul.f32 %v1310_v26, %v1310_v26 }
  0x96   :  { %v2329_v39 = vmul.f32 %v2201_v29, %v3777_v36  ;;  %v2327_v40 = vmul.f32 %v2199_v30, %v3779_v37  ;;  %v2074_v41 = vmul.f32 %v1946_v31, %v3793_v56  ;;  %v3831_v42 = vmul.f32 %v1309_v32, %v1309_v32  ;;  %518 = vperm.xlu1 %3502, %v87_v27   ;;  %v93_v26 = vld [vmem:[%s5380_s0 + $0x288] sm:$0xff]  ;;  %v92_v27 = vld [vmem:[%s5380_s0 + $0x280] sm:$0xff] }
  0x97   :  { %v2072_v44 = vmul.f32 %v1944_v33, %v3795_v57  ;;  %v1820_v45 = vmul.f32 %v1692_v34, %v3810_v16  ;;  %v1819_v46 = vmul.f32 %v1691_v35, %v3812_v17  ;;  %v1566_v47 = vmul.f32 -1.4609046, %v3826_v38  ;;  %513 = vperm.xlu0 %3501, %v86_v28  }
  0x98   :  { %v2457_v50 = vadd.f32 -85.45669, %v2329_v39  ;;  %v2455_v51 = vadd.f32 -85.45669, %v2327_v40  ;;  %v2202_v52 = vadd.f32 60.242462, %v2074_v41  ;;  %v3844_v53 = vadd.f32 %v3747_v5, %v796_v14 }
  0x99   :  { %v2200_v54 = vadd.f32 60.242462, %v2072_v44  ;;  %v1948_v55 = vadd.f32 -26.406752, %v1820_v45  ;;  %v1947_v58 = vadd.f32 -26.406752, %v1819_v46  ;;  %v795_v59 = vmul.f32 %v3739_v1, %v184_v43 }
  0x9a   :  { %v2585_v60 = vmul.f32 %v2457_v50, %v3777_v36  ;;  %v2583_v61 = vmul.f32 %v2455_v51, %v3779_v37  ;;  %v2330_v62 = vmul.f32 %v2202_v52, %v3793_v56  ;;  %v1694_v63 = vadd.f32 7.806575, %v1566_v47  ;;  %528 = vperm.xlu1 %3502, %v89_v48   ;;  %v95_v48 = vld [vmem:[%s5380_s0 + $0x298] sm:$0xff]  ;;  %v94_v51 = vld [vmem:[%s5380_s0 + $0x290] sm:$0xff] }
  0x9b   :  { %v2328_v0 = vmul.f32 %v2200_v54, %v3795_v57  ;;  %v2076_v2 = vmul.f32 %v1948_v55, %v3810_v16  ;;  %v2075_v3 = vmul.f32 %v1947_v58, %v3812_v17  ;;  %v1565_v4 = vmul.f32 -1.4609046, %v3831_v42  ;;  %523 = vperm.xlu0 %3501, %v88_v49  }
  0x9c   :  { %v2713_v8 = vadd.f32 64.93939, %v2585_v60  ;;  %v2711_v9 = vadd.f32 64.93939, %v2583_v61  ;;  %v2458_v10 = vadd.f32 -85.45669, %v2330_v62  ;;  %v1822_v11 = vmul.f32 %v1694_v63, %v3826_v38 }
  0x9d   :  { %v2456_v12 = vadd.f32 -85.45669, %v2328_v0  ;;  %v2204_v13 = vadd.f32 60.242462, %v2076_v2  ;;  %v2203_v14 = vadd.f32 60.242462, %v2075_v3  ;;  %v3862_v15 = vadd.f32 %v3747_v5, %v795_v59  ;;  %v199_v59 = vpop.permute.xlu1 %198  ;;  %v194_v0 = vpop.permute.xlu0 %193 }
  0x9e   :  { %v2841_v18 = vmul.f32 %v2713_v8, %v3777_v36  ;;  %v2839_v19 = vmul.f32 %v2711_v9, %v3779_v37  ;;  %v2586_v20 = vmul.f32 %v2458_v10, %v3793_v56  ;;  %v1950_v21 = vadd.f32 -26.406752, %v1822_v11  ;;  %538 = vperm.xlu1 %3502, %v91_v6   ;;  %v96_v11 = vld [vmem:[%s5380_s0 + $0x2a0] sm:$0xff] }
  0x9f   :  { %v2584_v22 = vmul.f32 %v2456_v12, %v3795_v57  ;;  %v2332_v23 = vmul.f32 %v2204_v13, %v3810_v16  ;;  %v2331_v24 = vmul.f32 %v2203_v14, %v3812_v17  ;;  %v1693_v25 = vadd.f32 7.806575, %v1565_v4  ;;  %533 = vperm.xlu0 %3501, %v90_v7   ;;  %v97_v7 = vld [vmem:[%s5380_s0 + $0x2a8] sm:$0xff] }
  0xa0   :  { %v2969_v28 = vadd.f32 -19.739208, %v2841_v18  ;;  %v2967_v29 = vadd.f32 -19.739208, %v2839_v19  ;;  %v2714_v30 = vadd.f32 64.93939, %v2586_v20  ;;  %v2078_v31 = vmul.f32 %v1950_v21, %v3826_v38 }
  0xa1   :  { %v2712_v32 = vadd.f32 64.93939, %v2584_v22  ;;  %v2460_v33 = vadd.f32 -85.45669, %v2332_v23  ;;  %v2459_v34 = vadd.f32 -85.45669, %v2331_v24  ;;  %v1821_v35 = vmul.f32 %v1693_v25, %v3831_v42 }
  0xa2   :  { %v3097_v39 = vmul.f32 %v2969_v28, %v3777_v36  ;;  %v3095_v40 = vmul.f32 %v2967_v29, %v3779_v37  ;;  %v2842_v41 = vmul.f32 %v2714_v30, %v3793_v56  ;;  %v2206_v43 = vadd.f32 60.242462, %v2078_v31  ;;  %548 = vperm.xlu1 %3502, %v93_v26   ;;  %v209_v26 = vpop.permute.xlu1 %208 }
  0xa3   :  { %v2840_v44 = vmul.f32 %v2712_v32, %v3795_v57  ;;  %v2588_v45 = vmul.f32 %v2460_v33, %v3810_v16  ;;  %v2587_v46 = vmul.f32 %v2459_v34, %v3812_v17  ;;  %v1949_v47 = vadd.f32 -26.406752, %v1821_v35  ;;  %543 = vperm.xlu0 %3501, %v92_v27   ;;  %v99_v27 = vld [vmem:[%s5380_s0 + $0x2b8] sm:$0xff] }
  0xa4   :  { %v3225_v49 = vadd.f32 1.0, %v3097_v39  ;;  %v3223_v36 = vadd.f32 1.0, %v3095_v40  ;;  %v2970_v50 = vadd.f32 -19.739208, %v2842_v41  ;;  %v2334_v37 = vmul.f32 %v2206_v43, %v3826_v38 }
  0xa5   :  { %v2968_v52 = vadd.f32 -19.739208, %v2840_v44  ;;  %v2716_v54 = vadd.f32 64.93939, %v2588_v45  ;;  %v2715_v55 = vadd.f32 64.93939, %v2587_v46  ;;  %v2077_v58 = vmul.f32 %v1949_v47, %v3831_v42 }
  0xa6   :  { %3353 = vst [vmem:[#allocation2 + $0x10] sm:$0xff] %v3225_v49  ;;  %3351 = vst [vmem:[#allocation2] sm:$0xff] %v3223_v36  ;;  %v3098_v60 = vmul.f32 %v2970_v50, %v3793_v56  ;;  %v2462_v61 = vadd.f32 -85.45669, %v2334_v37  ;;  %v1056_v62 = vadd.f32 0.5, %v3844_v53  ;;  %v1055_v63 = vadd.f32 0.5, %v3862_v15  ;;  %558 = vperm.xlu1 %3502, %v95_v48  }
  0xa7   :  { %v3096_v2 = vmul.f32 %v2968_v52, %v3795_v57  ;;  %v2844_v3 = vmul.f32 %v2716_v54, %v3810_v16  ;;  %v2843_v4 = vmul.f32 %v2715_v55, %v3812_v17  ;;  %v2205_v6 = vadd.f32 60.242462, %v2077_v58  ;;  %553 = vperm.xlu0 %3501, %v94_v51   ;;  %v101_v46 = vld [vmem:[%s5380_s0 + $0x2c8] sm:$0xff]  ;;  %v100_v50 = vld [vmem:[%s5380_s0 + $0x2c0] sm:$0xff]  ;;  %v219_v55 = vpop.permute.xlu1 %218 }
  0xa8   :  { %v3226_v56 = vadd.f32 1.0, %v3098_v60  ;;  %v2590_v8 = vmul.f32 %v2462_v61, %v3826_v38  ;;  %v1184_v9 = vfloor.f32 %v1056_v62  ;;  %v1183_v10 = vfloor.f32 %v1055_v63 }
  0xa9   :  { %v3224_v57 = vadd.f32 1.0, %v3096_v2  ;;  %v2972_v12 = vadd.f32 -19.739208, %v2844_v3  ;;  %v2971_v13 = vadd.f32 -19.739208, %v2843_v4  ;;  %v2333_v14 = vmul.f32 %v2205_v6, %v3831_v42  ;;  %v103_v2 = vld [vmem:[%s5380_s0 + $0x2d8] sm:$0xff] }
  0xaa   :  { %3354 = vst [vmem:[#allocation2 + $0x18] sm:$0xff] %v3226_v56  ;;  %v2718_v18 = vadd.f32 64.93939, %v2590_v8  ;;  %v1312_v19 = vsub.f32 %v3844_v53, %v1184_v9  ;;  %v1311_v20 = vsub.f32 %v3862_v15, %v1183_v10  ;;  %v798_v21 = vmul.f32 %v3739_v1, %v199_v59  ;;  %568 = vperm.xlu1 %3502, %v97_v7   ;;  %v102_v56 = vld [vmem:[%s5380_s0 + $0x2d0] sm:$0xff] }
  0xab   :  { %3352 = vst [vmem:[#allocation2 + $0x8] sm:$0xff] %v3224_v57  ;;  %v3100_v22 = vmul.f32 %v2972_v12, %v3810_v16  ;;  %v3099_v23 = vmul.f32 %v2971_v13, %v3812_v17  ;;  %v2461_v24 = vadd.f32 -85.45669, %v2333_v14  ;;  %v797_v25 = vmul.f32 %v3739_v1, %v194_v0  ;;  %563 = vperm.xlu0 %3501, %v96_v11   ;;  %v204_v16 = vpop.permute.xlu0 %203  ;;  %v98_v17 = vld [vmem:[%s5380_s0 + $0x2b0] sm:$0xff] }
  0xac   :  { %v2846_v53 = vmul.f32 %v2718_v18, %v3826_v38  ;;  %v3916_v15 = vmul.f32 %v1312_v19, %v1312_v19  ;;  %v3918_v28 = vmul.f32 %v1311_v20, %v1311_v20  ;;  %v930_v29 = vadd.f32 %v3747_v5, %v798_v21 }
  0xad   :  { %v3228_v30 = vadd.f32 1.0, %v3100_v22  ;;  %v3227_v31 = vadd.f32 1.0, %v3099_v23  ;;  %v2589_v32 = vmul.f32 %v2461_v24, %v3831_v42  ;;  %v929_v33 = vadd.f32 %v3747_v5, %v797_v25  ;;  %v105_v22 = vld [vmem:[%s5380_s0 + $0x2e8] sm:$0xff] }
  0xae   :  { %v2974_v34 = vadd.f32 -19.739208, %v2846_v53  ;;  %v1568_v35 = vmul.f32 -1.4609046, %v3916_v15  ;;  %v1567_v39 = vmul.f32 -1.4609046, %v3918_v28  ;;  %v800_v40 = vmul.f32 %v3739_v1, %v209_v26  ;;  %578 = vperm.xlu1 %3502, %v99_v27  }
  0xaf   :  { %3356 = vst [vmem:[#allocation2 + $0x28] sm:$0xff] %v3228_v30  ;;  %3355 = vst [vmem:[#allocation2 + $0x20] sm:$0xff] %v3227_v31  ;;  %v2717_v41 = vadd.f32 64.93939, %v2589_v32  ;;  %v1058_v43 = vadd.f32 0.5, %v930_v29  ;;  %v1057_v44 = vadd.f32 0.5, %v929_v33  ;;  %v799_v45 = vmul.f32 %v3739_v1, %v204_v16  ;;  %573 = vperm.xlu0 %3501, %v98_v17   ;;  %v214_v18 = vpop.permute.xlu0 %213 }
  0xb0   :  { %v3102_v47 = vmul.f32 %v2974_v34, %v3826_v38  ;;  %v1696_v48 = vadd.f32 7.806575, %v1568_v35  ;;  %v1695_v49 = vadd.f32 7.806575, %v1567_v39  ;;  %v932_v36 = vadd.f32 %v3747_v5, %v800_v40  ;;  %v104_v27 = vld [vmem:[%s5380_s0 + $0x2e0] sm:$0xff]  ;;  %v229_v34 = vpop.permute.xlu1 %228 }
  0xb1   :  { %v2845_v37 = vmul.f32 %v2717_v41, %v3831_v42  ;;  %v1186_v51 = vfloor.f32 %v1058_v43  ;;  %v1185_v52 = vfloor.f32 %v1057_v44  ;;  %v931_v54 = vadd.f32 %v3747_v5, %v799_v45  ;;  %v107_v43 = vld [vmem:[%s5380_s0 + $0x2f8] sm:$0xff]  ;;  %v106_v44 = vld [vmem:[%s5380_s0 + $0x2f0] sm:$0xff] }
  0xb2   :  { %v3230_v58 = vadd.f32 1.0, %v3102_v47  ;;  %v1824_v59 = vmul.f32 %v1696_v48, %v3916_v15  ;;  %v1823_v38 = vmul.f32 %v1695_v49, %v3918_v28  ;;  %v1060_v60 = vadd.f32 0.5, %v932_v36  ;;  %588 = vperm.xlu1 %3502, %v101_v46  }
  0xb3   :  { %v2973_v61 = vadd.f32 -19.739208, %v2845_v37  ;;  %v1314_v62 = vsub.f32 %v930_v29, %v1186_v51  ;;  %v1313_v63 = vsub.f32 %v929_v33, %v1185_v52  ;;  %v1059_v0 = vadd.f32 0.5, %v931_v54  ;;  %583 = vperm.xlu0 %3501, %v100_v50  }
  0xb4   :  { %3358 = vst [vmem:[#allocation2 + $0x38] sm:$0xff] %v3230_v58  ;;  %v1952_v3 = vadd.f32 -26.406752, %v1824_v59  ;;  %v1951_v4 = vadd.f32 -26.406752, %v1823_v38  ;;  %v1188_v6 = vfloor.f32 %v1060_v60  ;;  %v802_v7 = vmul.f32 %v3739_v1, %v219_v55 }
  0xb5   :  { %v3101_v8 = vmul.f32 %v2973_v61, %v3831_v42  ;;  %v3950_v9 = vmul.f32 %v1314_v62, %v1314_v62  ;;  %v3952_v10 = vmul.f32 %v1313_v63, %v1313_v63  ;;  %v1187_v11 = vfloor.f32 %v1059_v0  ;;  %v109_v61 = vld [vmem:[%s5380_s0 + $0x308] sm:$0xff]  ;;  %v108_v62 = vld [vmem:[%s5380_s0 + $0x300] sm:$0xff] }
  0xb6   :  { %v2080_v57 = vmul.f32 %v1952_v3, %v3916_v15  ;;  %v2079_v12 = vmul.f32 %v1951_v4, %v3918_v28  ;;  %v1316_v13 = vsub.f32 %v932_v36, %v1188_v6  ;;  %v934_v14 = vadd.f32 %v3747_v5, %v802_v7  ;;  %598 = vperm.xlu1 %3502, %v103_v2  }
  0xb7   :  { %v3229_v19 = vadd.f32 1.0, %v3101_v8  ;;  %v1570_v20 = vmul.f32 -1.4609046, %v3950_v9  ;;  %v1569_v21 = vmul.f32 -1.4609046, %v3952_v10  ;;  %v1315_v42 = vsub.f32 %v931_v54, %v1187_v11  ;;  %593 = vperm.xlu0 %3501, %v102_v56   ;;  %v224_v8 = vpop.permute.xlu0 %223 }
  0xb8   :  { %v2208_v23 = vadd.f32 60.242462, %v2080_v57  ;;  %v2207_v24 = vadd.f32 60.242462, %v2079_v12  ;;  %v3962_v25 = vmul.f32 %v1316_v13, %v1316_v13  ;;  %v1062_v26 = vadd.f32 0.5, %v934_v14 }
  0xb9   :  { %3357 = vst [vmem:[#allocation2 + $0x30] sm:$0xff] %v3229_v19  ;;  %v1698_v53 = vadd.f32 7.806575, %v1570_v20  ;;  %v1697_v29 = vadd.f32 7.806575, %v1569_v21  ;;  %v3967_v16 = vmul.f32 %v1315_v42, %v1315_v42  ;;  %v801_v17 = vmul.f32 %v3739_v1, %v214_v18  ;;  %v111_v21 = vld [vmem:[%s5380_s0 + $0x318] sm:$0xff] }
  0xba   :  { %v2336_v30 = vmul.f32 %v2208_v23, %v3916_v15  ;;  %v2335_v31 = vmul.f32 %v2207_v24, %v3918_v28  ;;  %v1572_v32 = vmul.f32 -1.4609046, %v3962_v25  ;;  %v1190_v33 = vfloor.f32 %v1062_v26  ;;  %608 = vperm.xlu1 %3502, %v105_v22   ;;  %v110_v42 = vld [vmem:[%s5380_s0 + $0x310] sm:$0xff] }
  0xbb   :  { %v1826_v35 = vmul.f32 %v1698_v53, %v3950_v9  ;;  %v1825_v39 = vmul.f32 %v1697_v29, %v3952_v10  ;;  %v1571_v40 = vmul.f32 -1.4609046, %v3967_v16  ;;  %v933_v41 = vadd.f32 %v3747_v5, %v801_v17  ;;  %603 = vperm.xlu0 %3501, %v104_v27  }
  0xbc   :  { %v2464_v45 = vadd.f32 -85.45669, %v2336_v30  ;;  %v2463_v46 = vadd.f32 -85.45669, %v2335_v31  ;;  %v1700_v47 = vadd.f32 7.806575, %v1572_v32  ;;  %v1318_v48 = vsub.f32 %v934_v14, %v1190_v33 }
  0xbd   :  { %v1954_v49 = vadd.f32 -26.406752, %v1826_v35  ;;  %v1953_v36 = vadd.f32 -26.406752, %v1825_v39  ;;  %v1699_v50 = vadd.f32 7.806575, %v1571_v40  ;;  %v804_v37 = vmul.f32 %v3739_v1, %v229_v34 }
  0xbe   :  { %v2592_v51 = vmul.f32 %v2464_v45, %v3916_v15  ;;  %v2591_v52 = vmul.f32 %v2463_v46, %v3918_v28  ;;  %v1828_v54 = vmul.f32 %v1700_v47, %v3962_v25  ;;  %v3987_v55 = vmul.f32 %v1318_v48, %v1318_v48  ;;  %618 = vperm.xlu1 %3502, %v107_v43   ;;  %v112_v45 = vld [vmem:[%s5380_s0 + $0x320] sm:$0xff] }
  0xbf   :  { %v2082_v58 = vmul.f32 %v1954_v49, %v3950_v9  ;;  %v2081_v59 = vmul.f32 %v1953_v36, %v3952_v10  ;;  %v1827_v38 = vmul.f32 %v1699_v50, %v3967_v16  ;;  %v1061_v60 = vadd.f32 0.5, %v933_v41  ;;  %613 = vperm.xlu0 %3501, %v106_v44  }
  0xc0   :  { %v2720_v63 = vadd.f32 64.93939, %v2592_v51  ;;  %v2719_v0 = vadd.f32 64.93939, %v2591_v52  ;;  %v1956_v2 = vadd.f32 -26.406752, %v1828_v54  ;;  %v3999_v3 = vadd.f32 %v3747_v5, %v804_v37 }
  0xc1   :  { %v2210_v4 = vadd.f32 60.242462, %v2082_v58  ;;  %v2209_v6 = vadd.f32 60.242462, %v2081_v59  ;;  %v1955_v7 = vadd.f32 -26.406752, %v1827_v38  ;;  %v1189_v56 = vfloor.f32 %v1061_v60 }
  0xc2   :  { %v2848_v11 = vmul.f32 %v2720_v63, %v3916_v15  ;;  %v2847_v57 = vmul.f32 %v2719_v0, %v3918_v28  ;;  %v2084_v12 = vmul.f32 %v1956_v2, %v3962_v25  ;;  %v1574_v13 = vmul.f32 -1.4609046, %v3987_v55  ;;  %628 = vperm.xlu1 %3502, %v109_v61   ;;  %v115_v38 = vld [vmem:[%s5380_s0 + $0x338] sm:$0xff]  ;;  %v114_v0 = vld [vmem:[%s5380_s0 + $0x330] sm:$0xff] }
  0xc3   :  { %v2338_v14 = vmul.f32 %v2210_v4, %v3950_v9  ;;  %v2337_v18 = vmul.f32 %v2209_v6, %v3952_v10  ;;  %v2083_v19 = vmul.f32 %v1955_v7, %v3967_v16  ;;  %v1317_v20 = vsub.f32 %v933_v41, %v1189_v56  ;;  %623 = vperm.xlu0 %3501, %v108_v62   ;;  %v113_v41 = vld [vmem:[%s5380_s0 + $0x328] sm:$0xff]  ;;  %v239_v56 = vpop.permute.xlu1 %238 }
  0xc4   :  { %v2976_v22 = vadd.f32 -19.739208, %v2848_v11  ;;  %v2975_v23 = vadd.f32 -19.739208, %v2847_v57  ;;  %v2212_v24 = vadd.f32 60.242462, %v2084_v12  ;;  %v803_v26 = vmul.f32 %v3739_v1, %v224_v8 }
  0xc5   :  { %v2466_v27 = vadd.f32 -85.45669, %v2338_v14  ;;  %v2465_v53 = vadd.f32 -85.45669, %v2337_v18  ;;  %v2211_v29 = vadd.f32 60.242462, %v2083_v19  ;;  %v4015_v17 = vmul.f32 %v1317_v20, %v1317_v20 }
  0xc6   :  { %v3104_v30 = vmul.f32 %v2976_v22, %v3916_v15  ;;  %v3103_v31 = vmul.f32 %v2975_v23, %v3918_v28  ;;  %v2340_v32 = vmul.f32 %v2212_v24, %v3962_v25  ;;  %v1702_v33 = vadd.f32 7.806575, %v1574_v13  ;;  %638 = vperm.xlu1 %3502, %v111_v21   ;;  %v234_v13 = vpop.permute.xlu0 %233  ;;  %v117_v21 = vld [vmem:[%s5380_s0 + $0x348] sm:$0xff] }
  0xc7   :  { %v2594_v34 = vmul.f32 %v2466_v27, %v3950_v9  ;;  %v2593_v35 = vmul.f32 %v2465_v53, %v3952_v10  ;;  %v2339_v39 = vmul.f32 %v2211_v29, %v3967_v16  ;;  %v1573_v40 = vmul.f32 -1.4609046, %v4015_v17  ;;  %633 = vperm.xlu0 %3501, %v110_v42  }
  0xc8   :  { %v3232_v15 = vadd.f32 1.0, %v3104_v30  ;;  %v3231_v43 = vadd.f32 1.0, %v3103_v31  ;;  %v2468_v28 = vadd.f32 -85.45669, %v2340_v32  ;;  %v1830_v44 = vmul.f32 %v1702_v33, %v3987_v55 }
  0xc9   :  { %v2722_v46 = vadd.f32 64.93939, %v2594_v34  ;;  %v2721_v47 = vadd.f32 64.93939, %v2593_v35  ;;  %v2467_v48 = vadd.f32 -85.45669, %v2339_v39  ;;  %v935_v49 = vadd.f32 %v3747_v5, %v803_v26  ;;  %v249_v39 = vpop.permute.xlu1 %248 }
  0xca   :  { %3360 = vst [vmem:[#allocation2 + $0x48] sm:$0xff] %v3232_v15  ;;  %3359 = vst [vmem:[#allocation2 + $0x40] sm:$0xff] %v3231_v43  ;;  %v2596_v36 = vmul.f32 %v2468_v28, %v3962_v25  ;;  %v1958_v50 = vadd.f32 -26.406752, %v1830_v44  ;;  %v1701_v37 = vadd.f32 7.806575, %v1573_v40  ;;  %648 = vperm.xlu1 %3502, %v113_v41   ;;  %v806_v34 = vmul.f32 %v3739_v1, %v239_v56  ;;  %v244_v28 = vpop.permute.xlu0 %243 }
  0xcb   :  { %v1064_v51 = vadd.f32 0.5, %v3999_v3  ;;  %v2850_v52 = vmul.f32 %v2722_v46, %v3950_v9  ;;  %v2849_v54 = vmul.f32 %v2721_v47, %v3952_v10  ;;  %v2595_v58 = vmul.f32 %v2467_v48, %v3967_v16  ;;  %643 = vperm.xlu0 %3501, %v112_v45  }
  0xcc   :  { %v1063_v59 = vadd.f32 0.5, %v935_v49  ;;  %v2724_v60 = vadd.f32 64.93939, %v2596_v36  ;;  %v2086_v61 = vmul.f32 %v1958_v50, %v3987_v55  ;;  %v1829_v62 = vmul.f32 %v1701_v37, %v4015_v17 }
  0xcd   :  { %v1192_v63 = vfloor.f32 %v1064_v51  ;;  %v2978_v2 = vadd.f32 -19.739208, %v2850_v52  ;;  %v2977_v4 = vadd.f32 -19.739208, %v2849_v54  ;;  %v2723_v6 = vadd.f32 64.93939, %v2595_v58 }
  0xce   :  { %v1191_v7 = vfloor.f32 %v1063_v59  ;;  %v2852_v8 = vmul.f32 %v2724_v60, %v3962_v25  ;;  %v2214_v11 = vadd.f32 60.242462, %v2086_v61  ;;  %v1957_v57 = vadd.f32 -26.406752, %v1829_v62  ;;  %658 = vperm.xlu1 %3502, %v115_v38  }
  0xcf   :  { %v1320_v12 = vsub.f32 %v3999_v3, %v1192_v63  ;;  %v3106_v14 = vmul.f32 %v2978_v2, %v3950_v9  ;;  %v3105_v18 = vmul.f32 %v2977_v4, %v3952_v10  ;;  %v2851_v19 = vmul.f32 %v2723_v6, %v3967_v16  ;;  %653 = vperm.xlu0 %3501, %v114_v0   ;;  %v116_v9 = vld [vmem:[%s5380_s0 + $0x340] sm:$0xff] }
  0xd0   :  { %v1319_v20 = vsub.f32 %v935_v49, %v1191_v7  ;;  %v2980_v42 = vadd.f32 -19.739208, %v2852_v8  ;;  %v2342_v22 = vmul.f32 %v2214_v11, %v3987_v55  ;;  %v2085_v23 = vmul.f32 %v1957_v57, %v4015_v17 }
  0xd1   :  { %v4055_v3 = vmul.f32 %v1320_v12, %v1320_v12  ;;  %v3234_v10 = vadd.f32 1.0, %v3106_v14  ;;  %v3233_v24 = vadd.f32 1.0, %v3105_v18  ;;  %v2979_v26 = vadd.f32 -19.739208, %v2851_v19  ;;  %v259_v19 = vpop.permute.xlu1 %258 }
  0xd2   :  { %v4060_v27 = vmul.f32 %v1319_v20, %v1319_v20  ;;  %v3108_v53 = vmul.f32 %v2980_v42, %v3962_v25  ;;  %v2470_v29 = vadd.f32 -85.45669, %v2342_v22  ;;  %v2213_v30 = vadd.f32 60.242462, %v2085_v23  ;;  %668 = vperm.xlu1 %3502, %v117_v21   ;;  %v119_v25 = vld [vmem:[%s5380_s0 + $0x358] sm:$0xff]  ;;  %v121_v20 = vld [vmem:[%s5380_s0 + $0x368] sm:$0xff] }
  0xd3   :  { %v1576_v31 = vmul.f32 -1.4609046, %v4055_v3  ;;  %3362 = vst [vmem:[#allocation2 + $0x58] sm:$0xff] %v3234_v10  ;;  %3361 = vst [vmem:[#allocation2 + $0x50] sm:$0xff] %v3233_v24  ;;  %v3107_v32 = vmul.f32 %v2979_v26, %v3967_v16  ;;  %v805_v35 = vmul.f32 %v3739_v1, %v234_v13  ;;  %663 = vperm.xlu0 %3501, %v116_v9   ;;  %v118_v16 = vld [vmem:[%s5380_s0 + $0x350] sm:$0xff]  ;;  %v120_v21 = vld [vmem:[%s5380_s0 + $0x360] sm:$0xff] }
  0xd4   :  { %v1575_v33 = vmul.f32 -1.4609046, %v4060_v27  ;;  %v3236_v40 = vadd.f32 1.0, %v3108_v53  ;;  %v2598_v41 = vmul.f32 %v2470_v29, %v3987_v55  ;;  %v2341_v15 = vmul.f32 %v2213_v30, %v4015_v17 }
  0xd5   :  { %v1704_v43 = vadd.f32 7.806575, %v1576_v31  ;;  %v3235_v44 = vadd.f32 1.0, %v3107_v32  ;;  %v938_v46 = vadd.f32 %v3747_v5, %v806_v34  ;;  %v937_v47 = vadd.f32 %v3747_v5, %v805_v35 }
  0xd6   :  { %v1703_v45 = vadd.f32 7.806575, %v1575_v33  ;;  %3364 = vst [vmem:[#allocation2 + $0x68] sm:$0xff] %v3236_v40  ;;  %v2726_v48 = vadd.f32 64.93939, %v2598_v41  ;;  %v808_v50 = vmul.f32 %v3739_v1, %v249_v39  ;;  %678 = vperm.xlu1 %3502, %v119_v25   ;;  %v807_v54 = vmul.f32 %v3739_v1, %v244_v28 }
  0xd7   :  { %v2469_v49 = vadd.f32 -85.45669, %v2341_v15  ;;  %v1832_v36 = vmul.f32 %v1704_v43, %v4055_v3  ;;  %3363 = vst [vmem:[#allocation2 + $0x60] sm:$0xff] %v3235_v44  ;;  %v1066_v51 = vadd.f32 0.5, %v938_v46  ;;  %v1065_v52 = vadd.f32 0.5, %v937_v47  ;;  %673 = vperm.xlu0 %3501, %v118_v16   ;;  %v254_v15 = vpop.permute.xlu0 %253 }
  0xd8   :  { %v1831_v37 = vmul.f32 %v1703_v45, %v4060_v27  ;;  %v2854_v58 = vmul.f32 %v2726_v48, %v3987_v55  ;;  %v940_v60 = vadd.f32 %v3747_v5, %v808_v50  ;;  %v939_v0 = vadd.f32 %v3747_v5, %v807_v54  ;;  %v269_v45 = vpop.permute.xlu1 %268  ;;  %v4120_v50 = vld [vmem:[%s5381_s1] ss:$0 sm:$0xff] }
  0xd9   :  { %v2597_v59 = vmul.f32 %v2469_v49, %v4015_v17  ;;  %v1960_v38 = vadd.f32 -26.406752, %v1832_v36  ;;  %v1194_v62 = vfloor.f32 %v1066_v51  ;;  %v1193_v63 = vfloor.f32 %v1065_v52 }
  0xda   :  { %v1959_v61 = vadd.f32 -26.406752, %v1831_v37  ;;  %v2982_v2 = vadd.f32 -19.739208, %v2854_v58  ;;  %v1068_v7 = vadd.f32 0.5, %v940_v60  ;;  %v1067_v57 = vadd.f32 0.5, %v939_v0  ;;  %688 = vperm.xlu1 %3502, %v121_v20  }
  0xdb   :  { %v2725_v4 = vadd.f32 64.93939, %v2597_v59  ;;  %v2088_v6 = vmul.f32 %v1960_v38, %v4055_v3  ;;  %v1322_v8 = vsub.f32 %v938_v46, %v1194_v62  ;;  %v1321_v11 = vsub.f32 %v937_v47, %v1193_v63  ;;  %683 = vperm.xlu0 %3501, %v120_v21   ;;  %v123_v62 = vld [vmem:[%s5380_s0 + $0x378] sm:$0xff]  ;;  %v122_v63 = vld [vmem:[%s5380_s0 + $0x370] sm:$0xff] }
  0xdc   :  { %v2087_v56 = vmul.f32 %v1959_v61, %v4060_v27  ;;  %v3110_v12 = vmul.f32 %v2982_v2, %v3987_v55  ;;  %v1196_v18 = vfloor.f32 %v1068_v7  ;;  %v1195_v9 = vfloor.f32 %v1067_v57 }
  0xdd   :  { %v2853_v13 = vmul.f32 %v2725_v4, %v4015_v17  ;;  %v2216_v14 = vadd.f32 60.242462, %v2088_v6  ;;  %v4096_v22 = vmul.f32 %v1322_v8, %v1322_v8  ;;  %v4098_v23 = vmul.f32 %v1321_v11, %v1321_v11 }
  0xde   :  { %v2215_v42 = vadd.f32 60.242462, %v2087_v56  ;;  %v3238_v55 = vadd.f32 1.0, %v3110_v12  ;;  %v1324_v26 = vsub.f32 %v940_v60, %v1196_v18  ;;  %v1323_v31 = vsub.f32 %v939_v0, %v1195_v9  ;;  %698 = vperm.xlu1 %3502, %v123_v62  }
  0xdf   :  { %v2981_v10 = vadd.f32 -19.739208, %v2853_v13  ;;  %v2344_v24 = vmul.f32 %v2216_v14, %v4055_v3  ;;  %v1578_v29 = vmul.f32 -1.4609046, %v4096_v22  ;;  %v1577_v30 = vmul.f32 -1.4609046, %v4098_v23  ;;  %693 = vperm.xlu0 %3501, %v122_v63  }
  0xe0   :  { %v2343_v53 = vmul.f32 %v2215_v42, %v4060_v27  ;;  %3366 = vst [vmem:[#allocation2 + $0x78] sm:$0xff] %v3238_v55  ;;  %v4105_v34 = vmul.f32 %v1324_v26, %v1324_v26  ;;  %v810_v35 = vmul.f32 %v3739_v1, %v259_v19  ;;  %v4108_v41 = vmul.f32 %v1323_v31, %v1323_v31 }
  0xe1   :  { %v3109_v32 = vmul.f32 %v2981_v10, %v4015_v17  ;;  %v2472_v33 = vadd.f32 -85.45669, %v2344_v24  ;;  %v1706_v25 = vadd.f32 7.806575, %v1578_v29  ;;  %v1705_v40 = vadd.f32 7.806575, %v1577_v30  ;;  %v264_v30 = vpop.permute.xlu0 %263 }
  0xe2   :  { %v2471_v39 = vadd.f32 -85.45669, %v2343_v53  ;;  %v1580_v16 = vmul.f32 -1.4609046, %v4105_v34  ;;  %v942_v44 = vadd.f32 %v3747_v5, %v810_v35  ;;  %v1579_v47 = vmul.f32 -1.4609046, %v4108_v41 }
  0xe3   :  { %v3237_v43 = vadd.f32 1.0, %v3109_v32  ;;  %v2600_v28 = vmul.f32 %v2472_v33, %v4055_v3  ;;  %v1834_v46 = vmul.f32 %v1706_v25, %v4096_v22  ;;  %v1833_v1 = vmul.f32 %v1705_v40, %v4098_v23 }
  0xe4   :  { %v2599_v17 = vmul.f32 %v2471_v39, %v4060_v27  ;;  %v1708_v49 = vadd.f32 7.806575, %v1580_v16  ;;  %v1070_v36 = vadd.f32 0.5, %v942_v44  ;;  %v809_v37 = vmul.f32 %v4120_v50, %v254_v15 }
  0xe5   :  { %3365 = vst [vmem:[#allocation2 + $0x70] sm:$0xff] %v3237_v43  ;;  %v2728_v48 = vadd.f32 64.93939, %v2600_v28  ;;  %v1962_v52 = vadd.f32 -26.406752, %v1834_v46  ;;  %v812_v58 = vmul.f32 %v4120_v50, %v269_v45  ;;  %v811_v28 = vmul.f32 %v4120_v50, %v264_v30 }
  0xe6   :  { %v2727_v51 = vadd.f32 64.93939, %v2599_v17  ;;  %v1961_v54 = vadd.f32 -26.406752, %v1833_v1  ;;  %v1836_v38 = vmul.f32 %v1708_v49, %v4105_v34  ;;  %v1707_v60 = vadd.f32 7.806575, %v1579_v47 }
  0xe7   :  { %v2856_v59 = vmul.f32 %v2728_v48, %v4055_v3  ;;  %v1198_v61 = vfloor.f32 %v1070_v36  ;;  %v2090_v2 = vmul.f32 %v1962_v52, %v4096_v22  ;;  %v941_v6 = vadd.f32 %v3747_v5, %v809_v37 }
  0xe8   :  { %v2855_v0 = vmul.f32 %v2727_v51, %v4060_v27  ;;  %v2089_v4 = vmul.f32 %v1961_v54, %v4098_v23  ;;  %v1964_v56 = vadd.f32 -26.406752, %v1836_v38  ;;  %v1835_v8 = vmul.f32 %v1707_v60, %v4108_v41  ;;  %v125_v38 = vld [vmem:[%s5380_s0 + $0x388] sm:$0xff]  ;;  %v124_v60 = vld [vmem:[%s5380_s0 + $0x380] sm:$0xff] }
  0xe9   :  { %v2984_v7 = vadd.f32 -19.739208, %v2856_v59  ;;  %v1326_v11 = vsub.f32 %v942_v44, %v1198_v61  ;;  %v2218_v12 = vadd.f32 60.242462, %v2090_v2  ;;  %v944_v14 = vadd.f32 %v3747_v5, %v812_v58  ;;  %708 = vperm.xlu1 %3502, %v125_v38   ;;  %703 = vperm.xlu0 %3501, %v124_v60  }
  0xea   :  { %v2983_v57 = vadd.f32 -19.739208, %v2855_v0  ;;  %v2217_v13 = vadd.f32 60.242462, %v2089_v4  ;;  %v2092_v19 = vmul.f32 %v1964_v56, %v4105_v34  ;;  %v1963_v20 = vadd.f32 -26.406752, %v1835_v8  ;;  %v279_v56 = vpop.permute.xlu1 %278 }
  0xeb   :  { %v3112_v18 = vmul.f32 %v2984_v7, %v4055_v3  ;;  %v4140_v21 = vmul.f32 %v1326_v11, %v1326_v11  ;;  %v2346_v9 = vmul.f32 %v2218_v12, %v4096_v22  ;;  %v1069_v10 = vadd.f32 0.5, %v941_v6 }
  0xec   :  { %v3111_v42 = vmul.f32 %v2983_v57, %v4060_v27  ;;  %v2345_v55 = vmul.f32 %v2217_v13, %v4098_v23  ;;  %v2220_v26 = vadd.f32 60.242462, %v2092_v19  ;;  %v2091_v53 = vmul.f32 %v1963_v20, %v4108_v41  ;;  %v274_v20 = vpop.permute.xlu0 %273 }
  0xed   :  { %v3240_v24 = vadd.f32 1.0, %v3112_v18  ;;  %v1582_v29 = vmul.f32 -1.4609046, %v4140_v21  ;;  %v2474_v31 = vadd.f32 -85.45669, %v2346_v9  ;;  %v1197_v33 = vfloor.f32 %v1069_v10  ;;  %v126_v9 = vld [vmem:[%s5380_s0 + $0x390] sm:$0xff] }
  0xee   :  { %v3239_v3 = vadd.f32 1.0, %v3111_v42  ;;  %v2473_v32 = vadd.f32 -85.45669, %v2345_v55  ;;  %v2348_v35 = vmul.f32 %v2220_v26, %v4105_v34  ;;  %v2219_v27 = vadd.f32 60.242462, %v2091_v53  ;;  %v127_v42 = vld [vmem:[%s5380_s0 + $0x398] sm:$0xff]  ;;  %713 = vperm.xlu0 %3501, %v126_v9  }
  0xef   :  { %3368 = vst [vmem:[#allocation2 + $0x88] sm:$0xff] %v3240_v24  ;;  %v1710_v39 = vadd.f32 7.806575, %v1582_v29  ;;  %v1072_v25 = vadd.f32 0.5, %v944_v14  ;;  %v2602_v40 = vmul.f32 %v2474_v31, %v4096_v22  ;;  %v1325_v43 = vsub.f32 %v941_v6, %v1197_v33  ;;  %718 = vperm.xlu1 %3502, %v127_v42  }
  0xf0   :  { %3367 = vst [vmem:[#allocation2 + $0x80] sm:$0xff] %v3239_v3  ;;  %v2601_v15 = vmul.f32 %v2473_v32, %v4098_v23  ;;  %v2476_v16 = vadd.f32 -85.45669, %v2348_v35  ;;  %v2347_v44 = vmul.f32 %v2219_v27, %v4108_v41  ;;  %v943_v48 = vadd.f32 %v3747_v5, %v811_v28 }
  0xf1   :  { %v1838_v45 = vmul.f32 %v1710_v39, %v4140_v21  ;;  %v1200_v17 = vfloor.f32 %v1072_v25  ;;  %v2730_v46 = vadd.f32 64.93939, %v2602_v40  ;;  %v4153_v47 = vmul.f32 %v1325_v43, %v1325_v43  ;;  %v289_v25 = vpop.permute.xlu1 %288 }
  0xf2   :  { %v2729_v1 = vadd.f32 64.93939, %v2601_v15  ;;  %v2604_v49 = vmul.f32 %v2476_v16, %v4105_v34  ;;  %v2475_v36 = vadd.f32 -85.45669, %v2347_v44  ;;  %v1071_v59 = vadd.f32 0.5, %v943_v48 }
  0xf3   :  { %v1966_v37 = vadd.f32 -26.406752, %v1838_v45  ;;  %v1328_v51 = vsub.f32 %v944_v14, %v1200_v17  ;;  %v2858_v52 = vmul.f32 %v2730_v46, %v4096_v22  ;;  %v1581_v58 = vmul.f32 -1.4609046, %v4153_v47  ;;  %v284_v17 = vpop.permute.xlu0 %283 }
  0xf4   :  { %v2857_v54 = vmul.f32 %v2729_v1, %v4098_v23  ;;  %v2732_v61 = vadd.f32 64.93939, %v2604_v49  ;;  %v2603_v62 = vmul.f32 %v2475_v36, %v4108_v41  ;;  %v1199_v7 = vfloor.f32 %v1071_v59 }
  0xf5   :  { %v2094_v63 = vmul.f32 %v1966_v37, %v4140_v21  ;;  %v4168_v0 = vmul.f32 %v1328_v51, %v1328_v51  ;;  %v2986_v2 = vadd.f32 -19.739208, %v2858_v52  ;;  %v1709_v6 = vadd.f32 7.806575, %v1581_v58 }
  0xf6   :  { %v2985_v4 = vadd.f32 -19.739208, %v2857_v54  ;;  %v2860_v8 = vmul.f32 %v2732_v61, %v4105_v34  ;;  %v2731_v11 = vadd.f32 64.93939, %v2603_v62  ;;  %v1327_v19 = vsub.f32 %v943_v48, %v1199_v7 }
  0xf7   :  { %v2222_v57 = vadd.f32 60.242462, %v2094_v63  ;;  %v1584_v12 = vmul.f32 -1.4609046, %v4168_v0  ;;  %v3114_v13 = vmul.f32 %v2986_v2, %v4096_v22  ;;  %v1837_v18 = vmul.f32 %v1709_v6, %v4153_v47 }
  0xf8   :  { %v3113_v14 = vmul.f32 %v2985_v4, %v4098_v23  ;;  %v2988_v55 = vadd.f32 -19.739208, %v2860_v8  ;;  %v2859_v10 = vmul.f32 %v2731_v11, %v4108_v41  ;;  %v4183_v29 = vmul.f32 %v1327_v19, %v1327_v19  ;;  %v128_v19 = vld [vmem:[%s5380_s0 + $0x3a0] sm:$0xff] }
  0xf9   :  { %v2350_v24 = vmul.f32 %v2222_v57, %v4140_v21  ;;  %v1712_v22 = vadd.f32 7.806575, %v1584_v12  ;;  %v3242_v23 = vadd.f32 1.0, %v3114_v13  ;;  %v1965_v53 = vadd.f32 -26.406752, %v1837_v18  ;;  %v129_v18 = vld [vmem:[%s5380_s0 + $0x3a8] sm:$0xff]  ;;  %723 = vperm.xlu0 %3501, %v128_v19  }
  0xfa   :  { %v3241_v26 = vadd.f32 1.0, %v3113_v14  ;;  %v3116_v30 = vmul.f32 %v2988_v55, %v4105_v34  ;;  %v2987_v3 = vadd.f32 -19.739208, %v2859_v10  ;;  %v1583_v35 = vmul.f32 -1.4609046, %v4183_v29  ;;  %v299_v10 = vpop.permute.xlu1 %298  ;;  %728 = vperm.xlu1 %3502, %v129_v18  }
  0xfb   :  { %v2478_v31 = vadd.f32 -85.45669, %v2350_v24  ;;  %v1840_v32 = vmul.f32 %v1712_v22, %v4168_v0  ;;  %3370 = vst [vmem:[#allocation2 + $0x98] sm:$0xff] %v3242_v23  ;;  %v2093_v33 = vmul.f32 %v1965_v53, %v4153_v47  ;;  %v814_v27 = vmul.f32 %v4120_v50, %v279_v56 }
  0xfc   :  { %3369 = vst [vmem:[#allocation2 + $0x90] sm:$0xff] %v3241_v26  ;;  %v813_v39 = vmul.f32 %v4120_v50, %v274_v20  ;;  %v3244_v40 = vadd.f32 1.0, %v3116_v30  ;;  %v3115_v15 = vmul.f32 %v2987_v3, %v4108_v41  ;;  %v1711_v16 = vadd.f32 7.806575, %v1583_v35  ;;  %v294_v26 = vpop.permute.xlu0 %293 }
  0xfd   :  { %v2606_v34 = vmul.f32 %v2478_v31, %v4140_v21  ;;  %v1968_v43 = vadd.f32 -26.406752, %v1840_v32  ;;  %v2221_v28 = vadd.f32 60.242462, %v2093_v33  ;;  %v946_v44 = vadd.f32 %v3747_v5, %v814_v27 }
  0xfe   :  { %v945_v45 = vadd.f32 %v3747_v5, %v813_v39  ;;  %3372 = vst [vmem:[#allocation2 + $0xa8] sm:$0xff] %v3244_v40  ;;  %v3243_v46 = vadd.f32 1.0, %v3115_v15  ;;  %v816_v49 = vmul.f32 %v4120_v50, %v289_v25  ;;  %v1839_v41 = vmul.f32 %v1711_v16, %v4183_v29 }
  0xff   :  { %v2734_v1 = vadd.f32 64.93939, %v2606_v34  ;;  %v2096_v48 = vmul.f32 %v1968_v43, %v4168_v0  ;;  %v2349_v36 = vmul.f32 %v2221_v28, %v4153_v47  ;;  %v1074_v37 = vadd.f32 0.5, %v946_v44 }
 0x100   :  { %v1073_v51 = vadd.f32 0.5, %v945_v45  ;;  %3371 = vst [vmem:[#allocation2 + $0xa0] sm:$0xff] %v3243_v46  ;;  %v948_v58 = vadd.f32 %v3747_v5, %v816_v49  ;;  %v815_v59 = vmul.f32 %v4120_v50, %v284_v17  ;;  %v1967_v60 = vadd.f32 -26.406752, %v1839_v41 }
 0x101   :  { %v2862_v52 = vmul.f32 %v2734_v1, %v4140_v21  ;;  %v2224_v54 = vadd.f32 60.242462, %v2096_v48  ;;  %v2477_v38 = vadd.f32 -85.45669, %v2349_v36  ;;  %v1202_v61 = vfloor.f32 %v1074_v37 }
 0x102   :  { %v1201_v62 = vfloor.f32 %v1073_v51  ;;  %v1076_v4 = vadd.f32 0.5, %v948_v58  ;;  %v947_v6 = vadd.f32 %v3747_v5, %v815_v59  ;;  %v2095_v56 = vmul.f32 %v1967_v60, %v4183_v29  ;;  %v130_v60 = vld [vmem:[%s5380_s0 + $0x3b0] sm:$0xff] }
 0x103   :  { %v2990_v63 = vadd.f32 -19.739208, %v2862_v52  ;;  %v2352_v2 = vmul.f32 %v2224_v54, %v4168_v0  ;;  %v2605_v7 = vmul.f32 %v2477_v38, %v4153_v47  ;;  %v1330_v8 = vsub.f32 %v946_v44, %v1202_v61  ;;  %v131_v38 = vld [vmem:[%s5380_s0 + $0x3b8] sm:$0xff]  ;;  %733 = vperm.xlu0 %3501, %v130_v60  }
 0x104   :  { %v1329_v11 = vsub.f32 %v945_v45, %v1201_v62  ;;  %v1204_v13 = vfloor.f32 %v1076_v4  ;;  %v1075_v14 = vadd.f32 0.5, %v947_v6  ;;  %v2223_v42 = vadd.f32 60.242462, %v2095_v56  ;;  %738 = vperm.xlu1 %3502, %v131_v38  }
 0x105   :  { %v3118_v57 = vmul.f32 %v2990_v63, %v4140_v21  ;;  %v2480_v12 = vadd.f32 -85.45669, %v2352_v2  ;;  %v2733_v20 = vadd.f32 64.93939, %v2605_v7  ;;  %v4213_v9 = vmul.f32 %v1330_v8, %v1330_v8  ;;  %v309_v2 = vpop.permute.xlu1 %308 }
 0x106   :  { %v4215_v55 = vmul.f32 %v1329_v11, %v1329_v11  ;;  %v1332_v22 = vsub.f32 %v948_v58, %v1204_v13  ;;  %v1203_v23 = vfloor.f32 %v1075_v14  ;;  %v2351_v30 = vmul.f32 %v2223_v42, %v4183_v29 }
 0x107   :  { %v3246_v21 = vadd.f32 1.0, %v3118_v57  ;;  %v2608_v24 = vmul.f32 %v2480_v12, %v4168_v0  ;;  %v2861_v53 = vmul.f32 %v2733_v20, %v4153_v47  ;;  %v1586_v3 = vmul.f32 -1.4609046, %v4213_v9 }
 0x108   :  { %v1585_v31 = vmul.f32 -1.4609046, %v4215_v55  ;;  %v4222_v33 = vmul.f32 %v1332_v22, %v1332_v22  ;;  %v1331_v35 = vsub.f32 %v947_v6, %v1203_v23  ;;  %v818_v27 = vmul.f32 %v4120_v50, %v299_v10 }
 0x109   :  { %3374 = vst [vmem:[#allocation2 + $0xb8] sm:$0xff] %v3246_v21  ;;  %v2736_v32 = vadd.f32 64.93939, %v2608_v24  ;;  %v2989_v39 = vadd.f32 -19.739208, %v2861_v53  ;;  %v817_v15 = vmul.f32 %v4120_v50, %v294_v26  ;;  %v820_v19 = vmul.f32 %v4120_v50, %v309_v2  ;;  %v304_v53 = vpop.permute.xlu0 %303 }
 0x10a   :  { %v2479_v25 = vadd.f32 -85.45669, %v2351_v30  ;;  %v1714_v40 = vadd.f32 7.806575, %v1586_v3  ;;  %v1713_v43 = vadd.f32 7.806575, %v1585_v31  ;;  %v4228_v16 = vmul.f32 %v1331_v35, %v1331_v35 }
 0x10b   :  { %v2864_v34 = vmul.f32 %v2736_v32, %v4168_v0  ;;  %v1588_v28 = vmul.f32 -1.4609046, %v4222_v33  ;;  %v3117_v44 = vmul.f32 %v2989_v39, %v4153_v47  ;;  %v950_v46 = vadd.f32 %v3747_v5, %v818_v27 }
 0x10c   :  { %v2607_v45 = vmul.f32 %v2479_v25, %v4183_v29  ;;  %v1842_v17 = vmul.f32 %v1714_v40, %v4213_v9  ;;  %v1841_v48 = vmul.f32 %v1713_v43, %v4215_v55  ;;  %v1587_v36 = vmul.f32 -1.4609046, %v4228_v16 }
 0x10d   :  { %v2992_v1 = vadd.f32 -19.739208, %v2864_v34  ;;  %v1716_v49 = vadd.f32 7.806575, %v1588_v28  ;;  %v3245_v41 = vadd.f32 1.0, %v3117_v44  ;;  %v1078_v52 = vadd.f32 0.5, %v950_v46 }
 0x10e   :  { %v2735_v37 = vadd.f32 64.93939, %v2607_v45  ;;  %v1970_v51 = vadd.f32 -26.406752, %v1842_v17  ;;  %v1969_v58 = vadd.f32 -26.406752, %v1841_v48  ;;  %v952_v26 = vadd.f32 %v3747_v5, %v820_v19 }
 0x10f   :  { %v3120_v54 = vmul.f32 %v2992_v1, %v4168_v0  ;;  %v1844_v47 = vmul.f32 %v1716_v49, %v4222_v33  ;;  %v1715_v59 = vadd.f32 7.806575, %v1587_v36  ;;  %3373 = vst [vmem:[#allocation2 + $0xb0] sm:$0xff] %v3245_v41  ;;  %v1206_v63 = vfloor.f32 %v1078_v52  ;;  %v135_v19 = vld [vmem:[%s5380_s0 + $0x3d8] sm:$0xff] }
 0x110   :  { %v2863_v61 = vmul.f32 %v2735_v37, %v4183_v29  ;;  %v2098_v62 = vmul.f32 %v1970_v51, %v4213_v9  ;;  %v949_v0 = vadd.f32 %v3747_v5, %v817_v15  ;;  %v2097_v6 = vmul.f32 %v1969_v58, %v4215_v55 }
 0x111   :  { %v3248_v4 = vadd.f32 1.0, %v3120_v54  ;;  %v1972_v7 = vadd.f32 -26.406752, %v1844_v47  ;;  %v1843_v56 = vmul.f32 %v1715_v59, %v4228_v16  ;;  %v1334_v57 = vsub.f32 %v950_v46, %v1206_v63  ;;  %v133_v47 = vld [vmem:[%s5380_s0 + $0x3c8] sm:$0xff] }
 0x112   :  { %v2991_v8 = vadd.f32 -19.739208, %v2863_v61  ;;  %v2226_v11 = vadd.f32 60.242462, %v2098_v62  ;;  %v1077_v12 = vadd.f32 0.5, %v949_v0  ;;  %v1080_v39 = vadd.f32 0.5, %v952_v26  ;;  %748 = vperm.xlu1 %3502, %v133_v47  }
 0x113   :  { %3376 = vst [vmem:[#allocation2 + $0xc8] sm:$0xff] %v3248_v4  ;;  %v2225_v13 = vadd.f32 60.242462, %v2097_v6  ;;  %v2100_v14 = vmul.f32 %v1972_v7, %v4222_v33  ;;  %v1971_v18 = vadd.f32 -26.406752, %v1843_v56  ;;  %v4253_v10 = vmul.f32 %v1334_v57, %v1334_v57  ;;  %v132_v62 = vld [vmem:[%s5380_s0 + $0x3c0] sm:$0xff]  ;;  %v319_v6 = vpop.permute.xlu1 %318 }
 0x114   :  { %v3119_v20 = vmul.f32 %v2991_v8, %v4183_v29  ;;  %v2354_v42 = vmul.f32 %v2226_v11, %v4213_v9  ;;  %v1205_v21 = vfloor.f32 %v1077_v12  ;;  %v819_v34 = vmul.f32 %v4120_v50, %v304_v53  ;;  %743 = vperm.xlu0 %3501, %v132_v62  }
 0x115   :  { %v2353_v24 = vmul.f32 %v2225_v13, %v4215_v55  ;;  %v2228_v22 = vadd.f32 60.242462, %v2100_v14  ;;  %v2099_v23 = vmul.f32 %v1971_v18, %v4228_v16  ;;  %v1590_v31 = vmul.f32 -1.4609046, %v4253_v10  ;;  %v314_v18 = vpop.permute.xlu0 %313 }
 0x116   :  { %v3247_v30 = vadd.f32 1.0, %v3119_v20  ;;  %v2482_v3 = vadd.f32 -85.45669, %v2354_v42  ;;  %v1333_v32 = vsub.f32 %v949_v0, %v1205_v21  ;;  %v1208_v45 = vfloor.f32 %v1080_v39  ;;  %v134_v20 = vld [vmem:[%s5380_s0 + $0x3d0] sm:$0xff]  ;;  %758 = vperm.xlu1 %3502, %v135_v19  }
 0x117   :  { %v2481_v35 = vadd.f32 -85.45669, %v2353_v24  ;;  %v2356_v29 = vmul.f32 %v2228_v22, %v4222_v33  ;;  %v2227_v27 = vadd.f32 60.242462, %v2099_v23  ;;  %v1718_v40 = vadd.f32 7.806575, %v1590_v31  ;;  %v329_v39 = vpop.permute.xlu1 %328 }
 0x118   :  { %3375 = vst [vmem:[#allocation2 + $0xc0] sm:$0xff] %v3247_v30  ;;  %v2610_v25 = vmul.f32 %v2482_v3, %v4213_v9  ;;  %v4261_v15 = vmul.f32 %v1333_v32, %v1333_v32  ;;  %v951_v48 = vadd.f32 %v3747_v5, %v819_v34  ;;  %v1336_v37 = vsub.f32 %v952_v26, %v1208_v45 }
 0x119   :  { %v2609_v43 = vmul.f32 %v2481_v35, %v4215_v55  ;;  %v2484_v28 = vadd.f32 -85.45669, %v2356_v29  ;;  %v2355_v44 = vmul.f32 %v2227_v27, %v4228_v16  ;;  %v1846_v46 = vmul.f32 %v1718_v40, %v4253_v10  ;;  %753 = vperm.xlu0 %3501, %v134_v20  }
 0x11a   :  { %v2738_v17 = vadd.f32 64.93939, %v2610_v25  ;;  %v1589_v1 = vmul.f32 -1.4609046, %v4261_v15  ;;  %v1079_v58 = vadd.f32 0.5, %v951_v48  ;;  %v4276_v61 = vmul.f32 %v1336_v37, %v1336_v37 }
 0x11b   :  { %v2737_v49 = vadd.f32 64.93939, %v2609_v43  ;;  %v2612_v36 = vmul.f32 %v2484_v28, %v4222_v33  ;;  %v2483_v41 = vadd.f32 -85.45669, %v2355_v44  ;;  %v1974_v52 = vadd.f32 -26.406752, %v1846_v46 }
 0x11c   :  { %v2866_v51 = vmul.f32 %v2738_v17, %v4213_v9  ;;  %v1717_v54 = vadd.f32 7.806575, %v1589_v1  ;;  %v1207_v4 = vfloor.f32 %v1079_v58  ;;  %v1592_v11 = vmul.f32 -1.4609046, %v4276_v61  ;;  %v324_v17 = vpop.permute.xlu0 %323 }
 0x11d   :  { %v2865_v59 = vmul.f32 %v2737_v49, %v4215_v55  ;;  %v2740_v38 = vadd.f32 64.93939, %v2612_v36  ;;  %v2611_v60 = vmul.f32 %v2483_v41, %v4228_v16  ;;  %v2102_v0 = vmul.f32 %v1974_v52, %v4253_v10 }
 0x11e   :  { %v2994_v63 = vadd.f32 -19.739208, %v2866_v51  ;;  %v1845_v2 = vmul.f32 %v1717_v54, %v4261_v15  ;;  %v1335_v14 = vsub.f32 %v951_v48, %v1207_v4  ;;  %v1720_v22 = vadd.f32 7.806575, %v1592_v11 }
 0x11f   :  { %v2993_v7 = vadd.f32 -19.739208, %v2865_v59  ;;  %v2868_v56 = vmul.f32 %v2740_v38, %v4222_v33  ;;  %v2739_v8 = vadd.f32 64.93939, %v2611_v60  ;;  %v2230_v12 = vadd.f32 60.242462, %v2102_v0 }
 0x120   :  { %v3122_v57 = vmul.f32 %v2994_v63, %v4213_v9  ;;  %v1973_v13 = vadd.f32 -26.406752, %v1845_v2  ;;  %v4296_v53 = vmul.f32 %v1335_v14, %v1335_v14  ;;  %v1848_v32 = vmul.f32 %v1720_v22, %v4276_v61  ;;  %v136_v14 = vld [vmem:[%s5380_s0 + $0x3e0] sm:$0xff] }
 0x121   :  { %v3121_v42 = vmul.f32 %v2993_v7, %v4215_v55  ;;  %v2996_v21 = vadd.f32 -19.739208, %v2868_v56  ;;  %v2867_v24 = vmul.f32 %v2739_v8, %v4228_v16  ;;  %v2358_v23 = vmul.f32 %v2230_v12, %v4253_v10  ;;  %763 = vperm.xlu0 %3501, %v136_v14  }
 0x122   :  { %v3250_v9 = vadd.f32 1.0, %v3122_v57  ;;  %v2101_v26 = vmul.f32 %v1973_v13, %v4261_v15  ;;  %v1591_v29 = vmul.f32 -1.4609046, %v4296_v53  ;;  %v822_v27 = vmul.f32 %v4120_v50, %v319_v6  ;;  %v137_v13 = vld [vmem:[%s5380_s0 + $0x3e8] sm:$0xff] }
 0x123   :  { %v3249_v30 = vadd.f32 1.0, %v3121_v42  ;;  %v3124_v3 = vmul.f32 %v2996_v21, %v4222_v33  ;;  %v2995_v31 = vadd.f32 -19.739208, %v2867_v24  ;;  %v2486_v55 = vadd.f32 -85.45669, %v2358_v23  ;;  %768 = vperm.xlu1 %3502, %v137_v13   ;;  %v339_v23 = vpop.permute.xlu1 %338 }
 0x124   :  { %3378 = vst [vmem:[#allocation2 + $0xd8] sm:$0xff] %v3250_v9  ;;  %v2229_v35 = vadd.f32 60.242462, %v2101_v26  ;;  %v1976_v34 = vadd.f32 -26.406752, %v1848_v32  ;;  %v821_v43 = vmul.f32 %v4120_v50, %v314_v18  ;;  %v954_v45 = vadd.f32 %v3747_v5, %v822_v27 }
 0x125   :  { %3377 = vst [vmem:[#allocation2 + $0xd0] sm:$0xff] %v3249_v30  ;;  %v3252_v25 = vadd.f32 1.0, %v3124_v3  ;;  %v3123_v40 = vmul.f32 %v2995_v31, %v4228_v16  ;;  %v2614_v33 = vmul.f32 %v2486_v55, %v4253_v10  ;;  %v1719_v44 = vadd.f32 7.806575, %v1591_v29 }
 0x126   :  { %v2357_v28 = vmul.f32 %v2229_v35, %v4261_v15  ;;  %v2104_v1 = vmul.f32 %v1976_v34, %v4276_v61  ;;  %v953_v48 = vadd.f32 %v3747_v5, %v821_v43  ;;  %v824_v49 = vmul.f32 %v4120_v50, %v329_v39 }
 0x127   :  { %3380 = vst [vmem:[#allocation2 + $0xe8] sm:$0xff] %v3252_v25  ;;  %v3251_v46 = vadd.f32 1.0, %v3123_v40  ;;  %v2742_v16 = vadd.f32 64.93939, %v2614_v33  ;;  %v1847_v41 = vmul.f32 %v1719_v44, %v4296_v53  ;;  %v1082_v37 = vadd.f32 0.5, %v954_v45 }
 0x128   :  { %v2485_v36 = vadd.f32 -85.45669, %v2357_v28  ;;  %v2232_v51 = vadd.f32 60.242462, %v2104_v1  ;;  %v1081_v52 = vadd.f32 0.5, %v953_v48  ;;  %v956_v54 = vadd.f32 %v3747_v5, %v824_v49  ;;  %v334_v28 = vpop.permute.xlu0 %333 }
 0x129   :  { %3379 = vst [vmem:[#allocation2 + $0xe0] sm:$0xff] %v3251_v46  ;;  %v823_v58 = vmul.f32 %v4120_v50, %v324_v17  ;;  %v2870_v47 = vmul.f32 %v2742_v16, %v4253_v10  ;;  %v1975_v38 = vadd.f32 -26.406752, %v1847_v41  ;;  %v1210_v60 = vfloor.f32 %v1082_v37 }
 0x12a   :  { %v2613_v59 = vmul.f32 %v2485_v36, %v4261_v15  ;;  %v2360_v62 = vmul.f32 %v2232_v51, %v4276_v61  ;;  %v1209_v63 = vfloor.f32 %v1081_v52  ;;  %v1084_v0 = vadd.f32 0.5, %v956_v54 }
 0x12b   :  { %v955_v2 = vadd.f32 %v3747_v5, %v823_v58  ;;  %v2998_v4 = vadd.f32 -19.739208, %v2870_v47  ;;  %v2103_v7 = vmul.f32 %v1975_v38, %v4296_v53  ;;  %v1338_v56 = vsub.f32 %v954_v45, %v1210_v60  ;;  %v139_v47 = vld [vmem:[%s5380_s0 + $0x3f8] sm:$0xff] }
 0x12c   :  { %v2741_v6 = vadd.f32 64.93939, %v2613_v59  ;;  %v2488_v8 = vadd.f32 -85.45669, %v2360_v62  ;;  %v1337_v11 = vsub.f32 %v953_v48, %v1209_v63  ;;  %v1212_v57 = vfloor.f32 %v1084_v0  ;;  %v138_v59 = vld [vmem:[%s5380_s0 + $0x3f0] sm:$0xff]  ;;  %778 = vperm.xlu1 %3502, %v139_v47  }
 0x12d   :  { %v1083_v12 = vadd.f32 0.5, %v955_v2  ;;  %v3126_v18 = vmul.f32 %v2998_v4, %v4253_v10  ;;  %v2231_v20 = vadd.f32 60.242462, %v2103_v7  ;;  %v4326_v42 = vmul.f32 %v1338_v56, %v1338_v56  ;;  %773 = vperm.xlu0 %3501, %v138_v59  }
 0x12e   :  { %v2869_v19 = vmul.f32 %v2741_v6, %v4261_v15  ;;  %v2616_v21 = vmul.f32 %v2488_v8, %v4276_v61  ;;  %v4329_v24 = vmul.f32 %v1337_v11, %v1337_v11  ;;  %v1340_v22 = vsub.f32 %v956_v54, %v1212_v57 }
 0x12f   :  { %v1211_v9 = vfloor.f32 %v1083_v12  ;;  %v3254_v26 = vadd.f32 1.0, %v3126_v18  ;;  %v2359_v3 = vmul.f32 %v2231_v20, %v4296_v53  ;;  %v1594_v10 = vmul.f32 -1.4609046, %v4326_v42 }
 0x130   :  { %v2997_v30 = vadd.f32 -19.739208, %v2869_v19  ;;  %v2744_v31 = vadd.f32 64.93939, %v2616_v21  ;;  %v1593_v32 = vmul.f32 -1.4609046, %v4329_v24  ;;  %v4334_v55 = vmul.f32 %v1340_v22, %v1340_v22 }
 0x131   :  { %v1339_v35 = vsub.f32 %v955_v2, %v1211_v9  ;;  %3382 = vst [vmem:[#allocation2 + $0xf8] sm:$0xff] %v3254_v26  ;;  %v2487_v27 = vadd.f32 -85.45669, %v2359_v3  ;;  %v1722_v39 = vadd.f32 7.806575, %v1594_v10  ;;  %v826_v25 = vmul.f32 %v4120_v50, %v339_v23 }
 0x132   :  { %v3125_v29 = vmul.f32 %v2997_v30, %v4261_v15  ;;  %v2872_v40 = vmul.f32 %v2744_v31, %v4276_v61  ;;  %v1721_v34 = vadd.f32 7.806575, %v1593_v32  ;;  %v1596_v43 = vmul.f32 -1.4609046, %v4334_v55  ;;  %v344_v30 = vpop.permute.xlu0 %343 }
 0x133   :  { %v4340_v33 = vmul.f32 %v1339_v35, %v1339_v35  ;;  %v2615_v45 = vmul.f32 %v2487_v27, %v4296_v53  ;;  %v1850_v17 = vmul.f32 %v1722_v39, %v4326_v42  ;;  %v958_v46 = vadd.f32 %v3747_v5, %v826_v25 }
 0x134   :  { %v3253_v44 = vadd.f32 1.0, %v3125_v29  ;;  %v3000_v15 = vadd.f32 -19.739208, %v2872_v40  ;;  %v1849_v1 = vmul.f32 %v1721_v34, %v4329_v24  ;;  %v1724_v48 = vadd.f32 7.806575, %v1596_v43 }
 0x135   :  { %v1595_v49 = vmul.f32 -1.4609046, %v4340_v33  ;;  %v2743_v16 = vadd.f32 64.93939, %v2615_v45  ;;  %v1978_v36 = vadd.f32 -26.406752, %v1850_v17  ;;  %v825_v37 = vmul.f32 %v4120_v50, %v334_v28 }
 0x136   :  { %3381 = vst [vmem:[#allocation2 + $0xf0] sm:$0xff] %v3253_v44  ;;  %v1086_v41 = vadd.f32 0.5, %v958_v46  ;;  %v3128_v51 = vmul.f32 %v3000_v15, %v4276_v61  ;;  %v1977_v52 = vadd.f32 -26.406752, %v1849_v1  ;;  %v1852_v54 = vmul.f32 %v1724_v48, %v4334_v55  ;;  %v349_v61 = vpop.permute.xlu1 %348 }
 0x137   :  { %v1723_v58 = vadd.f32 7.806575, %v1595_v49  ;;  %v2871_v38 = vmul.f32 %v2743_v16, %v4296_v53  ;;  %v2106_v60 = vmul.f32 %v1978_v36, %v4326_v42  ;;  %v957_v63 = vadd.f32 %v3747_v5, %v825_v37 }
 0x138   :  { %v1214_v62 = vfloor.f32 %v1086_v41  ;;  %v3256_v0 = vadd.f32 1.0, %v3128_v51  ;;  %v2105_v2 = vmul.f32 %v1977_v52, %v4329_v24  ;;  %v1980_v4 = vadd.f32 -26.406752, %v1852_v54 }
 0x139   :  { %v1851_v6 = vmul.f32 %v1723_v58, %v4340_v33  ;;  %v2999_v7 = vadd.f32 -19.739208, %v2871_v38  ;;  %v2234_v56 = vadd.f32 60.242462, %v2106_v60  ;;  %v1085_v11 = vadd.f32 0.5, %v957_v63 }
 0x13a   :  { %v1342_v8 = vsub.f32 %v958_v46, %v1214_v62  ;;  %3384 = vst [vmem:[#allocation2 + $0x108] sm:$0xff] %v3256_v0  ;;  %v2233_v57 = vadd.f32 60.242462, %v2105_v2  ;;  %v2108_v12 = vmul.f32 %v1980_v4, %v4334_v55  ;;  %v828_v14 = vmul.f32 %v4120_v50, %v349_v61  ;;  %v359_v61 = vpop.permute.xlu1 %358 }
 0x13b   :  { %v1979_v13 = vadd.f32 -26.406752, %v1851_v6  ;;  %v3127_v18 = vmul.f32 %v2999_v7, %v4296_v53  ;;  %v2362_v19 = vmul.f32 %v2234_v56, %v4326_v42  ;;  %v1213_v21 = vfloor.f32 %v1085_v11 }
 0x13c   :  { %v4365_v20 = vmul.f32 %v1342_v8, %v1342_v8  ;;  %v2361_v22 = vmul.f32 %v2233_v57, %v4329_v24  ;;  %v2236_v9 = vadd.f32 60.242462, %v2108_v12  ;;  %v960_v26 = vadd.f32 %v3747_v5, %v828_v14  ;;  %v354_v57 = vpop.permute.xlu0 %353 }
 0x13d   :  { %v2107_v23 = vmul.f32 %v1979_v13, %v4340_v33  ;;  %v3255_v3 = vadd.f32 1.0, %v3127_v18  ;;  %v2490_v10 = vadd.f32 -85.45669, %v2362_v19  ;;  %v1341_v32 = vsub.f32 %v957_v63, %v1213_v21 }
 0x13e   :  { %v1598_v31 = vmul.f32 -1.4609046, %v4365_v20  ;;  %v2489_v35 = vadd.f32 -85.45669, %v2361_v22  ;;  %v2364_v53 = vmul.f32 %v2236_v9, %v4334_v55  ;;  %v1088_v27 = vadd.f32 0.5, %v960_v26 }
 0x13f   :  { %v2235_v29 = vadd.f32 60.242462, %v2107_v23  ;;  %3383 = vst [vmem:[#allocation2 + $0x100] sm:$0xff] %v3255_v3  ;;  %v2618_v39 = vmul.f32 %v2490_v10, %v4326_v42  ;;  %v4373_v40 = vmul.f32 %v1341_v32, %v1341_v32  ;;  %v827_v34 = vmul.f32 %v4120_v50, %v344_v30  ;;  %v369_v32 = vpop.permute.xlu1 %368 }
 0x140   :  { %v1726_v25 = vadd.f32 7.806575, %v1598_v31  ;;  %v2617_v43 = vmul.f32 %v2489_v35, %v4329_v24  ;;  %v2492_v28 = vadd.f32 -85.45669, %v2364_v53  ;;  %v1216_v45 = vfloor.f32 %v1088_v27 }
 0x141   :  { %v2363_v44 = vmul.f32 %v2235_v29, %v4340_v33  ;;  %v2746_v17 = vadd.f32 64.93939, %v2618_v39  ;;  %v1597_v15 = vmul.f32 -1.4609046, %v4373_v40  ;;  %v959_v1 = vadd.f32 %v3747_v5, %v827_v34 }
 0x142   :  { %v1854_v46 = vmul.f32 %v1726_v25, %v4365_v20  ;;  %v2745_v48 = vadd.f32 64.93939, %v2617_v43  ;;  %v2620_v49 = vmul.f32 %v2492_v28, %v4334_v55  ;;  %v1344_v36 = vsub.f32 %v960_v26, %v1216_v45  ;;  %v364_v43 = vpop.permute.xlu0 %363 }
 0x143   :  { %v2491_v16 = vadd.f32 -85.45669, %v2363_v44  ;;  %v2874_v41 = vmul.f32 %v2746_v17, %v4326_v42  ;;  %v1725_v51 = vadd.f32 7.806575, %v1597_v15  ;;  %v1087_v52 = vadd.f32 0.5, %v959_v1 }
 0x144   :  { %v1982_v37 = vadd.f32 -26.406752, %v1854_v46  ;;  %v2873_v54 = vmul.f32 %v2745_v48, %v4329_v24  ;;  %v2748_v58 = vadd.f32 64.93939, %v2620_v49  ;;  %v4385_v59 = vmul.f32 %v1344_v36, %v1344_v36 }
 0x145   :  { %v2619_v47 = vmul.f32 %v2491_v16, %v4340_v33  ;;  %v3002_v38 = vadd.f32 -19.739208, %v2874_v41  ;;  %v1853_v62 = vmul.f32 %v1725_v51, %v4373_v40  ;;  %v1215_v63 = vfloor.f32 %v1087_v52 }
 0x146   :  { %v2110_v60 = vmul.f32 %v1982_v37, %v4365_v20  ;;  %v3001_v0 = vadd.f32 -19.739208, %v2873_v54  ;;  %v2876_v2 = vmul.f32 %v2748_v58, %v4334_v55  ;;  %v1600_v6 = vmul.f32 -1.4609046, %v4385_v59 }
 0x147   :  { %v2747_v4 = vadd.f32 64.93939, %v2619_v47  ;;  %v3130_v7 = vmul.f32 %v3002_v38, %v4326_v42  ;;  %v1981_v8 = vadd.f32 -26.406752, %v1853_v62  ;;  %v1343_v11 = vsub.f32 %v959_v1, %v1215_v63 }
 0x148   :  { %v2238_v56 = vadd.f32 60.242462, %v2110_v60  ;;  %v3129_v12 = vmul.f32 %v3001_v0, %v4329_v24  ;;  %v3004_v13 = vadd.f32 -19.739208, %v2876_v2  ;;  %v1728_v18 = vadd.f32 7.806575, %v1600_v6 }
 0x149   :  { %v2875_v14 = vmul.f32 %v2747_v4, %v4340_v33  ;;  %v3258_v19 = vadd.f32 1.0, %v3130_v7  ;;  %v2109_v22 = vmul.f32 %v1981_v8, %v4373_v40  ;;  %v4396_v9 = vmul.f32 %v1343_v11, %v1343_v11 }
 0x14a   :  { %v2366_v21 = vmul.f32 %v2238_v56, %v4365_v20  ;;  %v3257_v23 = vadd.f32 1.0, %v3129_v12  ;;  %v3132_v42 = vmul.f32 %v3004_v13, %v4334_v55  ;;  %v1856_v30 = vmul.f32 %v1728_v18, %v4385_v59 }
 0x14b   :  { %v3003_v26 = vadd.f32 -19.739208, %v2875_v14  ;;  %3386 = vst [vmem:[#allocation2 + $0x118] sm:$0xff] %v3258_v19  ;;  %v2237_v24 = vadd.f32 60.242462, %v2109_v22  ;;  %v830_v31 = vmul.f32 %v4120_v50, %v359_v61  ;;  %v829_v27 = vmul.f32 %v4120_v50, %v354_v57  ;;  %v379_v14 = vpop.permute.xlu1 %378 }
 0x14c   :  { %v2494_v3 = vadd.f32 -85.45669, %v2366_v21  ;;  %v1599_v10 = vmul.f32 -1.4609046, %v4396_v9  ;;  %3385 = vst [vmem:[#allocation2 + $0x110] sm:$0xff] %v3257_v23  ;;  %v3260_v35 = vadd.f32 1.0, %v3132_v42  ;;  %v832_v17 = vmul.f32 %v4120_v50, %v369_v32 }
 0x14d   :  { %v3131_v53 = vmul.f32 %v3003_v26, %v4340_v33  ;;  %v1984_v29 = vadd.f32 -26.406752, %v1856_v30  ;;  %v2365_v39 = vmul.f32 %v2237_v24, %v4373_v40  ;;  %v962_v34 = vadd.f32 %v3747_v5, %v830_v31 }
 0x14e   :  { %v2622_v55 = vmul.f32 %v2494_v3, %v4365_v20  ;;  %v1727_v25 = vadd.f32 7.806575, %v1599_v10  ;;  %3388 = vst [vmem:[#allocation2 + $0x128] sm:$0xff] %v3260_v35  ;;  %v961_v45 = vadd.f32 %v3747_v5, %v829_v27  ;;  %v964_v16 = vadd.f32 %v3747_v5, %v832_v17  ;;  %v4434_v10 = vld [vmem:[%s5381_s1] ss:$0 sm:$0xff]  ;;  %v374_v27 = vpop.permute.xlu0 %373 }
 0x14f   :  { %v3259_v28 = vadd.f32 1.0, %v3131_v53  ;;  %v2112_v44 = vmul.f32 %v1984_v29, %v4385_v59  ;;  %v2493_v46 = vadd.f32 -85.45669, %v2365_v39  ;;  %v1090_v1 = vadd.f32 0.5, %v962_v34 }
 0x150   :  { %v2750_v33 = vadd.f32 64.93939, %v2622_v55  ;;  %v1855_v15 = vmul.f32 %v1727_v25, %v4396_v9  ;;  %v1089_v49 = vadd.f32 0.5, %v961_v45  ;;  %v831_v36 = vmul.f32 %v4120_v50, %v364_v43 }
 0x151   :  { %3387 = vst [vmem:[#allocation2 + $0x120] sm:$0xff] %v3259_v28  ;;  %v2240_v48 = vadd.f32 60.242462, %v2112_v44  ;;  %v2621_v37 = vmul.f32 %v2493_v46, %v4373_v40  ;;  %v1218_v52 = vfloor.f32 %v1090_v1  ;;  %v1092_v47 = vadd.f32 0.5, %v964_v16 }
 0x152   :  { %v2878_v41 = vmul.f32 %v2750_v33, %v4365_v20  ;;  %v1983_v51 = vadd.f32 -26.406752, %v1855_v15  ;;  %v1217_v58 = vfloor.f32 %v1089_v49  ;;  %v963_v38 = vadd.f32 %v3747_v5, %v831_v36 }
 0x153   :  { %v2368_v54 = vmul.f32 %v2240_v48, %v4385_v59  ;;  %v2749_v62 = vadd.f32 64.93939, %v2621_v37  ;;  %v1346_v61 = vsub.f32 %v962_v34, %v1218_v52  ;;  %v1220_v50 = vfloor.f32 %v1092_v47 }
 0x154   :  { %v3006_v60 = vadd.f32 -19.739208, %v2878_v41  ;;  %v2111_v63 = vmul.f32 %v1983_v51, %v4396_v9  ;;  %v1345_v2 = vsub.f32 %v961_v45, %v1217_v58  ;;  %v1091_v4 = vadd.f32 0.5, %v963_v38  ;;  %v389_v51 = vpop.permute.xlu1 %388 }
 0x155   :  { %v2496_v0 = vadd.f32 -85.45669, %v2368_v54  ;;  %v2877_v7 = vmul.f32 %v2749_v62, %v4373_v40  ;;  %v4420_v8 = vmul.f32 %v1346_v61, %v1346_v61  ;;  %v1348_v12 = vsub.f32 %v964_v16, %v1220_v50 }
 0x156   :  { %v3134_v6 = vmul.f32 %v3006_v60, %v4365_v20  ;;  %v2239_v56 = vadd.f32 60.242462, %v2111_v63  ;;  %v4423_v57 = vmul.f32 %v1345_v2, %v1345_v2  ;;  %v1219_v13 = vfloor.f32 %v1091_v4 }
 0x157   :  { %v2624_v11 = vmul.f32 %v2496_v0, %v4385_v59  ;;  %v3005_v19 = vadd.f32 -19.739208, %v2877_v7  ;;  %v1602_v22 = vmul.f32 -1.4609046, %v4420_v8  ;;  %v4428_v42 = vmul.f32 %v1348_v12, %v1348_v12 }
 0x158   :  { %v3262_v18 = vadd.f32 1.0, %v3134_v6  ;;  %v2367_v21 = vmul.f32 %v2239_v56, %v4396_v9  ;;  %v1601_v20 = vmul.f32 -1.4609046, %v4423_v57  ;;  %v1347_v26 = vsub.f32 %v963_v38, %v1219_v13 }
 0x159   :  { %v2752_v23 = vadd.f32 64.93939, %v2624_v11  ;;  %v3133_v30 = vmul.f32 %v3005_v19, %v4373_v40  ;;  %v1730_v24 = vadd.f32 7.806575, %v1602_v22  ;;  %v834_v31 = vmul.f32 %v4434_v10, %v379_v14  ;;  %v384_v14 = vpop.permute.xlu0 %383 }
 0x15a   :  { %3390 = vst [vmem:[#allocation2 + $0x138] sm:$0xff] %v3262_v18  ;;  %v2495_v3 = vadd.f32 -85.45669, %v2367_v21  ;;  %v1729_v35 = vadd.f32 7.806575, %v1601_v20  ;;  %v4439_v29 = vmul.f32 %v1347_v26, %v1347_v26  ;;  %v833_v46 = vmul.f32 %v4434_v10, %v374_v27 }
 0x15b   :  { %v2880_v32 = vmul.f32 %v2752_v23, %v4385_v59  ;;  %v1604_v53 = vmul.f32 -1.4609046, %v4428_v42  ;;  %v3261_v55 = vadd.f32 1.0, %v3133_v30  ;;  %v1858_v39 = vmul.f32 %v1730_v24, %v4420_v8 }
 0x15c   :  { %v2623_v40 = vmul.f32 %v2495_v3, %v4396_v9  ;;  %v966_v25 = vadd.f32 %v3747_v5, %v834_v31  ;;  %v1857_v43 = vmul.f32 %v1729_v35, %v4423_v57  ;;  %v1603_v44 = vmul.f32 -1.4609046, %v4439_v29 }
 0x15d   :  { %v3008_v34 = vadd.f32 -19.739208, %v2880_v32  ;;  %v1732_v28 = vadd.f32 7.806575, %v1604_v53  ;;  %3389 = vst [vmem:[#allocation2 + $0x130] sm:$0xff] %v3261_v55  ;;  %v965_v37 = vadd.f32 %v3747_v5, %v833_v46  ;;  %v836_v2 = vmul.f32 %v4434_v10, %v389_v51  ;;  %v399_v51 = vpop.permute.xlu1 %398 }
 0x15e   :  { %v2751_v45 = vadd.f32 64.93939, %v2623_v40  ;;  %v1986_v17 = vadd.f32 -26.406752, %v1858_v39  ;;  %v1094_v33 = vadd.f32 0.5, %v966_v25  ;;  %v835_v31 = vmul.f32 %v4434_v10, %v384_v14 }
 0x15f   :  { %v3136_v15 = vmul.f32 %v3008_v34, %v4385_v59  ;;  %v1985_v1 = vadd.f32 -26.406752, %v1857_v43  ;;  %v1860_v48 = vmul.f32 %v1732_v28, %v4428_v42  ;;  %v1731_v49 = vadd.f32 7.806575, %v1603_v44 }
 0x160   :  { %v2879_v16 = vmul.f32 %v2751_v45, %v4396_v9  ;;  %v2114_v36 = vmul.f32 %v1986_v17, %v4420_v8  ;;  %v1222_v41 = vfloor.f32 %v1094_v33  ;;  %v1093_v62 = vadd.f32 0.5, %v965_v37 }
 0x161   :  { %v3264_v52 = vadd.f32 1.0, %v3136_v15  ;;  %v2113_v54 = vmul.f32 %v1985_v1, %v4423_v57  ;;  %v1988_v58 = vadd.f32 -26.406752, %v1860_v48  ;;  %v1859_v47 = vmul.f32 %v1731_v49, %v4439_v29 }
 0x162   :  { %v3007_v38 = vadd.f32 -19.739208, %v2879_v16  ;;  %v2242_v59 = vadd.f32 60.242462, %v2114_v36  ;;  %v1350_v60 = vsub.f32 %v966_v25, %v1222_v41  ;;  %v1221_v7 = vfloor.f32 %v1093_v62 }
 0x163   :  { %3392 = vst [vmem:[#allocation2 + $0x148] sm:$0xff] %v3264_v52  ;;  %v2241_v63 = vadd.f32 60.242462, %v2113_v54  ;;  %v2116_v61 = vmul.f32 %v1988_v58, %v4428_v42  ;;  %v1987_v0 = vadd.f32 -26.406752, %v1859_v47  ;;  %v968_v13 = vadd.f32 %v3747_v5, %v836_v2 }
 0x164   :  { %v3135_v50 = vmul.f32 %v3007_v38, %v4396_v9  ;;  %v2370_v4 = vmul.f32 %v2242_v59, %v4420_v8  ;;  %v4458_v6 = vmul.f32 %v1350_v60, %v1350_v60  ;;  %v1349_v22 = vsub.f32 %v965_v37, %v1221_v7 }
 0x165   :  { %v2369_v56 = vmul.f32 %v2241_v63, %v4423_v57  ;;  %v2244_v11 = vadd.f32 60.242462, %v2116_v61  ;;  %v2115_v12 = vmul.f32 %v1987_v0, %v4439_v29  ;;  %v1096_v26 = vadd.f32 0.5, %v968_v13  ;;  %v394_v63 = vpop.permute.xlu0 %393 }
 0x166   :  { %v3263_v18 = vadd.f32 1.0, %v3135_v50  ;;  %v2498_v19 = vadd.f32 -85.45669, %v2370_v4  ;;  %v1606_v21 = vmul.f32 -1.4609046, %v4458_v6  ;;  %v4466_v24 = vmul.f32 %v1349_v22, %v1349_v22  ;;  %v409_v22 = vpop.permute.xlu1 %408 }
 0x167   :  { %v2497_v23 = vadd.f32 -85.45669, %v2369_v56  ;;  %v2372_v9 = vmul.f32 %v2244_v11, %v4428_v42  ;;  %v2243_v20 = vadd.f32 60.242462, %v2115_v12  ;;  %v1224_v27 = vfloor.f32 %v1096_v26 }
 0x168   :  { %3391 = vst [vmem:[#allocation2 + $0x140] sm:$0xff] %v3263_v18  ;;  %v2626_v30 = vmul.f32 %v2498_v19, %v4420_v8  ;;  %v1734_v3 = vadd.f32 7.806575, %v1606_v21  ;;  %v1605_v39 = vmul.f32 -1.4609046, %v4466_v24  ;;  %v967_v25 = vadd.f32 %v3747_v5, %v835_v31 }
 0x169   :  { %v2625_v32 = vmul.f32 %v2497_v23, %v4423_v57  ;;  %v2500_v35 = vadd.f32 -85.45669, %v2372_v9  ;;  %v2371_v53 = vmul.f32 %v2243_v20, %v4439_v29  ;;  %v1352_v44 = vsub.f32 %v968_v13, %v1224_v27 }
 0x16a   :  { %v2754_v55 = vadd.f32 64.93939, %v2626_v30  ;;  %v1862_v40 = vmul.f32 %v1734_v3, %v4458_v6  ;;  %v1733_v33 = vadd.f32 7.806575, %v1605_v39  ;;  %v1095_v46 = vadd.f32 0.5, %v967_v25 }
 0x16b   :  { %v2753_v34 = vadd.f32 64.93939, %v2625_v32  ;;  %v2628_v43 = vmul.f32 %v2500_v35, %v4428_v42  ;;  %v2499_v28 = vadd.f32 -85.45669, %v2371_v53  ;;  %v4478_v49 = vmul.f32 %v1352_v44, %v1352_v44  ;;  %v404_v32 = vpop.permute.xlu0 %403 }
 0x16c   :  { %v2882_v45 = vmul.f32 %v2754_v55, %v4420_v8  ;;  %v1990_v17 = vadd.f32 -26.406752, %v1862_v40  ;;  %v1861_v41 = vmul.f32 %v1733_v33, %v4466_v24  ;;  %v1223_v37 = vfloor.f32 %v1095_v46 }
 0x16d   :  { %v2881_v15 = vmul.f32 %v2753_v34, %v4423_v57  ;;  %v2756_v1 = vadd.f32 64.93939, %v2628_v43  ;;  %v2627_v48 = vmul.f32 %v2499_v28, %v4439_v29  ;;  %v1608_v47 = vmul.f32 -1.4609046, %v4478_v49 }
 0x16e   :  { %v3010_v16 = vadd.f32 -19.739208, %v2882_v45  ;;  %v2118_v36 = vmul.f32 %v1990_v17, %v4458_v6  ;;  %v1989_v60 = vadd.f32 -26.406752, %v1861_v41  ;;  %v1351_v62 = vsub.f32 %v967_v25, %v1223_v37 }
 0x16f   :  { %v3009_v52 = vadd.f32 -19.739208, %v2881_v15  ;;  %v2884_v54 = vmul.f32 %v2756_v1, %v4428_v42  ;;  %v2755_v58 = vadd.f32 64.93939, %v2627_v48  ;;  %v1736_v50 = vadd.f32 7.806575, %v1608_v47 }
 0x170   :  { %v3138_v38 = vmul.f32 %v3010_v16, %v4420_v8  ;;  %v2246_v59 = vadd.f32 60.242462, %v2118_v36  ;;  %v2117_v56 = vmul.f32 %v1989_v60, %v4466_v24  ;;  %v4489_v11 = vmul.f32 %v1351_v62, %v1351_v62 }
 0x171   :  { %v3137_v61 = vmul.f32 %v3009_v52, %v4423_v57  ;;  %v3012_v0 = vadd.f32 -19.739208, %v2884_v54  ;;  %v2883_v2 = vmul.f32 %v2755_v58, %v4439_v29  ;;  %v1864_v14 = vmul.f32 %v1736_v50, %v4478_v49  ;;  %v419_v50 = vpop.permute.xlu1 %418 }
 0x172   :  { %v3266_v4 = vadd.f32 1.0, %v3138_v38  ;;  %v2374_v7 = vmul.f32 %v2246_v59, %v4458_v6  ;;  %v2245_v57 = vadd.f32 60.242462, %v2117_v56  ;;  %v1607_v19 = vmul.f32 -1.4609046, %v4489_v11 }
 0x173   :  { %v3265_v12 = vadd.f32 1.0, %v3137_v61  ;;  %v3140_v8 = vmul.f32 %v3012_v0, %v4428_v42  ;;  %v3011_v13 = vadd.f32 -19.739208, %v2883_v2  ;;  %v838_v21 = vmul.f32 %v4434_v10, %v399_v51 }
 0x174   :  { %3394 = vst [vmem:[#allocation2 + $0x158] sm:$0xff] %v3266_v4  ;;  %v2502_v18 = vadd.f32 -85.45669, %v2374_v7  ;;  %v1992_v20 = vadd.f32 -26.406752, %v1864_v14  ;;  %v837_v26 = vmul.f32 %v4434_v10, %v394_v63  ;;  %v2373_v30 = vmul.f32 %v2245_v57, %v4466_v24 }
 0x175   :  { %3393 = vst [vmem:[#allocation2 + $0x150] sm:$0xff] %v3265_v12  ;;  %v3268_v23 = vadd.f32 1.0, %v3140_v8  ;;  %v3139_v9 = vmul.f32 %v3011_v13, %v4439_v29  ;;  %v1735_v3 = vadd.f32 7.806575, %v1607_v19  ;;  %v970_v31 = vadd.f32 %v3747_v5, %v838_v21 }
 0x176   :  { %v2630_v42 = vmul.f32 %v2502_v18, %v4458_v6  ;;  %v2120_v53 = vmul.f32 %v1992_v20, %v4478_v49  ;;  %v969_v27 = vadd.f32 %v3747_v5, %v837_v26  ;;  %v840_v55 = vmul.f32 %v4434_v10, %v409_v22  ;;  %v414_v26 = vpop.permute.xlu0 %413 }
 0x177   :  { %3396 = vst [vmem:[#allocation2 + $0x168] sm:$0xff] %v3268_v23  ;;  %v3267_v35 = vadd.f32 1.0, %v3139_v9  ;;  %v2501_v40 = vadd.f32 -85.45669, %v2373_v30  ;;  %v1863_v39 = vmul.f32 %v1735_v3, %v4489_v11  ;;  %v1098_v25 = vadd.f32 0.5, %v970_v31 }
 0x178   :  { %v2758_v29 = vadd.f32 64.93939, %v2630_v42  ;;  %v2248_v34 = vadd.f32 60.242462, %v2120_v53  ;;  %v1097_v43 = vadd.f32 0.5, %v969_v27  ;;  %v972_v28 = vadd.f32 %v3747_v5, %v840_v55 }
 0x179   :  { %3395 = vst [vmem:[#allocation2 + $0x160] sm:$0xff] %v3267_v35  ;;  %v839_v44 = vmul.f32 %v4434_v10, %v404_v32  ;;  %v2629_v17 = vmul.f32 %v2501_v40, %v4466_v24  ;;  %v1991_v33 = vadd.f32 -26.406752, %v1863_v39  ;;  %v1226_v46 = vfloor.f32 %v1098_v25 }
 0x17a   :  { %v2886_v45 = vmul.f32 %v2758_v29, %v4458_v6  ;;  %v2376_v15 = vmul.f32 %v2248_v34, %v4478_v49  ;;  %v1225_v1 = vfloor.f32 %v1097_v43  ;;  %v1100_v48 = vadd.f32 0.5, %v972_v28 }
 0x17b   :  { %v971_v16 = vadd.f32 %v3747_v5, %v839_v44  ;;  %v2757_v41 = vadd.f32 64.93939, %v2629_v17  ;;  %v2119_v37 = vmul.f32 %v1991_v33, %v4489_v11  ;;  %v1354_v51 = vsub.f32 %v970_v31, %v1226_v46  ;;  %v429_v33 = vpop.permute.xlu1 %428 }
 0x17c   :  { %v3014_v36 = vadd.f32 -19.739208, %v2886_v45  ;;  %v2504_v52 = vadd.f32 -85.45669, %v2376_v15  ;;  %v1353_v54 = vsub.f32 %v969_v27, %v1225_v1  ;;  %v1228_v58 = vfloor.f32 %v1100_v48 }
 0x17d   :  { %v1099_v47 = vadd.f32 0.5, %v971_v16  ;;  %v2885_v59 = vmul.f32 %v2757_v41, %v4466_v24  ;;  %v2247_v60 = vadd.f32 60.242462, %v2119_v37  ;;  %v4513_v62 = vmul.f32 %v1354_v51, %v1354_v51 }
 0x17e   :  { %v3142_v38 = vmul.f32 %v3014_v36, %v4458_v6  ;;  %v2632_v63 = vmul.f32 %v2504_v52, %v4478_v49  ;;  %v4516_v61 = vmul.f32 %v1353_v54, %v1353_v54  ;;  %v1356_v0 = vsub.f32 %v972_v28, %v1228_v58 }
 0x17f   :  { %v1227_v2 = vfloor.f32 %v1099_v47  ;;  %v3013_v7 = vadd.f32 -19.739208, %v2885_v59  ;;  %v2375_v56 = vmul.f32 %v2247_v60, %v4489_v11  ;;  %v1610_v12 = vmul.f32 -1.4609046, %v4513_v62 }
 0x180   :  { %v3270_v4 = vadd.f32 1.0, %v3142_v38  ;;  %v2760_v8 = vadd.f32 64.93939, %v2632_v63  ;;  %v1609_v6 = vmul.f32 -1.4609046, %v4516_v61  ;;  %v4521_v13 = vmul.f32 %v1356_v0, %v1356_v0 }
 0x181   :  { %v1355_v14 = vsub.f32 %v971_v16, %v1227_v2  ;;  %v3141_v18 = vmul.f32 %v3013_v7, %v4466_v24  ;;  %v2503_v57 = vadd.f32 -85.45669, %v2375_v56  ;;  %v1738_v19 = vadd.f32 7.806575, %v1610_v12 }
 0x182   :  { %3398 = vst [vmem:[#allocation2 + $0x178] sm:$0xff] %v3270_v4  ;;  %v842_v21 = vmul.f32 %v4434_v10, %v419_v50  ;;  %v2888_v22 = vmul.f32 %v2760_v8, %v4478_v49  ;;  %v1737_v23 = vadd.f32 7.806575, %v1609_v6  ;;  %v1612_v9 = vmul.f32 -1.4609046, %v4521_v13  ;;  %v424_v50 = vpop.permute.xlu0 %423 }
 0x183   :  { %v4527_v20 = vmul.f32 %v1355_v14, %v1355_v14  ;;  %v3269_v42 = vadd.f32 1.0, %v3141_v18  ;;  %v2631_v30 = vmul.f32 %v2503_v57, %v4489_v11  ;;  %v1866_v3 = vmul.f32 %v1738_v19, %v4513_v62 }
 0x184   :  { %v974_v31 = vadd.f32 %v3747_v5, %v842_v21  ;;  %v3016_v24 = vadd.f32 -19.739208, %v2888_v22  ;;  %v1865_v32 = vmul.f32 %v1737_v23, %v4516_v61  ;;  %v1740_v35 = vadd.f32 7.806575, %v1612_v9 }
 0x185   :  { %v1611_v53 = vmul.f32 -1.4609046, %v4527_v20  ;;  %3397 = vst [vmem:[#allocation2 + $0x170] sm:$0xff] %v3269_v42  ;;  %v2759_v27 = vadd.f32 64.93939, %v2631_v30  ;;  %v841_v40 = vmul.f32 %v4434_v10, %v414_v26  ;;  %v844_v54 = vmul.f32 %v4434_v10, %v429_v33  ;;  %v439_v33 = vpop.permute.xlu1 %438 }
 0x186   :  { %v1994_v55 = vadd.f32 -26.406752, %v1866_v3  ;;  %v1102_v29 = vadd.f32 0.5, %v974_v31  ;;  %v3144_v39 = vmul.f32 %v3016_v24, %v4478_v49  ;;  %v1993_v25 = vadd.f32 -26.406752, %v1865_v32 }
 0x187   :  { %v1868_v34 = vmul.f32 %v1740_v35, %v4521_v13  ;;  %v1739_v43 = vadd.f32 7.806575, %v1611_v53  ;;  %v2887_v28 = vmul.f32 %v2759_v27, %v4489_v11  ;;  %v973_v17 = vadd.f32 %v3747_v5, %v841_v40 }
 0x188   :  { %v2122_v44 = vmul.f32 %v1994_v55, %v4513_v62  ;;  %v1230_v45 = vfloor.f32 %v1102_v29  ;;  %v3272_v46 = vadd.f32 1.0, %v3144_v39  ;;  %v2121_v15 = vmul.f32 %v1993_v25, %v4516_v61 }
 0x189   :  { %v1996_v1 = vadd.f32 -26.406752, %v1868_v34  ;;  %v1867_v48 = vmul.f32 %v1739_v43, %v4527_v20  ;;  %v3015_v16 = vadd.f32 -19.739208, %v2887_v28  ;;  %v1101_v41 = vadd.f32 0.5, %v973_v17 }
 0x18a   :  { %v2250_v49 = vadd.f32 60.242462, %v2122_v44  ;;  %v1358_v36 = vsub.f32 %v974_v31, %v1230_v45  ;;  %3400 = vst [vmem:[#allocation2 + $0x188] sm:$0xff] %v3272_v46  ;;  %v2249_v37 = vadd.f32 60.242462, %v2121_v15  ;;  %v976_v2 = vadd.f32 %v3747_v5, %v844_v54 }
 0x18b   :  { %v2124_v51 = vmul.f32 %v1996_v1, %v4521_v13  ;;  %v1995_v52 = vadd.f32 -26.406752, %v1867_v48  ;;  %v3143_v58 = vmul.f32 %v3015_v16, %v4489_v11  ;;  %v1229_v59 = vfloor.f32 %v1101_v41 }
 0x18c   :  { %v2378_v47 = vmul.f32 %v2250_v49, %v4513_v62  ;;  %v4546_v38 = vmul.f32 %v1358_v36, %v1358_v36  ;;  %v2377_v60 = vmul.f32 %v2249_v37, %v4516_v61  ;;  %v1104_v14 = vadd.f32 0.5, %v976_v2  ;;  %v434_v37 = vpop.permute.xlu0 %433 }
 0x18d   :  { %v2252_v63 = vadd.f32 60.242462, %v2124_v51  ;;  %v2123_v0 = vmul.f32 %v1995_v52, %v4527_v20  ;;  %v3271_v4 = vadd.f32 1.0, %v3143_v58  ;;  %v1357_v12 = vsub.f32 %v973_v17, %v1229_v59 }
 0x18e   :  { %v2506_v7 = vadd.f32 -85.45669, %v2378_v47  ;;  %v1614_v56 = vmul.f32 -1.4609046, %v4546_v38  ;;  %v2505_v8 = vadd.f32 -85.45669, %v2377_v60  ;;  %v843_v21 = vmul.f32 %v4434_v10, %v424_v50 }
 0x18f   :  { %v2380_v11 = vmul.f32 %v2252_v63, %v4521_v13  ;;  %v2251_v6 = vadd.f32 60.242462, %v2123_v0  ;;  %3399 = vst [vmem:[#allocation2 + $0x180] sm:$0xff] %v3271_v4  ;;  %v4554_v19 = vmul.f32 %v1357_v12, %v1357_v12  ;;  %v1232_v26 = vfloor.f32 %v1104_v14  ;;  %v449_v12 = vpop.permute.xlu1 %448 }
 0x190   :  { %v2634_v18 = vmul.f32 %v2506_v7, %v4513_v62  ;;  %v1742_v57 = vadd.f32 7.806575, %v1614_v56  ;;  %v2633_v22 = vmul.f32 %v2505_v8, %v4516_v61  ;;  %v975_v31 = vadd.f32 %v3747_v5, %v843_v21 }
 0x191   :  { %v2508_v23 = vadd.f32 -85.45669, %v2380_v11  ;;  %v2379_v9 = vmul.f32 %v2251_v6, %v4527_v20  ;;  %v1613_v3 = vmul.f32 -1.4609046, %v4554_v19  ;;  %v1360_v53 = vsub.f32 %v976_v2, %v1232_v26 }
 0x192   :  { %v2762_v42 = vadd.f32 64.93939, %v2634_v18  ;;  %v1870_v30 = vmul.f32 %v1742_v57, %v4546_v38  ;;  %v2761_v24 = vadd.f32 64.93939, %v2633_v22  ;;  %v1103_v40 = vadd.f32 0.5, %v975_v31  ;;  %v444_v22 = vpop.permute.xlu0 %443 }
 0x193   :  { %v2636_v32 = vmul.f32 %v2508_v23, %v4521_v13  ;;  %v2507_v35 = vadd.f32 -85.45669, %v2379_v9  ;;  %v1741_v29 = vadd.f32 7.806575, %v1613_v3  ;;  %v4566_v43 = vmul.f32 %v1360_v53, %v1360_v53 }
 0x194   :  { %v2890_v27 = vmul.f32 %v2762_v42, %v4513_v62  ;;  %v1998_v55 = vadd.f32 -26.406752, %v1870_v30  ;;  %v2889_v39 = vmul.f32 %v2761_v24, %v4516_v61  ;;  %v1231_v17 = vfloor.f32 %v1103_v40 }
 0x195   :  { %v2764_v25 = vadd.f32 64.93939, %v2636_v32  ;;  %v2635_v34 = vmul.f32 %v2507_v35, %v4527_v20  ;;  %v1869_v45 = vmul.f32 %v1741_v29, %v4554_v19  ;;  %v1616_v48 = vmul.f32 -1.4609046, %v4566_v43 }
 0x196   :  { %v3018_v28 = vadd.f32 -19.739208, %v2890_v27  ;;  %v2126_v44 = vmul.f32 %v1998_v55, %v4546_v38  ;;  %v3017_v46 = vadd.f32 -19.739208, %v2889_v39  ;;  %v1359_v41 = vsub.f32 %v975_v31, %v1231_v17 }
 0x197   :  { %v2892_v15 = vmul.f32 %v2764_v25, %v4521_v13  ;;  %v2763_v1 = vadd.f32 64.93939, %v2635_v34  ;;  %v1997_v36 = vadd.f32 -26.406752, %v1869_v45  ;;  %v1744_v58 = vadd.f32 7.806575, %v1616_v48 }
 0x198   :  { %v3146_v16 = vmul.f32 %v3018_v28, %v4513_v62  ;;  %v2254_v49 = vadd.f32 60.242462, %v2126_v44  ;;  %v3145_v51 = vmul.f32 %v3017_v46, %v4516_v61  ;;  %v4577_v63 = vmul.f32 %v1359_v41, %v1359_v41 }
 0x199   :  { %v3020_v52 = vadd.f32 -19.739208, %v2892_v15  ;;  %v2891_v54 = vmul.f32 %v2763_v1, %v4527_v20  ;;  %v2125_v60 = vmul.f32 %v1997_v36, %v4554_v19  ;;  %v1872_v50 = vmul.f32 %v1744_v58, %v4566_v43  ;;  %v459_v58 = vpop.permute.xlu1 %458 }
 0x19a   :  { %v3274_v47 = vadd.f32 1.0, %v3146_v16  ;;  %v2382_v59 = vmul.f32 %v2254_v49, %v4546_v38  ;;  %v3273_v0 = vadd.f32 1.0, %v3145_v51  ;;  %v1615_v7 = vmul.f32 -1.4609046, %v4577_v63 }
 0x19b   :  { %v3148_v62 = vmul.f32 %v3020_v52, %v4521_v13  ;;  %v3019_v2 = vadd.f32 -19.739208, %v2891_v54  ;;  %v2253_v61 = vadd.f32 60.242462, %v2125_v60  ;;  %v846_v56 = vmul.f32 %v4434_v10, %v439_v33 }
 0x19c   :  { %3402 = vst [vmem:[#allocation2 + $0x198] sm:$0xff] %v3274_v47  ;;  %v2510_v4 = vadd.f32 -85.45669, %v2382_v59  ;;  %3401 = vst [vmem:[#allocation2 + $0x190] sm:$0xff] %v3273_v0  ;;  %v2000_v6 = vadd.f32 -26.406752, %v1872_v50  ;;  %v845_v14 = vmul.f32 %v4434_v10, %v434_v37  ;;  %v848_v42 = vmul.f32 %v4434_v10, %v449_v12 }
 0x19d   :  { %v3276_v8 = vadd.f32 1.0, %v3148_v62  ;;  %v3147_v11 = vmul.f32 %v3019_v2, %v4527_v20  ;;  %v2381_v18 = vmul.f32 %v2253_v61, %v4554_v19  ;;  %v1743_v57 = vadd.f32 7.806575, %v1615_v7 }
 0x19e   :  { %v2638_v13 = vmul.f32 %v2510_v4, %v4546_v38  ;;  %v978_v21 = vadd.f32 %v3747_v5, %v846_v56  ;;  %v2128_v9 = vmul.f32 %v2000_v6, %v4566_v43  ;;  %v977_v26 = vadd.f32 %v3747_v5, %v845_v14  ;;  %v454_v14 = vpop.permute.xlu0 %453 }
 0x19f   :  { %3404 = vst [vmem:[#allocation2 + $0x1a8] sm:$0xff] %v3276_v8  ;;  %v3275_v23 = vadd.f32 1.0, %v3147_v11  ;;  %v2509_v30 = vadd.f32 -85.45669, %v2381_v18  ;;  %v1871_v3 = vmul.f32 %v1743_v57, %v4577_v63  ;;  %v980_v35 = vadd.f32 %v3747_v5, %v848_v42 }
 0x1a0   :  { %v2766_v20 = vadd.f32 64.93939, %v2638_v13  ;;  %v1106_v31 = vadd.f32 0.5, %v978_v21  ;;  %v2256_v24 = vadd.f32 60.242462, %v2128_v9  ;;  %v1105_v32 = vadd.f32 0.5, %v977_v26 }
 0x1a1   :  { %3403 = vst [vmem:[#allocation2 + $0x1a0] sm:$0xff] %v3275_v23  ;;  %v847_v53 = vmul.f32 %v4434_v10, %v444_v22  ;;  %v2637_v55 = vmul.f32 %v2509_v30, %v4554_v19  ;;  %v1999_v29 = vadd.f32 -26.406752, %v1871_v3  ;;  %v1108_v34 = vadd.f32 0.5, %v980_v35 }
 0x1a2   :  { %v2894_v27 = vmul.f32 %v2766_v20, %v4546_v38  ;;  %v1234_v40 = vfloor.f32 %v1106_v31  ;;  %v2384_v39 = vmul.f32 %v2256_v24, %v4566_v43  ;;  %v1233_v25 = vfloor.f32 %v1105_v32 }
 0x1a3   :  { %v979_v28 = vadd.f32 %v3747_v5, %v847_v53  ;;  %v2765_v45 = vadd.f32 64.93939, %v2637_v55  ;;  %v2127_v17 = vmul.f32 %v1999_v29, %v4577_v63  ;;  %v1236_v1 = vfloor.f32 %v1108_v34  ;;  %v469_v29 = vpop.permute.xlu1 %468 }
 0x1a4   :  { %v3022_v44 = vadd.f32 -19.739208, %v2894_v27  ;;  %v1362_v33 = vsub.f32 %v978_v21, %v1234_v40  ;;  %v2512_v46 = vadd.f32 -85.45669, %v2384_v39  ;;  %v1361_v15 = vsub.f32 %v977_v26, %v1233_v25 }
 0x1a5   :  { %v1107_v48 = vadd.f32 0.5, %v979_v28  ;;  %v2893_v49 = vmul.f32 %v2765_v45, %v4554_v19  ;;  %v2255_v36 = vadd.f32 60.242462, %v2127_v17  ;;  %v1364_v52 = vsub.f32 %v980_v35, %v1236_v1 }
 0x1a6   :  { %v3150_v16 = vmul.f32 %v3022_v44, %v4546_v38  ;;  %v4601_v41 = vmul.f32 %v1362_v33, %v1362_v33  ;;  %v2640_v37 = vmul.f32 %v2512_v46, %v4566_v43  ;;  %v4604_v51 = vmul.f32 %v1361_v15, %v1361_v15 }
 0x1a7   :  { %v1235_v54 = vfloor.f32 %v1107_v48  ;;  %v3021_v59 = vadd.f32 -19.739208, %v2893_v49  ;;  %v2383_v60 = vmul.f32 %v2255_v36, %v4577_v63  ;;  %v4609_v2 = vmul.f32 %v1364_v52, %v1364_v52 }
 0x1a8   :  { %v3278_v47 = vadd.f32 1.0, %v3150_v16  ;;  %v1618_v0 = vmul.f32 -1.4609046, %v4601_v41  ;;  %v2768_v62 = vadd.f32 64.93939, %v2640_v37  ;;  %v850_v56 = vmul.f32 %v4434_v10, %v459_v58  ;;  %v464_v58 = vpop.permute.xlu0 %463 }
 0x1a9   :  { %v1617_v38 = vmul.f32 -1.4609046, %v4604_v51  ;;  %v1363_v50 = vsub.f32 %v979_v28, %v1235_v54  ;;  %v3149_v4 = vmul.f32 %v3021_v59, %v4554_v19  ;;  %v2511_v61 = vadd.f32 -85.45669, %v2383_v60 }
 0x1aa   :  { %3406 = vst [vmem:[#allocation2 + $0x1b8] sm:$0xff] %v3278_v47  ;;  %v1746_v7 = vadd.f32 7.806575, %v1618_v0  ;;  %v2896_v12 = vmul.f32 %v2768_v62, %v4566_v43  ;;  %v1620_v11 = vmul.f32 -1.4609046, %v4609_v2  ;;  %v982_v21 = vadd.f32 %v3747_v5, %v850_v56 }
 0x1ab   :  { %v1745_v8 = vadd.f32 7.806575, %v1617_v38  ;;  %v4615_v6 = vmul.f32 %v1363_v50, %v1363_v50  ;;  %v3277_v13 = vadd.f32 1.0, %v3149_v4  ;;  %v2639_v18 = vmul.f32 %v2511_v61, %v4577_v63 }
 0x1ac   :  { %v1874_v57 = vmul.f32 %v1746_v7, %v4601_v41  ;;  %v3024_v19 = vadd.f32 -19.739208, %v2896_v12  ;;  %v1748_v23 = vadd.f32 7.806575, %v1620_v11  ;;  %v1110_v20 = vadd.f32 0.5, %v982_v21 }
 0x1ad   :  { %v1873_v22 = vmul.f32 %v1745_v8, %v4604_v51  ;;  %v1619_v9 = vmul.f32 -1.4609046, %v4615_v6  ;;  %3405 = vst [vmem:[#allocation2 + $0x1b0] sm:$0xff] %v3277_v13  ;;  %v2767_v26 = vadd.f32 64.93939, %v2639_v18  ;;  %v849_v30 = vmul.f32 %v4434_v10, %v454_v14 }
 0x1ae   :  { %v2002_v42 = vadd.f32 -26.406752, %v1874_v57  ;;  %v3152_v3 = vmul.f32 %v3024_v19, %v4566_v43  ;;  %v1876_v24 = vmul.f32 %v1748_v23, %v4609_v2  ;;  %v1238_v27 = vfloor.f32 %v1110_v20 }
 0x1af   :  { %v2001_v31 = vadd.f32 -26.406752, %v1873_v22  ;;  %v1747_v32 = vadd.f32 7.806575, %v1619_v9  ;;  %v2895_v35 = vmul.f32 %v2767_v26, %v4577_v63  ;;  %v981_v55 = vadd.f32 %v3747_v5, %v849_v30 }
 0x1b0   :  { %v2130_v53 = vmul.f32 %v2002_v42, %v4601_v41  ;;  %v3280_v40 = vadd.f32 1.0, %v3152_v3  ;;  %v2004_v25 = vadd.f32 -26.406752, %v1876_v24  ;;  %v1366_v44 = vsub.f32 %v982_v21, %v1238_v27 }
 0x1b1   :  { %v2129_v39 = vmul.f32 %v2001_v31, %v4604_v51  ;;  %v1875_v34 = vmul.f32 %v1747_v32, %v4615_v6  ;;  %v3023_v28 = vadd.f32 -19.739208, %v2895_v35  ;;  %v1109_v45 = vadd.f32 0.5, %v981_v55 }
 0x1b2   :  { %v2258_v43 = vadd.f32 60.242462, %v2130_v53  ;;  %3408 = vst [vmem:[#allocation2 + $0x1c8] sm:$0xff] %v3280_v40  ;;  %v2132_v33 = vmul.f32 %v2004_v25, %v4609_v2  ;;  %v852_v15 = vmul.f32 %v4434_v10, %v469_v29  ;;  %v4634_v16 = vmul.f32 %v1366_v44, %v1366_v44  ;;  %v479_v29 = vpop.permute.xlu1 %478 }
 0x1b3   :  { %v2257_v17 = vadd.f32 60.242462, %v2129_v39  ;;  %v2003_v46 = vadd.f32 -26.406752, %v1875_v34  ;;  %v3151_v1 = vmul.f32 %v3023_v28, %v4577_v63  ;;  %v1237_v49 = vfloor.f32 %v1109_v45 }
 0x1b4   :  { %v2386_v48 = vmul.f32 %v2258_v43, %v4601_v41  ;;  %v2260_v37 = vadd.f32 60.242462, %v2132_v33  ;;  %v984_v54 = vadd.f32 %v3747_v5, %v852_v15  ;;  %v1622_v60 = vmul.f32 -1.4609046, %v4634_v16 }
 0x1b5   :  { %v2385_v36 = vmul.f32 %v2257_v17, %v4604_v51  ;;  %v2131_v52 = vmul.f32 %v2003_v46, %v4615_v6  ;;  %v3279_v47 = vadd.f32 1.0, %v3151_v1  ;;  %v1365_v0 = vsub.f32 %v981_v55, %v1237_v49  ;;  %v474_v17 = vpop.permute.xlu0 %473 }
 0x1b6   :  { %v2514_v59 = vadd.f32 -85.45669, %v2386_v48  ;;  %v2388_v63 = vmul.f32 %v2260_v37, %v4609_v2  ;;  %v1112_v50 = vadd.f32 0.5, %v984_v54  ;;  %v1750_v61 = vadd.f32 7.806575, %v1622_v60 }
 0x1b7   :  { %v2513_v62 = vadd.f32 -85.45669, %v2385_v36  ;;  %v2259_v38 = vadd.f32 60.242462, %v2131_v52  ;;  %3407 = vst [vmem:[#allocation2 + $0x1c0] sm:$0xff] %v3279_v47  ;;  %v4642_v7 = vmul.f32 %v1365_v0, %v1365_v0  ;;  %v851_v56 = vmul.f32 %v4434_v10, %v464_v58  ;;  %v489_v0 = vpop.permute.xlu1 %488 }
 0x1b8   :  { %v2642_v4 = vmul.f32 %v2514_v59, %v4601_v41  ;;  %v2516_v8 = vadd.f32 -85.45669, %v2388_v63  ;;  %v1240_v14 = vfloor.f32 %v1112_v50  ;;  %v1878_v18 = vmul.f32 %v1750_v61, %v4634_v16 }
 0x1b9   :  { %v2641_v12 = vmul.f32 %v2513_v62, %v4604_v51  ;;  %v2387_v11 = vmul.f32 %v2259_v38, %v4615_v6  ;;  %v1621_v57 = vmul.f32 -1.4609046, %v4642_v7  ;;  %v983_v21 = vadd.f32 %v3747_v5, %v851_v56 }
 0x1ba   :  { %v2770_v13 = vadd.f32 64.93939, %v2642_v4  ;;  %v2644_v22 = vmul.f32 %v2516_v8, %v4609_v2  ;;  %v1368_v9 = vsub.f32 %v984_v54, %v1240_v14  ;;  %v2006_v42 = vadd.f32 -26.406752, %v1878_v18 }
 0x1bb   :  { %v2769_v19 = vadd.f32 64.93939, %v2641_v12  ;;  %v2515_v23 = vadd.f32 -85.45669, %v2387_v11  ;;  %v1749_v20 = vadd.f32 7.806575, %v1621_v57  ;;  %v854_v60 = vmul.f32 %v4434_v10, %v479_v29  ;;  %v484_v12 = vpop.permute.xlu0 %483 }
 0x1bc   :  { %v2898_v26 = vmul.f32 %v2770_v13, %v4601_v41  ;;  %v1111_v30 = vadd.f32 0.5, %v983_v21  ;;  %v2772_v31 = vadd.f32 64.93939, %v2644_v22  ;;  %v4654_v32 = vmul.f32 %v1368_v9, %v1368_v9 }
 0x1bd   :  { %v2897_v3 = vmul.f32 %v2769_v19, %v4604_v51  ;;  %v2643_v24 = vmul.f32 %v2515_v23, %v4615_v6  ;;  %v2134_v53 = vmul.f32 %v2006_v42, %v4634_v16  ;;  %v1877_v27 = vmul.f32 %v1749_v20, %v4642_v7 }
 0x1be   :  { %v3026_v35 = vadd.f32 -19.739208, %v2898_v26  ;;  %v1239_v55 = vfloor.f32 %v1111_v30  ;;  %v2900_v39 = vmul.f32 %v2772_v31, %v4609_v2  ;;  %v1624_v34 = vmul.f32 -1.4609046, %v4654_v32 }
 0x1bf   :  { %v3025_v40 = vadd.f32 -19.739208, %v2897_v3  ;;  %v2771_v25 = vadd.f32 64.93939, %v2643_v24  ;;  %v2262_v43 = vadd.f32 60.242462, %v2134_v53  ;;  %v853_v50 = vmul.f32 %v4434_v10, %v474_v17 }
 0x1c0   :  { %v3154_v28 = vmul.f32 %v3026_v35, %v4601_v41  ;;  %v2005_v44 = vadd.f32 -26.406752, %v1877_v27  ;;  %v1367_v45 = vsub.f32 %v983_v21, %v1239_v55  ;;  %v3028_v46 = vadd.f32 -19.739208, %v2900_v39 }
 0x1c1   :  { %v3153_v33 = vmul.f32 %v3025_v40, %v4604_v51  ;;  %v2899_v15 = vmul.f32 %v2771_v25, %v4615_v6  ;;  %v1752_v1 = vadd.f32 7.806575, %v1624_v34  ;;  %v2390_v49 = vmul.f32 %v2262_v43, %v4634_v16 }
 0x1c2   :  { %v3282_v48 = vadd.f32 1.0, %v3154_v28  ;;  %v2133_v36 = vmul.f32 %v2005_v44, %v4642_v7  ;;  %v4665_v37 = vmul.f32 %v1367_v45, %v1367_v45  ;;  %v3156_v41 = vmul.f32 %v3028_v46, %v4609_v2 }
 0x1c3   :  { %v3281_v52 = vadd.f32 1.0, %v3153_v33  ;;  %v3027_v54 = vadd.f32 -19.739208, %v2899_v15  ;;  %v1880_v58 = vmul.f32 %v1752_v1, %v4654_v32  ;;  %v2518_v47 = vadd.f32 -85.45669, %v2390_v49  ;;  %v499_v15 = vpop.permute.xlu1 %498 }
 0x1c4   :  { %3410 = vst [vmem:[#allocation2 + $0x1d8] sm:$0xff] %v3282_v48  ;;  %v2261_v51 = vadd.f32 60.242462, %v2133_v36  ;;  %v1623_v59 = vmul.f32 -1.4609046, %v4665_v37  ;;  %v3284_v62 = vadd.f32 1.0, %v3156_v41  ;;  %v986_v56 = vadd.f32 %v3747_v5, %v854_v60 }
 0x1c5   :  { %3409 = vst [vmem:[#allocation2 + $0x1d0] sm:$0xff] %v3281_v52  ;;  %v3155_v63 = vmul.f32 %v3027_v54, %v4615_v6  ;;  %v2008_v38 = vadd.f32 -26.406752, %v1880_v58  ;;  %v2646_v2 = vmul.f32 %v2518_v47, %v4634_v16  ;;  %v985_v14 = vadd.f32 %v3747_v5, %v853_v50  ;;  %v494_v50 = vpop.permute.xlu0 %493 }
 0x1c6   :  { %v2389_v4 = vmul.f32 %v2261_v51, %v4642_v7  ;;  %v1751_v61 = vadd.f32 7.806575, %v1623_v59  ;;  %3412 = vst [vmem:[#allocation2 + $0x1e8] sm:$0xff] %v3284_v62  ;;  %v856_v13 = vmul.f32 %v4434_v10, %v489_v0  ;;  %v1114_v21 = vadd.f32 0.5, %v986_v56  ;;  %v4703_v59 = vld [vmem:[%s5381_s1] ss:$0 sm:$0xff] }
 0x1c7   :  { %v3283_v8 = vadd.f32 1.0, %v3155_v63  ;;  %v2136_v11 = vmul.f32 %v2008_v38, %v4654_v32  ;;  %v2774_v6 = vadd.f32 64.93939, %v2646_v2  ;;  %v1113_v22 = vadd.f32 0.5, %v985_v14 }
 0x1c8   :  { %v2517_v18 = vadd.f32 -85.45669, %v2389_v4  ;;  %v1879_v57 = vmul.f32 %v1751_v61, %v4665_v37  ;;  %v988_v23 = vadd.f32 %v3747_v5, %v856_v13  ;;  %v855_v9 = vmul.f32 %v4434_v10, %v484_v12 }
 0x1c9   :  { %3411 = vst [vmem:[#allocation2 + $0x1e0] sm:$0xff] %v3283_v8  ;;  %v2264_v19 = vadd.f32 60.242462, %v2136_v11  ;;  %v2902_v26 = vmul.f32 %v2774_v6, %v4634_v16  ;;  %v1242_v30 = vfloor.f32 %v1114_v21  ;;  %v1241_v31 = vfloor.f32 %v1113_v22 }
 0x1ca   :  { %v2645_v42 = vmul.f32 %v2517_v18, %v4642_v7  ;;  %v2007_v20 = vadd.f32 -26.406752, %v1879_v57  ;;  %v1116_v24 = vadd.f32 0.5, %v988_v23  ;;  %v987_v35 = vadd.f32 %v3747_v5, %v855_v9 }
 0x1cb   :  { %v2392_v3 = vmul.f32 %v2264_v19, %v4654_v32  ;;  %v3030_v53 = vadd.f32 -19.739208, %v2902_v26  ;;  %v1370_v29 = vsub.f32 %v986_v56, %v1242_v30  ;;  %v1369_v39 = vsub.f32 %v985_v14, %v1241_v31 }
 0x1cc   :  { %v2773_v27 = vadd.f32 64.93939, %v2645_v42  ;;  %v2135_v55 = vmul.f32 %v2007_v20, %v4665_v37  ;;  %v1244_v10 = vfloor.f32 %v1116_v24  ;;  %v1115_v25 = vadd.f32 0.5, %v987_v35  ;;  %v509_v20 = vpop.permute.xlu1 %508 }
 0x1cd   :  { %v2520_v40 = vadd.f32 -85.45669, %v2392_v3  ;;  %v3158_v34 = vmul.f32 %v3030_v53, %v4634_v16  ;;  %v4689_v44 = vmul.f32 %v1370_v29, %v1370_v29  ;;  %v4692_v17 = vmul.f32 %v1369_v39, %v1369_v39 }
 0x1ce   :  { %v2901_v28 = vmul.f32 %v2773_v27, %v4642_v7  ;;  %v2263_v43 = vadd.f32 60.242462, %v2135_v55  ;;  %v1372_v33 = vsub.f32 %v988_v23, %v1244_v10  ;;  %v1243_v46 = vfloor.f32 %v1115_v25 }
 0x1cf   :  { %v2648_v45 = vmul.f32 %v2520_v40, %v4654_v32  ;;  %v3286_v1 = vadd.f32 1.0, %v3158_v34  ;;  %v1626_v36 = vmul.f32 -1.4609046, %v4689_v44  ;;  %v1625_v16 = vmul.f32 -1.4609046, %v4692_v17 }
 0x1d0   :  { %v3029_v48 = vadd.f32 -19.739208, %v2901_v28  ;;  %v2391_v49 = vmul.f32 %v2263_v43, %v4665_v37  ;;  %v4697_v41 = vmul.f32 %v1372_v33, %v1372_v33  ;;  %v1371_v54 = vsub.f32 %v987_v35, %v1243_v46 }
 0x1d1   :  { %v2776_v52 = vadd.f32 64.93939, %v2648_v45  ;;  %3414 = vst [vmem:[#allocation2 + $0x1f8] sm:$0xff] %v3286_v1  ;;  %v1754_v51 = vadd.f32 7.806575, %v1626_v36  ;;  %v858_v60 = vmul.f32 %v4703_v59, %v499_v15  ;;  %v857_v18 = vmul.f32 %v4703_v59, %v494_v50  ;;  %v504_v15 = vpop.permute.xlu0 %503 }
 0x1d2   :  { %v3157_v58 = vmul.f32 %v3029_v48, %v4642_v7  ;;  %v2519_v47 = vadd.f32 -85.45669, %v2391_v49  ;;  %v1753_v62 = vadd.f32 7.806575, %v1625_v16  ;;  %v1628_v63 = vmul.f32 -1.4609046, %v4697_v41 }
 0x1d3   :  { %v2904_v0 = vmul.f32 %v2776_v52, %v4654_v32  ;;  %v4708_v38 = vmul.f32 %v1371_v54, %v1371_v54  ;;  %v1882_v4 = vmul.f32 %v1754_v51, %v4689_v44  ;;  %v990_v61 = vadd.f32 %v3747_v5, %v858_v60 }
 0x1d4   :  { %v3285_v2 = vadd.f32 1.0, %v3157_v58  ;;  %v2647_v7 = vmul.f32 %v2519_v47, %v4665_v37  ;;  %v1881_v12 = vmul.f32 %v1753_v62, %v4692_v17  ;;  %v1756_v8 = vadd.f32 7.806575, %v1628_v63 }
 0x1d5   :  { %v3032_v56 = vadd.f32 -19.739208, %v2904_v0  ;;  %v1627_v11 = vmul.f32 -1.4609046, %v4708_v38  ;;  %v2010_v13 = vadd.f32 -26.406752, %v1882_v4  ;;  %v989_v42 = vadd.f32 %v3747_v5, %v857_v18 }
 0x1d6   :  { %3413 = vst [vmem:[#allocation2 + $0x1f0] sm:$0xff] %v3285_v2  ;;  %v2775_v14 = vadd.f32 64.93939, %v2647_v7  ;;  %v1118_v6 = vadd.f32 0.5, %v990_v61  ;;  %v2009_v21 = vadd.f32 -26.406752, %v1881_v12  ;;  %v1884_v19 = vmul.f32 %v1756_v8, %v4697_v41 }
 0x1d7   :  { %v3160_v57 = vmul.f32 %v3032_v56, %v4654_v32  ;;  %v1755_v22 = vadd.f32 7.806575, %v1627_v11  ;;  %v2138_v9 = vmul.f32 %v2010_v13, %v4689_v44  ;;  %v1117_v27 = vadd.f32 0.5, %v989_v42 }
 0x1d8   :  { %v2903_v23 = vmul.f32 %v2775_v14, %v4665_v37  ;;  %v1246_v26 = vfloor.f32 %v1118_v6  ;;  %v2137_v3 = vmul.f32 %v2009_v21, %v4692_v17  ;;  %v2012_v31 = vadd.f32 -26.406752, %v1884_v19 }
 0x1d9   :  { %v3288_v30 = vadd.f32 1.0, %v3160_v57  ;;  %v1883_v24 = vmul.f32 %v1755_v22, %v4708_v38  ;;  %v2266_v32 = vadd.f32 60.242462, %v2138_v9  ;;  %v860_v39 = vmul.f32 %v4703_v59, %v509_v20  ;;  %v519_v20 = vpop.permute.xlu1 %518 }
 0x1da   :  { %v3031_v35 = vadd.f32 -19.739208, %v2903_v23  ;;  %v1374_v53 = vsub.f32 %v990_v61, %v1246_v26  ;;  %v2265_v55 = vadd.f32 60.242462, %v2137_v3  ;;  %v2140_v29 = vmul.f32 %v2012_v31, %v4697_v41 }
 0x1db   :  { %3416 = vst [vmem:[#allocation2 + $0x208] sm:$0xff] %v3288_v30  ;;  %v2011_v40 = vadd.f32 -26.406752, %v1883_v24  ;;  %v2394_v25 = vmul.f32 %v2266_v32, %v4689_v44  ;;  %v1245_v28 = vfloor.f32 %v1117_v27  ;;  %v992_v46 = vadd.f32 %v3747_v5, %v860_v39 }
 0x1dc   :  { %v3159_v10 = vmul.f32 %v3031_v35, %v4665_v37  ;;  %v4727_v34 = vmul.f32 %v1374_v53, %v1374_v53  ;;  %v2393_v43 = vmul.f32 %v2265_v55, %v4692_v17  ;;  %v2268_v45 = vadd.f32 60.242462, %v2140_v29  ;;  %v514_v55 = vpop.permute.xlu0 %513 }
 0x1dd   :  { %v2139_v33 = vmul.f32 %v2011_v40, %v4708_v38  ;;  %v2522_v48 = vadd.f32 -85.45669, %v2394_v25  ;;  %v1373_v36 = vsub.f32 %v989_v42, %v1245_v28  ;;  %v1120_v54 = vadd.f32 0.5, %v992_v46 }
 0x1de   :  { %v3287_v1 = vadd.f32 1.0, %v3159_v10  ;;  %v1630_v49 = vmul.f32 -1.4609046, %v4727_v34  ;;  %v2521_v52 = vadd.f32 -85.45669, %v2393_v43  ;;  %v2396_v37 = vmul.f32 %v2268_v45, %v4697_v41 }
 0x1df   :  { %v2267_v16 = vadd.f32 60.242462, %v2139_v33  ;;  %v2650_v58 = vmul.f32 %v2522_v48, %v4689_v44  ;;  %v4735_v51 = vmul.f32 %v1373_v36, %v1373_v36  ;;  %v859_v60 = vmul.f32 %v4703_v59, %v504_v15  ;;  %v529_v36 = vpop.permute.xlu1 %528 }
 0x1e0   :  { %3415 = vst [vmem:[#allocation2 + $0x200] sm:$0xff] %v3287_v1  ;;  %v1758_v47 = vadd.f32 7.806575, %v1630_v49  ;;  %v2649_v0 = vmul.f32 %v2521_v52, %v4692_v17  ;;  %v2524_v62 = vadd.f32 -85.45669, %v2396_v37  ;;  %v1248_v50 = vfloor.f32 %v1120_v54 }
 0x1e1   :  { %v2395_v63 = vmul.f32 %v2267_v16, %v4708_v38  ;;  %v2778_v2 = vadd.f32 64.93939, %v2650_v58  ;;  %v1629_v4 = vmul.f32 -1.4609046, %v4735_v51  ;;  %v991_v61 = vadd.f32 %v3747_v5, %v859_v60 }
 0x1e2   :  { %v1886_v7 = vmul.f32 %v1758_v47, %v4727_v34  ;;  %v2777_v56 = vadd.f32 64.93939, %v2649_v0  ;;  %v2652_v12 = vmul.f32 %v2524_v62, %v4697_v41  ;;  %v1376_v11 = vsub.f32 %v992_v46, %v1248_v50  ;;  %v524_v0 = vpop.permute.xlu0 %523 }
 0x1e3   :  { %v2523_v8 = vadd.f32 -85.45669, %v2395_v63  ;;  %v2906_v14 = vmul.f32 %v2778_v2, %v4689_v44  ;;  %v1757_v6 = vadd.f32 7.806575, %v1629_v4  ;;  %v1119_v18 = vadd.f32 0.5, %v991_v61 }
 0x1e4   :  { %v2014_v13 = vadd.f32 -26.406752, %v1886_v7  ;;  %v2905_v57 = vmul.f32 %v2777_v56, %v4692_v17  ;;  %v2780_v21 = vadd.f32 64.93939, %v2652_v12  ;;  %v4747_v22 = vmul.f32 %v1376_v11, %v1376_v11 }
 0x1e5   :  { %v2651_v19 = vmul.f32 %v2523_v8, %v4708_v38  ;;  %v3034_v23 = vadd.f32 -19.739208, %v2906_v14  ;;  %v1885_v26 = vmul.f32 %v1757_v6, %v4735_v51  ;;  %v1247_v42 = vfloor.f32 %v1119_v18 }
 0x1e6   :  { %v2142_v9 = vmul.f32 %v2014_v13, %v4727_v34  ;;  %v3033_v30 = vadd.f32 -19.739208, %v2905_v57  ;;  %v2908_v3 = vmul.f32 %v2780_v21, %v4697_v41  ;;  %v1632_v24 = vmul.f32 -1.4609046, %v4747_v22 }
 0x1e7   :  { %v2779_v31 = vadd.f32 64.93939, %v2651_v19  ;;  %v3162_v35 = vmul.f32 %v3034_v23, %v4689_v44  ;;  %v2013_v53 = vadd.f32 -26.406752, %v1885_v26  ;;  %v1375_v27 = vsub.f32 %v991_v61, %v1247_v42 }
 0x1e8   :  { %v2270_v32 = vadd.f32 60.242462, %v2142_v9  ;;  %v3161_v29 = vmul.f32 %v3033_v30, %v4692_v17  ;;  %v3036_v40 = vadd.f32 -19.739208, %v2908_v3  ;;  %v1760_v10 = vadd.f32 7.806575, %v1632_v24 }
 0x1e9   :  { %v2907_v39 = vmul.f32 %v2779_v31, %v4708_v38  ;;  %v3290_v25 = vadd.f32 1.0, %v3162_v35  ;;  %v2141_v43 = vmul.f32 %v2013_v53, %v4735_v51  ;;  %v4758_v45 = vmul.f32 %v1375_v27, %v1375_v27 }
 0x1ea   :  { %v2398_v28 = vmul.f32 %v2270_v32, %v4727_v34  ;;  %v3289_v33 = vadd.f32 1.0, %v3161_v29  ;;  %v3164_v44 = vmul.f32 %v3036_v40, %v4697_v41  ;;  %v1888_v15 = vmul.f32 %v1760_v10, %v4747_v22  ;;  %v539_v10 = vpop.permute.xlu1 %538 }
 0x1eb   :  { %v3035_v46 = vadd.f32 -19.739208, %v2907_v39  ;;  %3418 = vst [vmem:[#allocation2 + $0x218] sm:$0xff] %v3290_v25  ;;  %v2269_v17 = vadd.f32 60.242462, %v2141_v43  ;;  %v862_v49 = vmul.f32 %v4703_v59, %v519_v20  ;;  %v861_v54 = vmul.f32 %v4703_v59, %v514_v55 }
 0x1ec   :  { %v2526_v1 = vadd.f32 -85.45669, %v2398_v28  ;;  %v1631_v48 = vmul.f32 -1.4609046, %v4758_v45  ;;  %3417 = vst [vmem:[#allocation2 + $0x210] sm:$0xff] %v3289_v33  ;;  %v3292_v52 = vadd.f32 1.0, %v3164_v44  ;;  %v864_v2 = vmul.f32 %v4703_v59, %v529_v36 }
 0x1ed   :  { %v3163_v37 = vmul.f32 %v3035_v46, %v4708_v38  ;;  %v2016_v16 = vadd.f32 -26.406752, %v1888_v15  ;;  %v2397_v58 = vmul.f32 %v2269_v17, %v4735_v51  ;;  %v994_v60 = vadd.f32 %v3747_v5, %v862_v49 }
 0x1ee   :  { %v2654_v41 = vmul.f32 %v2526_v1, %v4727_v34  ;;  %v1759_v47 = vadd.f32 7.806575, %v1631_v48  ;;  %3420 = vst [vmem:[#allocation2 + $0x228] sm:$0xff] %v3292_v52  ;;  %v993_v50 = vadd.f32 %v3747_v5, %v861_v54  ;;  %v996_v8 = vadd.f32 %v3747_v5, %v864_v2  ;;  %v534_v54 = vpop.permute.xlu0 %533 }
 0x1ef   :  { %v3291_v62 = vadd.f32 1.0, %v3163_v37  ;;  %v2144_v63 = vmul.f32 %v2016_v16, %v4747_v22  ;;  %v2525_v7 = vadd.f32 -85.45669, %v2397_v58  ;;  %v1122_v61 = vadd.f32 0.5, %v994_v60 }
 0x1f0   :  { %v2782_v38 = vadd.f32 64.93939, %v2654_v41  ;;  %v1887_v4 = vmul.f32 %v1759_v47, %v4758_v45  ;;  %v1121_v12 = vadd.f32 0.5, %v993_v50  ;;  %v863_v11 = vmul.f32 %v4703_v59, %v524_v0 }
 0x1f1   :  { %3419 = vst [vmem:[#allocation2 + $0x220] sm:$0xff] %v3291_v62  ;;  %v2272_v56 = vadd.f32 60.242462, %v2144_v63  ;;  %v2653_v13 = vmul.f32 %v2525_v7, %v4735_v51  ;;  %v1250_v18 = vfloor.f32 %v1122_v61  ;;  %v1124_v19 = vadd.f32 0.5, %v996_v8 }
 0x1f2   :  { %v2910_v14 = vmul.f32 %v2782_v38, %v4727_v34  ;;  %v2015_v6 = vadd.f32 -26.406752, %v1887_v4  ;;  %v1249_v21 = vfloor.f32 %v1121_v12  ;;  %v995_v23 = vadd.f32 %v3747_v5, %v863_v11 }
 0x1f3   :  { %v2400_v57 = vmul.f32 %v2272_v56, %v4747_v22  ;;  %v2781_v26 = vadd.f32 64.93939, %v2653_v13  ;;  %v1378_v20 = vsub.f32 %v994_v60, %v1250_v18  ;;  %v1252_v31 = vfloor.f32 %v1124_v19 }
 0x1f4   :  { %v3038_v9 = vadd.f32 -19.739208, %v2910_v14  ;;  %v2143_v42 = vmul.f32 %v2015_v6, %v4758_v45  ;;  %v1377_v3 = vsub.f32 %v993_v50, %v1249_v21  ;;  %v1123_v24 = vadd.f32 0.5, %v995_v23  ;;  %v549_v6 = vpop.permute.xlu1 %548 }
 0x1f5   :  { %v2528_v30 = vadd.f32 -85.45669, %v2400_v57  ;;  %v2909_v32 = vmul.f32 %v2781_v26, %v4735_v51  ;;  %v4782_v27 = vmul.f32 %v1378_v20, %v1378_v20  ;;  %v1380_v40 = vsub.f32 %v996_v8, %v1252_v31 }
 0x1f6   :  { %v3166_v35 = vmul.f32 %v3038_v9, %v4727_v34  ;;  %v2271_v53 = vadd.f32 60.242462, %v2143_v42  ;;  %v4785_v29 = vmul.f32 %v1377_v3, %v1377_v3  ;;  %v1251_v39 = vfloor.f32 %v1123_v24 }
 0x1f7   :  { %v2656_v55 = vmul.f32 %v2528_v30, %v4747_v22  ;;  %v3037_v28 = vadd.f32 -19.739208, %v2909_v32  ;;  %v1634_v33 = vmul.f32 -1.4609046, %v4782_v27  ;;  %v4790_v46 = vmul.f32 %v1380_v40, %v1380_v40 }
 0x1f8   :  { %v3294_v25 = vadd.f32 1.0, %v3166_v35  ;;  %v2399_v43 = vmul.f32 %v2271_v53, %v4758_v45  ;;  %v1633_v34 = vmul.f32 -1.4609046, %v4785_v29  ;;  %v1379_v15 = vsub.f32 %v995_v23, %v1251_v39 }
 0x1f9   :  { %v2784_v44 = vadd.f32 64.93939, %v2656_v55  ;;  %v3165_v1 = vmul.f32 %v3037_v28, %v4735_v51  ;;  %v1762_v48 = vadd.f32 7.806575, %v1634_v33  ;;  %v866_v49 = vmul.f32 %v4703_v59, %v539_v10  ;;  %v544_v10 = vpop.permute.xlu0 %543 }
 0x1fa   :  { %3422 = vst [vmem:[#allocation2 + $0x238] sm:$0xff] %v3294_v25  ;;  %v2527_v17 = vadd.f32 -85.45669, %v2399_v43  ;;  %v1761_v52 = vadd.f32 7.806575, %v1633_v34  ;;  %v4796_v16 = vmul.f32 %v1379_v15, %v1379_v15  ;;  %v865_v7 = vmul.f32 %v4703_v59, %v534_v54 }
 0x1fb   :  { %v2912_v36 = vmul.f32 %v2784_v44, %v4747_v22  ;;  %v1636_v37 = vmul.f32 -1.4609046, %v4790_v46  ;;  %v3293_v41 = vadd.f32 1.0, %v3165_v1  ;;  %v1890_v47 = vmul.f32 %v1762_v48, %v4782_v27 }
 0x1fc   :  { %v2655_v58 = vmul.f32 %v2527_v17, %v4758_v45  ;;  %v998_v60 = vadd.f32 %v3747_v5, %v866_v49  ;;  %v1889_v0 = vmul.f32 %v1761_v52, %v4785_v29  ;;  %v1635_v63 = vmul.f32 -1.4609046, %v4796_v16 }
 0x1fd   :  { %v3040_v51 = vadd.f32 -19.739208, %v2912_v36  ;;  %v1764_v62 = vadd.f32 7.806575, %v1636_v37  ;;  %3421 = vst [vmem:[#allocation2 + $0x230] sm:$0xff] %v3293_v41  ;;  %v997_v13 = vadd.f32 %v3747_v5, %v865_v7  ;;  %v868_v3 = vmul.f32 %v4703_v59, %v549_v6  ;;  %v559_v6 = vpop.permute.xlu1 %558 }
 0x1fe   :  { %v2783_v50 = vadd.f32 64.93939, %v2655_v58  ;;  %v2018_v2 = vadd.f32 -26.406752, %v1890_v47  ;;  %v1126_v38 = vadd.f32 0.5, %v998_v60  ;;  %v867_v49 = vmul.f32 %v4703_v59, %v544_v10 }
 0x1ff   :  { %v3168_v4 = vmul.f32 %v3040_v51, %v4747_v22  ;;  %v2017_v61 = vadd.f32 -26.406752, %v1889_v0  ;;  %v1892_v56 = vmul.f32 %v1764_v62, %v4790_v46  ;;  %v1763_v12 = vadd.f32 7.806575, %v1635_v63 }
 0x200   :  { %v2911_v8 = vmul.f32 %v2783_v50, %v4758_v45  ;;  %v2146_v11 = vmul.f32 %v2018_v2, %v4782_v27  ;;  %v1254_v14 = vfloor.f32 %v1126_v38  ;;  %v1125_v26 = vadd.f32 0.5, %v997_v13 }
 0x201   :  { %v3296_v18 = vadd.f32 1.0, %v3168_v4  ;;  %v2145_v57 = vmul.f32 %v2017_v61, %v4785_v29  ;;  %v2020_v21 = vadd.f32 -26.406752, %v1892_v56  ;;  %v1891_v19 = vmul.f32 %v1763_v12, %v4796_v16 }
 0x202   :  { %v3039_v23 = vadd.f32 -19.739208, %v2911_v8  ;;  %v2274_v22 = vadd.f32 60.242462, %v2146_v11  ;;  %v1382_v9 = vsub.f32 %v998_v60, %v1254_v14  ;;  %v1253_v32 = vfloor.f32 %v1125_v26 }
 0x203   :  { %3424 = vst [vmem:[#allocation2 + $0x248] sm:$0xff] %v3296_v18  ;;  %v2273_v42 = vadd.f32 60.242462, %v2145_v57  ;;  %v2148_v20 = vmul.f32 %v2020_v21, %v4790_v46  ;;  %v2019_v30 = vadd.f32 -26.406752, %v1891_v19  ;;  %v1000_v39 = vadd.f32 %v3747_v5, %v868_v3 }
 0x204   :  { %v3167_v31 = vmul.f32 %v3039_v23, %v4758_v45  ;;  %v2402_v24 = vmul.f32 %v2274_v22, %v4782_v27  ;;  %v4815_v35 = vmul.f32 %v1382_v9, %v1382_v9  ;;  %v1381_v33 = vsub.f32 %v997_v13, %v1253_v32 }
 0x205   :  { %v2401_v53 = vmul.f32 %v2273_v42, %v4785_v29  ;;  %v2276_v55 = vadd.f32 60.242462, %v2148_v20  ;;  %v2147_v40 = vmul.f32 %v2019_v30, %v4796_v16  ;;  %v1128_v15 = vadd.f32 0.5, %v1000_v39  ;;  %v554_v42 = vpop.permute.xlu0 %553 }
 0x206   :  { %v3295_v25 = vadd.f32 1.0, %v3167_v31  ;;  %v2530_v28 = vadd.f32 -85.45669, %v2402_v24  ;;  %v1638_v43 = vmul.f32 -1.4609046, %v4815_v35  ;;  %v4823_v48 = vmul.f32 %v1381_v33, %v1381_v33  ;;  %v569_v33 = vpop.permute.xlu1 %568 }
 0x207   :  { %v2529_v44 = vadd.f32 -85.45669, %v2401_v53  ;;  %v2404_v45 = vmul.f32 %v2276_v55, %v4790_v46  ;;  %v2275_v34 = vadd.f32 60.242462, %v2147_v40  ;;  %v1256_v54 = vfloor.f32 %v1128_v15 }
 0x208   :  { %3423 = vst [vmem:[#allocation2 + $0x240] sm:$0xff] %v3295_v25  ;;  %v2658_v1 = vmul.f32 %v2530_v28, %v4782_v27  ;;  %v1766_v17 = vadd.f32 7.806575, %v1638_v43  ;;  %v1637_v47 = vmul.f32 -1.4609046, %v4823_v48  ;;  %v999_v60 = vadd.f32 %v3747_v5, %v867_v49 }
 0x209   :  { %v2657_v36 = vmul.f32 %v2529_v44, %v4785_v29  ;;  %v2532_v52 = vadd.f32 -85.45669, %v2404_v45  ;;  %v2403_v37 = vmul.f32 %v2275_v34, %v4796_v16  ;;  %v1384_v63 = vsub.f32 %v1000_v39, %v1256_v54 }
 0x20a   :  { %v2786_v41 = vadd.f32 64.93939, %v2658_v1  ;;  %v1894_v58 = vmul.f32 %v1766_v17, %v4815_v35  ;;  %v1765_v38 = vadd.f32 7.806575, %v1637_v47  ;;  %v1127_v7 = vadd.f32 0.5, %v999_v60 }
 0x20b   :  { %v2785_v51 = vadd.f32 64.93939, %v2657_v36  ;;  %v2660_v0 = vmul.f32 %v2532_v52, %v4790_v46  ;;  %v2531_v62 = vadd.f32 -85.45669, %v2403_v37  ;;  %v4835_v12 = vmul.f32 %v1384_v63, %v1384_v63  ;;  %v564_v36 = vpop.permute.xlu0 %563 }
 0x20c   :  { %v2914_v50 = vmul.f32 %v2786_v41, %v4782_v27  ;;  %v2022_v2 = vadd.f32 -26.406752, %v1894_v58  ;;  %v1893_v14 = vmul.f32 %v1765_v38, %v4823_v48  ;;  %v1255_v13 = vfloor.f32 %v1127_v7 }
 0x20d   :  { %v2913_v4 = vmul.f32 %v2785_v51, %v4785_v29  ;;  %v2788_v61 = vadd.f32 64.93939, %v2660_v0  ;;  %v2659_v56 = vmul.f32 %v2531_v62, %v4796_v16  ;;  %v1640_v19 = vmul.f32 -1.4609046, %v4835_v12 }
 0x20e   :  { %v3042_v8 = vadd.f32 -19.739208, %v2914_v50  ;;  %v2150_v11 = vmul.f32 %v2022_v2, %v4815_v35  ;;  %v2021_v9 = vadd.f32 -26.406752, %v1893_v14  ;;  %v1383_v26 = vsub.f32 %v999_v60, %v1255_v13 }
 0x20f   :  { %v3041_v18 = vadd.f32 -19.739208, %v2913_v4  ;;  %v2916_v57 = vmul.f32 %v2788_v61, %v4790_v46  ;;  %v2787_v21 = vadd.f32 64.93939, %v2659_v56  ;;  %v1768_v31 = vadd.f32 7.806575, %v1640_v19 }
 0x210   :  { %v3170_v23 = vmul.f32 %v3042_v8, %v4782_v27  ;;  %v2278_v22 = vadd.f32 60.242462, %v2150_v11  ;;  %v2149_v53 = vmul.f32 %v2021_v9, %v4823_v48  ;;  %v4846_v55 = vmul.f32 %v1383_v26, %v1383_v26 }
 0x211   :  { %v3169_v20 = vmul.f32 %v3041_v18, %v4785_v29  ;;  %v3044_v30 = vadd.f32 -19.739208, %v2916_v57  ;;  %v2915_v3 = vmul.f32 %v2787_v21, %v4796_v16  ;;  %v1896_v10 = vmul.f32 %v1768_v31, %v4835_v12  ;;  %v579_v31 = vpop.permute.xlu1 %578 }
 0x212   :  { %v3298_v24 = vadd.f32 1.0, %v3170_v23  ;;  %v2406_v32 = vmul.f32 %v2278_v22, %v4815_v35  ;;  %v2277_v29 = vadd.f32 60.242462, %v2149_v53  ;;  %v1639_v28 = vmul.f32 -1.4609046, %v4846_v55 }
 0x213   :  { %v3297_v40 = vadd.f32 1.0, %v3169_v20  ;;  %v3172_v27 = vmul.f32 %v3044_v30, %v4790_v46  ;;  %v3043_v39 = vadd.f32 -19.739208, %v2915_v3  ;;  %v870_v43 = vmul.f32 %v4703_v59, %v559_v6 }
 0x214   :  { %3426 = vst [vmem:[#allocation2 + $0x258] sm:$0xff] %v3298_v24  ;;  %v2534_v25 = vadd.f32 -85.45669, %v2406_v32  ;;  %v2024_v34 = vadd.f32 -26.406752, %v1896_v10  ;;  %v869_v15 = vmul.f32 %v4703_v59, %v554_v42  ;;  %v2405_v1 = vmul.f32 %v2277_v29, %v4823_v48 }
 0x215   :  { %3425 = vst [vmem:[#allocation2 + $0x250] sm:$0xff] %v3297_v40  ;;  %v3300_v44 = vadd.f32 1.0, %v3172_v27  ;;  %v3171_v45 = vmul.f32 %v3043_v39, %v4796_v16  ;;  %v1767_v17 = vadd.f32 7.806575, %v1639_v28  ;;  %v1002_v49 = vadd.f32 %v3747_v5, %v870_v43 }
 0x216   :  { %v2662_v46 = vmul.f32 %v2534_v25, %v4815_v35  ;;  %v2152_v37 = vmul.f32 %v2024_v34, %v4835_v12  ;;  %v1001_v54 = vadd.f32 %v3747_v5, %v869_v15  ;;  %v872_v41 = vmul.f32 %v4703_v59, %v569_v33  ;;  %v574_v15 = vpop.permute.xlu0 %573 }
 0x217   :  { %3428 = vst [vmem:[#allocation2 + $0x268] sm:$0xff] %v3300_v44  ;;  %v3299_v52 = vadd.f32 1.0, %v3171_v45  ;;  %v2533_v58 = vadd.f32 -85.45669, %v2405_v1  ;;  %v1895_v47 = vmul.f32 %v1767_v17, %v4846_v55  ;;  %v1130_v60 = vadd.f32 0.5, %v1002_v49 }
 0x218   :  { %v2790_v16 = vadd.f32 64.93939, %v2662_v46  ;;  %v2280_v51 = vadd.f32 60.242462, %v2152_v37  ;;  %v1129_v0 = vadd.f32 0.5, %v1001_v54  ;;  %v1004_v62 = vadd.f32 %v3747_v5, %v872_v41 }
 0x219   :  { %3427 = vst [vmem:[#allocation2 + $0x260] sm:$0xff] %v3299_v52  ;;  %v871_v63 = vmul.f32 %v4703_v59, %v564_v36  ;;  %v2661_v2 = vmul.f32 %v2533_v58, %v4823_v48  ;;  %v2023_v38 = vadd.f32 -26.406752, %v1895_v47  ;;  %v1258_v7 = vfloor.f32 %v1130_v60 }
 0x21a   :  { %v2918_v50 = vmul.f32 %v2790_v16, %v4815_v35  ;;  %v2408_v4 = vmul.f32 %v2280_v51, %v4835_v12  ;;  %v1257_v61 = vfloor.f32 %v1129_v0  ;;  %v1132_v56 = vadd.f32 0.5, %v1004_v62 }
 0x21b   :  { %v1003_v8 = vadd.f32 %v3747_v5, %v871_v63  ;;  %v2789_v14 = vadd.f32 64.93939, %v2661_v2  ;;  %v2151_v13 = vmul.f32 %v2023_v38, %v4846_v55  ;;  %v1386_v6 = vsub.f32 %v1002_v49, %v1258_v7  ;;  %v589_v38 = vpop.permute.xlu1 %588 }
 0x21c   :  { %v3046_v11 = vadd.f32 -19.739208, %v2918_v50  ;;  %v2536_v18 = vadd.f32 -85.45669, %v2408_v4  ;;  %v1385_v57 = vsub.f32 %v1001_v54, %v1257_v61  ;;  %v1260_v21 = vfloor.f32 %v1132_v56 }
 0x21d   :  { %v1131_v19 = vadd.f32 0.5, %v1003_v8  ;;  %v2917_v22 = vmul.f32 %v2789_v14, %v4823_v48  ;;  %v2279_v9 = vadd.f32 60.242462, %v2151_v13  ;;  %v4870_v26 = vmul.f32 %v1386_v6, %v1386_v6 }
 0x21e   :  { %v3174_v23 = vmul.f32 %v3046_v11, %v4815_v35  ;;  %v2664_v42 = vmul.f32 %v2536_v18, %v4835_v12  ;;  %v4873_v20 = vmul.f32 %v1385_v57, %v1385_v57  ;;  %v1388_v30 = vsub.f32 %v1004_v62, %v1260_v21 }
 0x21f   :  { %v1259_v3 = vfloor.f32 %v1131_v19  ;;  %v3045_v32 = vadd.f32 -19.739208, %v2917_v22  ;;  %v2407_v53 = vmul.f32 %v2279_v9, %v4846_v55  ;;  %v1642_v40 = vmul.f32 -1.4609046, %v4870_v26 }
 0x220   :  { %v3302_v24 = vadd.f32 1.0, %v3174_v23  ;;  %v2792_v27 = vadd.f32 64.93939, %v2664_v42  ;;  %v1641_v35 = vmul.f32 -1.4609046, %v4873_v20  ;;  %v4878_v39 = vmul.f32 %v1388_v30, %v1388_v30 }
 0x221   :  { %v1387_v10 = vsub.f32 %v1003_v8, %v1259_v3  ;;  %v3173_v25 = vmul.f32 %v3045_v32, %v4823_v48  ;;  %v2535_v29 = vadd.f32 -85.45669, %v2407_v53  ;;  %v1770_v28 = vadd.f32 7.806575, %v1642_v40 }
 0x222   :  { %3430 = vst [vmem:[#allocation2 + $0x278] sm:$0xff] %v3302_v24  ;;  %v874_v43 = vmul.f32 %v4703_v59, %v579_v31  ;;  %v2920_v33 = vmul.f32 %v2792_v27, %v4835_v12  ;;  %v1769_v44 = vadd.f32 7.806575, %v1641_v35  ;;  %v1644_v45 = vmul.f32 -1.4609046, %v4878_v39  ;;  %v584_v31 = vpop.permute.xlu0 %583 }
 0x223   :  { %v4884_v34 = vmul.f32 %v1387_v10, %v1387_v10  ;;  %v3301_v46 = vadd.f32 1.0, %v3173_v25  ;;  %v2663_v1 = vmul.f32 %v2535_v29, %v4846_v55  ;;  %v1898_v17 = vmul.f32 %v1770_v28, %v4870_v26 }
 0x224   :  { %v1006_v49 = vadd.f32 %v3747_v5, %v874_v43  ;;  %v3048_v48 = vadd.f32 -19.739208, %v2920_v33  ;;  %v1897_v36 = vmul.f32 %v1769_v44, %v4873_v20  ;;  %v1772_v52 = vadd.f32 7.806575, %v1644_v45 }
 0x225   :  { %v1643_v37 = vmul.f32 -1.4609046, %v4884_v34  ;;  %3429 = vst [vmem:[#allocation2 + $0x270] sm:$0xff] %v3301_v46  ;;  %v2791_v54 = vadd.f32 64.93939, %v2663_v1  ;;  %v873_v58 = vmul.f32 %v4703_v59, %v574_v15  ;;  %v876_v57 = vmul.f32 %v4703_v59, %v589_v38  ;;  %v599_v38 = vpop.permute.xlu1 %598 }
 0x226   :  { %v2026_v41 = vadd.f32 -26.406752, %v1898_v17  ;;  %v1134_v16 = vadd.f32 0.5, %v1006_v49  ;;  %v3176_v47 = vmul.f32 %v3048_v48, %v4835_v12  ;;  %v2025_v60 = vadd.f32 -26.406752, %v1897_v36 }
 0x227   :  { %v1900_v51 = vmul.f32 %v1772_v52, %v4878_v39  ;;  %v1771_v0 = vadd.f32 7.806575, %v1643_v37  ;;  %v2919_v62 = vmul.f32 %v2791_v54, %v4846_v55  ;;  %v1005_v2 = vadd.f32 %v3747_v5, %v873_v58 }
 0x228   :  { %v2154_v63 = vmul.f32 %v2026_v41, %v4870_v26  ;;  %v1262_v50 = vfloor.f32 %v1134_v16  ;;  %v3304_v7 = vadd.f32 1.0, %v3176_v47  ;;  %v2153_v4 = vmul.f32 %v2025_v60, %v4873_v20 }
 0x229   :  { %v2028_v61 = vadd.f32 -26.406752, %v1900_v51  ;;  %v1899_v56 = vmul.f32 %v1771_v0, %v4884_v34  ;;  %v3047_v8 = vadd.f32 -19.739208, %v2919_v62  ;;  %v1133_v14 = vadd.f32 0.5, %v1005_v2 }
 0x22a   :  { %v2282_v12 = vadd.f32 60.242462, %v2154_v63  ;;  %v1390_v11 = vsub.f32 %v1006_v49, %v1262_v50  ;;  %3432 = vst [vmem:[#allocation2 + $0x288] sm:$0xff] %v3304_v7  ;;  %v2281_v13 = vadd.f32 60.242462, %v2153_v4  ;;  %v1008_v3 = vadd.f32 %v3747_v5, %v876_v57 }
 0x22b   :  { %v2156_v6 = vmul.f32 %v2028_v61, %v4878_v39  ;;  %v2027_v18 = vadd.f32 -26.406752, %v1899_v56  ;;  %v3175_v21 = vmul.f32 %v3047_v8, %v4846_v55  ;;  %v1261_v22 = vfloor.f32 %v1133_v14 }
 0x22c   :  { %v2410_v19 = vmul.f32 %v2282_v12, %v4870_v26  ;;  %v4903_v23 = vmul.f32 %v1390_v11, %v1390_v11  ;;  %v2409_v9 = vmul.f32 %v2281_v13, %v4873_v20  ;;  %v1136_v10 = vadd.f32 0.5, %v1008_v3  ;;  %v594_v13 = vpop.permute.xlu0 %593 }
 0x22d   :  { %v2284_v42 = vadd.f32 60.242462, %v2156_v6  ;;  %v2155_v30 = vmul.f32 %v2027_v18, %v4884_v34  ;;  %v3303_v24 = vadd.f32 1.0, %v3175_v21  ;;  %v1389_v40 = vsub.f32 %v1005_v2, %v1261_v22 }
 0x22e   :  { %v2538_v32 = vadd.f32 -85.45669, %v2410_v19  ;;  %v1646_v53 = vmul.f32 -1.4609046, %v4903_v23  ;;  %v2537_v27 = vadd.f32 -85.45669, %v2409_v9  ;;  %v875_v43 = vmul.f32 %v4703_v59, %v584_v31 }
 0x22f   :  { %v2412_v55 = vmul.f32 %v2284_v42, %v4878_v39  ;;  %v2283_v35 = vadd.f32 60.242462, %v2155_v30  ;;  %3431 = vst [vmem:[#allocation2 + $0x280] sm:$0xff] %v3303_v24  ;;  %v4911_v28 = vmul.f32 %v1389_v40, %v1389_v40  ;;  %v1264_v15 = vfloor.f32 %v1136_v10  ;;  %v609_v40 = vpop.permute.xlu1 %608 }
 0x230   :  { %v2666_v25 = vmul.f32 %v2538_v32, %v4870_v26  ;;  %v1774_v29 = vadd.f32 7.806575, %v1646_v53  ;;  %v2665_v33 = vmul.f32 %v2537_v27, %v4873_v20  ;;  %v1007_v49 = vadd.f32 %v3747_v5, %v875_v43 }
 0x231   :  { %v2540_v44 = vadd.f32 -85.45669, %v2412_v55  ;;  %v2411_v45 = vmul.f32 %v2283_v35, %v4884_v34  ;;  %v1645_v17 = vmul.f32 -1.4609046, %v4911_v28  ;;  %v1392_v37 = vsub.f32 %v1008_v3, %v1264_v15 }
 0x232   :  { %v2794_v46 = vadd.f32 64.93939, %v2666_v25  ;;  %v1902_v1 = vmul.f32 %v1774_v29, %v4903_v23  ;;  %v2793_v48 = vadd.f32 64.93939, %v2665_v33  ;;  %v1135_v58 = vadd.f32 0.5, %v1007_v49  ;;  %v604_v33 = vpop.permute.xlu0 %603 }
 0x233   :  { %v2668_v36 = vmul.f32 %v2540_v44, %v4878_v39  ;;  %v2539_v52 = vadd.f32 -85.45669, %v2411_v45  ;;  %v1773_v16 = vadd.f32 7.806575, %v1645_v17  ;;  %v4923_v0 = vmul.f32 %v1392_v37, %v1392_v37 }
 0x234   :  { %v2922_v54 = vmul.f32 %v2794_v46, %v4870_v26  ;;  %v2030_v41 = vadd.f32 -26.406752, %v1902_v1  ;;  %v2921_v47 = vmul.f32 %v2793_v48, %v4873_v20  ;;  %v1263_v2 = vfloor.f32 %v1135_v58 }
 0x235   :  { %v2796_v60 = vadd.f32 64.93939, %v2668_v36  ;;  %v2667_v51 = vmul.f32 %v2539_v52, %v4884_v34  ;;  %v1901_v50 = vmul.f32 %v1773_v16, %v4911_v28  ;;  %v1648_v56 = vmul.f32 -1.4609046, %v4923_v0 }
 0x236   :  { %v3050_v62 = vadd.f32 -19.739208, %v2922_v54  ;;  %v2158_v63 = vmul.f32 %v2030_v41, %v4903_v23  ;;  %v3049_v7 = vadd.f32 -19.739208, %v2921_v47  ;;  %v1391_v14 = vsub.f32 %v1007_v49, %v1263_v2 }
 0x237   :  { %v2924_v4 = vmul.f32 %v2796_v60, %v4878_v39  ;;  %v2795_v61 = vadd.f32 64.93939, %v2667_v51  ;;  %v2029_v11 = vadd.f32 -26.406752, %v1901_v50  ;;  %v1776_v21 = vadd.f32 7.806575, %v1648_v56 }
 0x238   :  { %v3178_v8 = vmul.f32 %v3050_v62, %v4870_v26  ;;  %v2286_v12 = vadd.f32 60.242462, %v2158_v63  ;;  %v3177_v6 = vmul.f32 %v3049_v7, %v4873_v20  ;;  %v4934_v42 = vmul.f32 %v1391_v14, %v1391_v14 }
 0x239   :  { %v3052_v18 = vadd.f32 -19.739208, %v2924_v4  ;;  %v2923_v57 = vmul.f32 %v2795_v61, %v4884_v34  ;;  %v2157_v9 = vmul.f32 %v2029_v11, %v4911_v28  ;;  %v1904_v31 = vmul.f32 %v1776_v21, %v4923_v0 }
 0x23a   :  { %v3306_v19 = vadd.f32 1.0, %v3178_v8  ;;  %v2414_v22 = vmul.f32 %v2286_v12, %v4903_v23  ;;  %v3305_v30 = vadd.f32 1.0, %v3177_v6  ;;  %v1647_v32 = vmul.f32 -1.4609046, %v4934_v42 }
 0x23b   :  { %v3180_v26 = vmul.f32 %v3052_v18, %v4878_v39  ;;  %v3051_v3 = vadd.f32 -19.739208, %v2923_v57  ;;  %v2285_v20 = vadd.f32 60.242462, %v2157_v9  ;;  %v878_v53 = vmul.f32 %v4703_v59, %v599_v38  ;;  %v619_v57 = vpop.permute.xlu1 %618 }
 0x23c   :  { %3434 = vst [vmem:[#allocation2 + $0x298] sm:$0xff] %v3306_v19  ;;  %v2542_v24 = vadd.f32 -85.45669, %v2414_v22  ;;  %3433 = vst [vmem:[#allocation2 + $0x290] sm:$0xff] %v3305_v30  ;;  %v2032_v35 = vadd.f32 -26.406752, %v1904_v31  ;;  %v877_v10 = vmul.f32 %v4703_v59, %v594_v13  ;;  %v880_v46 = vmul.f32 %v4703_v59, %v609_v40 }
 0x23d   :  { %v3308_v27 = vadd.f32 1.0, %v3180_v26  ;;  %v3179_v55 = vmul.f32 %v3051_v3, %v4884_v34  ;;  %v2413_v25 = vmul.f32 %v2285_v20, %v4911_v28  ;;  %v1775_v29 = vadd.f32 7.806575, %v1647_v32  ;;  %v4972_v32 = vld [vmem:[%s5381_s1] ss:$0 sm:$0xff] }
 0x23e   :  { %v2670_v39 = vmul.f32 %v2542_v24, %v4903_v23  ;;  %v1010_v43 = vadd.f32 %v3747_v5, %v878_v53  ;;  %v2160_v45 = vmul.f32 %v2032_v35, %v4923_v0  ;;  %v1009_v15 = vadd.f32 %v3747_v5, %v877_v10  ;;  %v614_v10 = vpop.permute.xlu0 %613 }
 0x23f   :  { %3436 = vst [vmem:[#allocation2 + $0x2a8] sm:$0xff] %v3308_v27  ;;  %v3307_v44 = vadd.f32 1.0, %v3179_v55  ;;  %v2541_v1 = vadd.f32 -85.45669, %v2413_v25  ;;  %v1903_v17 = vmul.f32 %v1775_v29, %v4934_v42  ;;  %v1012_v52 = vadd.f32 %v3747_v5, %v880_v46 }
 0x240   :  { %v2798_v34 = vadd.f32 64.93939, %v2670_v39  ;;  %v1138_v49 = vadd.f32 0.5, %v1010_v43  ;;  %v2288_v48 = vadd.f32 60.242462, %v2160_v45  ;;  %v1137_v36 = vadd.f32 0.5, %v1009_v15 }
 0x241   :  { %3435 = vst [vmem:[#allocation2 + $0x2a0] sm:$0xff] %v3307_v44  ;;  %v879_v37 = vmul.f32 %v4703_v59, %v604_v33  ;;  %v2669_v41 = vmul.f32 %v2541_v1, %v4911_v28  ;;  %v2031_v16 = vadd.f32 -26.406752, %v1903_v17  ;;  %v1140_v51 = vadd.f32 0.5, %v1012_v52 }
 0x242   :  { %v2926_v54 = vmul.f32 %v2798_v34, %v4903_v23  ;;  %v1266_v58 = vfloor.f32 %v1138_v49  ;;  %v2416_v47 = vmul.f32 %v2288_v48, %v4923_v0  ;;  %v1265_v60 = vfloor.f32 %v1137_v36 }
 0x243   :  { %v1011_v62 = vadd.f32 %v3747_v5, %v879_v37  ;;  %v2797_v50 = vadd.f32 64.93939, %v2669_v41  ;;  %v2159_v2 = vmul.f32 %v2031_v16, %v4934_v42  ;;  %v1268_v59 = vfloor.f32 %v1140_v51  ;;  %v629_v16 = vpop.permute.xlu1 %628 }
 0x244   :  { %v3054_v63 = vadd.f32 -19.739208, %v2926_v54  ;;  %v1394_v38 = vsub.f32 %v1010_v43, %v1266_v58  ;;  %v2544_v7 = vadd.f32 -85.45669, %v2416_v47  ;;  %v1393_v4 = vsub.f32 %v1009_v15, %v1265_v60 }
 0x245   :  { %v1139_v61 = vadd.f32 0.5, %v1011_v62  ;;  %v2925_v8 = vmul.f32 %v2797_v50, %v4911_v28  ;;  %v2287_v12 = vadd.f32 60.242462, %v2159_v2  ;;  %v1396_v6 = vsub.f32 %v1012_v52, %v1268_v59 }
 0x246   :  { %v3182_v56 = vmul.f32 %v3054_v63, %v4903_v23  ;;  %v4958_v11 = vmul.f32 %v1394_v38, %v1394_v38  ;;  %v2672_v14 = vmul.f32 %v2544_v7, %v4923_v0  ;;  %v4961_v13 = vmul.f32 %v1393_v4, %v1393_v4 }
 0x247   :  { %v1267_v18 = vfloor.f32 %v1139_v61  ;;  %v3053_v19 = vadd.f32 -19.739208, %v2925_v8  ;;  %v2415_v22 = vmul.f32 %v2287_v12, %v4934_v42  ;;  %v4966_v26 = vmul.f32 %v1396_v6, %v1396_v6 }
 0x248   :  { %v3310_v21 = vadd.f32 1.0, %v3182_v56  ;;  %v1650_v9 = vmul.f32 -1.4609046, %v4958_v11  ;;  %v2800_v30 = vadd.f32 64.93939, %v2672_v14  ;;  %v882_v53 = vmul.f32 %v4972_v32, %v619_v57  ;;  %v624_v57 = vpop.permute.xlu0 %623 }
 0x249   :  { %v1649_v23 = vmul.f32 -1.4609046, %v4961_v13  ;;  %v1395_v3 = vsub.f32 %v1011_v62, %v1267_v18  ;;  %v3181_v31 = vmul.f32 %v3053_v19, %v4911_v28  ;;  %v2543_v24 = vadd.f32 -85.45669, %v2415_v22 }
 0x24a   :  { %3438 = vst [vmem:[#allocation2 + $0x2b8] sm:$0xff] %v3310_v21  ;;  %v1778_v20 = vadd.f32 7.806575, %v1650_v9  ;;  %v2928_v40 = vmul.f32 %v2800_v30, %v4923_v0  ;;  %v1652_v55 = vmul.f32 -1.4609046, %v4966_v26  ;;  %v1014_v29 = vadd.f32 %v3747_v5, %v882_v53 }
 0x24b   :  { %v1777_v27 = vadd.f32 7.806575, %v1649_v23  ;;  %v4977_v35 = vmul.f32 %v1395_v3, %v1395_v3  ;;  %v3309_v39 = vadd.f32 1.0, %v3181_v31  ;;  %v2671_v28 = vmul.f32 %v2543_v24, %v4934_v42 }
 0x24c   :  { %v1906_v25 = vmul.f32 %v1778_v20, %v4958_v11  ;;  %v3056_v43 = vadd.f32 -19.739208, %v2928_v40  ;;  %v1780_v44 = vadd.f32 7.806575, %v1652_v55  ;;  %v1142_v34 = vadd.f32 0.5, %v1014_v29 }
 0x24d   :  { %v1905_v33 = vmul.f32 %v1777_v27, %v4961_v13  ;;  %v1651_v45 = vmul.f32 -1.4609046, %v4977_v35  ;;  %3437 = vst [vmem:[#allocation2 + $0x2b0] sm:$0xff] %v3309_v39  ;;  %v2799_v15 = vadd.f32 64.93939, %v2671_v28  ;;  %v881_v1 = vmul.f32 %v4972_v32, %v614_v10 }
 0x24e   :  { %v2034_v46 = vadd.f32 -26.406752, %v1906_v25  ;;  %v3184_v17 = vmul.f32 %v3056_v43, %v4923_v0  ;;  %v1908_v48 = vmul.f32 %v1780_v44, %v4966_v26  ;;  %v1270_v54 = vfloor.f32 %v1142_v34 }
 0x24f   :  { %v2033_v49 = vadd.f32 -26.406752, %v1905_v33  ;;  %v1779_v36 = vadd.f32 7.806575, %v1651_v45  ;;  %v2927_v52 = vmul.f32 %v2799_v15, %v4934_v42  ;;  %v1013_v41 = vadd.f32 %v3747_v5, %v881_v1 }
 0x250   :  { %v2162_v37 = vmul.f32 %v2034_v46, %v4958_v11  ;;  %v3312_v58 = vadd.f32 1.0, %v3184_v17  ;;  %v2036_v60 = vadd.f32 -26.406752, %v1908_v48  ;;  %v1398_v63 = vsub.f32 %v1014_v29, %v1270_v54 }
 0x251   :  { %v2161_v47 = vmul.f32 %v2033_v49, %v4961_v13  ;;  %v1907_v51 = vmul.f32 %v1779_v36, %v4977_v35  ;;  %v3055_v62 = vadd.f32 -19.739208, %v2927_v52  ;;  %v1141_v50 = vadd.f32 0.5, %v1013_v41 }
 0x252   :  { %v2290_v0 = vadd.f32 60.242462, %v2162_v37  ;;  %3440 = vst [vmem:[#allocation2 + $0x2c8] sm:$0xff] %v3312_v58  ;;  %v2164_v38 = vmul.f32 %v2036_v60, %v4966_v26  ;;  %v884_v4 = vmul.f32 %v4972_v32, %v629_v16  ;;  %v4996_v56 = vmul.f32 %v1398_v63, %v1398_v63  ;;  %v639_v16 = vpop.permute.xlu1 %638 }
 0x253   :  { %v2289_v2 = vadd.f32 60.242462, %v2161_v47  ;;  %v2035_v7 = vadd.f32 -26.406752, %v1907_v51  ;;  %v3183_v59 = vmul.f32 %v3055_v62, %v4934_v42  ;;  %v1269_v8 = vfloor.f32 %v1141_v50 }
 0x254   :  { %v2418_v61 = vmul.f32 %v2290_v0, %v4958_v11  ;;  %v2292_v14 = vadd.f32 60.242462, %v2164_v38  ;;  %v1016_v18 = vadd.f32 %v3747_v5, %v884_v4  ;;  %v1654_v22 = vmul.f32 -1.4609046, %v4996_v56 }
 0x255   :  { %v2417_v12 = vmul.f32 %v2289_v2, %v4961_v13  ;;  %v2163_v6 = vmul.f32 %v2035_v7, %v4977_v35  ;;  %v3311_v21 = vadd.f32 1.0, %v3183_v59  ;;  %v1397_v9 = vsub.f32 %v1013_v41, %v1269_v8  ;;  %v634_v2 = vpop.permute.xlu0 %633 }
 0x256   :  { %v2546_v19 = vadd.f32 -85.45669, %v2418_v61  ;;  %v2420_v42 = vmul.f32 %v2292_v14, %v4966_v26  ;;  %v1144_v3 = vadd.f32 0.5, %v1016_v18  ;;  %v1782_v24 = vadd.f32 7.806575, %v1654_v22 }
 0x257   :  { %v2545_v30 = vadd.f32 -85.45669, %v2417_v12  ;;  %v2291_v23 = vadd.f32 60.242462, %v2163_v6  ;;  %3439 = vst [vmem:[#allocation2 + $0x2c0] sm:$0xff] %v3311_v21  ;;  %v5004_v20 = vmul.f32 %v1397_v9, %v1397_v9  ;;  %v883_v53 = vmul.f32 %v4972_v32, %v624_v57  ;;  %v649_v9 = vpop.permute.xlu1 %648 }
 0x258   :  { %v2674_v31 = vmul.f32 %v2546_v19, %v4958_v11  ;;  %v2548_v27 = vadd.f32 -85.45669, %v2420_v42  ;;  %v1272_v10 = vfloor.f32 %v1144_v3  ;;  %v1910_v28 = vmul.f32 %v1782_v24, %v4996_v56 }
 0x259   :  { %v2673_v40 = vmul.f32 %v2545_v30, %v4961_v13  ;;  %v2419_v55 = vmul.f32 %v2291_v23, %v4977_v35  ;;  %v1653_v25 = vmul.f32 -1.4609046, %v5004_v20  ;;  %v1015_v29 = vadd.f32 %v3747_v5, %v883_v53 }
 0x25a   :  { %v2802_v39 = vadd.f32 64.93939, %v2674_v31  ;;  %v2676_v33 = vmul.f32 %v2548_v27, %v4966_v26  ;;  %v1400_v45 = vsub.f32 %v1016_v18, %v1272_v10  ;;  %v2038_v46 = vadd.f32 -26.406752, %v1910_v28 }
 0x25b   :  { %v2801_v43 = vadd.f32 64.93939, %v2673_v40  ;;  %v2547_v44 = vadd.f32 -85.45669, %v2419_v55  ;;  %v1781_v34 = vadd.f32 7.806575, %v1653_v25  ;;  %v886_v22 = vmul.f32 %v4972_v32, %v639_v16  ;;  %v644_v40 = vpop.permute.xlu0 %643 }
 0x25c   :  { %v2930_v15 = vmul.f32 %v2802_v39, %v4958_v11  ;;  %v1143_v1 = vadd.f32 0.5, %v1015_v29  ;;  %v2804_v49 = vadd.f32 64.93939, %v2676_v33  ;;  %v5016_v36 = vmul.f32 %v1400_v45, %v1400_v45 }
 0x25d   :  { %v2929_v17 = vmul.f32 %v2801_v43, %v4961_v13  ;;  %v2675_v48 = vmul.f32 %v2547_v44, %v4977_v35  ;;  %v2166_v37 = vmul.f32 %v2038_v46, %v4996_v56  ;;  %v1909_v54 = vmul.f32 %v1781_v34, %v5004_v20 }
 0x25e   :  { %v3058_v52 = vadd.f32 -19.739208, %v2930_v15  ;;  %v1271_v41 = vfloor.f32 %v1143_v1  ;;  %v2932_v47 = vmul.f32 %v2804_v49, %v4966_v26  ;;  %v1656_v51 = vmul.f32 -1.4609046, %v5016_v36 }
 0x25f   :  { %v3057_v58 = vadd.f32 -19.739208, %v2929_v17  ;;  %v2803_v60 = vadd.f32 64.93939, %v2675_v48  ;;  %v2294_v0 = vadd.f32 60.242462, %v2166_v37  ;;  %v885_v3 = vmul.f32 %v4972_v32, %v634_v2 }
 0x260   :  { %v3186_v62 = vmul.f32 %v3058_v52, %v4958_v11  ;;  %v2037_v63 = vadd.f32 -26.406752, %v1909_v54  ;;  %v1399_v50 = vsub.f32 %v1015_v29, %v1271_v41  ;;  %v3060_v7 = vadd.f32 -19.739208, %v2932_v47 }
 0x261   :  { %v3185_v38 = vmul.f32 %v3057_v58, %v4961_v13  ;;  %v2931_v4 = vmul.f32 %v2803_v60, %v4977_v35  ;;  %v1784_v59 = vadd.f32 7.806575, %v1656_v51  ;;  %v2422_v8 = vmul.f32 %v2294_v0, %v4996_v56 }
 0x262   :  { %v3314_v61 = vadd.f32 1.0, %v3186_v62  ;;  %v2165_v12 = vmul.f32 %v2037_v63, %v5004_v20  ;;  %v5027_v14 = vmul.f32 %v1399_v50, %v1399_v50  ;;  %v3188_v11 = vmul.f32 %v3060_v7, %v4966_v26 }
 0x263   :  { %v3313_v6 = vadd.f32 1.0, %v3185_v38  ;;  %v3059_v18 = vadd.f32 -19.739208, %v2931_v4  ;;  %v1912_v57 = vmul.f32 %v1784_v59, %v5016_v36  ;;  %v2550_v21 = vadd.f32 -85.45669, %v2422_v8  ;;  %v659_v59 = vpop.permute.xlu1 %658 }
 0x264   :  { %3442 = vst [vmem:[#allocation2 + $0x2d8] sm:$0xff] %v3314_v61  ;;  %v2293_v13 = vadd.f32 60.242462, %v2165_v12  ;;  %v1655_v19 = vmul.f32 -1.4609046, %v5027_v14  ;;  %v3316_v30 = vadd.f32 1.0, %v3188_v11  ;;  %v1018_v53 = vadd.f32 %v3747_v5, %v886_v22 }
 0x265   :  { %3441 = vst [vmem:[#allocation2 + $0x2d0] sm:$0xff] %v3313_v6  ;;  %v3187_v42 = vmul.f32 %v3059_v18, %v4977_v35  ;;  %v2040_v23 = vadd.f32 -26.406752, %v1912_v57  ;;  %v2678_v26 = vmul.f32 %v2550_v21, %v4996_v56  ;;  %v1017_v10 = vadd.f32 %v3747_v5, %v885_v3  ;;  %v654_v3 = vpop.permute.xlu0 %653 }
 0x266   :  { %v2421_v31 = vmul.f32 %v2293_v13, %v5004_v20  ;;  %v1783_v24 = vadd.f32 7.806575, %v1655_v19  ;;  %3444 = vst [vmem:[#allocation2 + $0x2e8] sm:$0xff] %v3316_v30  ;;  %v888_v39 = vmul.f32 %v4972_v32, %v649_v9  ;;  %v1146_v29 = vadd.f32 0.5, %v1018_v53 }
 0x267   :  { %v3315_v27 = vadd.f32 1.0, %v3187_v42  ;;  %v2168_v55 = vmul.f32 %v2040_v23, %v5016_v36  ;;  %v2806_v35 = vadd.f32 64.93939, %v2678_v26  ;;  %v1145_v33 = vadd.f32 0.5, %v1017_v10 }
 0x268   :  { %v2549_v28 = vadd.f32 -85.45669, %v2421_v31  ;;  %v1911_v25 = vmul.f32 %v1783_v24, %v5027_v14  ;;  %v1020_v44 = vadd.f32 %v3747_v5, %v888_v39  ;;  %v887_v45 = vmul.f32 %v4972_v32, %v644_v40 }
 0x269   :  { %3443 = vst [vmem:[#allocation2 + $0x2e0] sm:$0xff] %v3315_v27  ;;  %v2296_v43 = vadd.f32 60.242462, %v2168_v55  ;;  %v2934_v15 = vmul.f32 %v2806_v35, %v4996_v56  ;;  %v1274_v1 = vfloor.f32 %v1146_v29  ;;  %v1273_v49 = vfloor.f32 %v1145_v33 }
 0x26a   :  { %v2677_v46 = vmul.f32 %v2549_v28, %v5004_v20  ;;  %v2039_v34 = vadd.f32 -26.406752, %v1911_v25  ;;  %v1148_v48 = vadd.f32 0.5, %v1020_v44  ;;  %v1019_v52 = vadd.f32 %v3747_v5, %v887_v45 }
 0x26b   :  { %v2424_v17 = vmul.f32 %v2296_v43, %v5016_v36  ;;  %v3062_v37 = vadd.f32 -19.739208, %v2934_v15  ;;  %v1402_v16 = vsub.f32 %v1018_v53, %v1274_v1  ;;  %v1401_v47 = vsub.f32 %v1017_v10, %v1273_v49 }
 0x26c   :  { %v2805_v54 = vadd.f32 64.93939, %v2677_v46  ;;  %v2167_v41 = vmul.f32 %v2039_v34, %v5027_v14  ;;  %v1276_v60 = vfloor.f32 %v1148_v48  ;;  %v1147_v51 = vadd.f32 0.5, %v1019_v52  ;;  %v669_v34 = vpop.permute.xlu1 %668 }
 0x26d   :  { %v2552_v58 = vadd.f32 -85.45669, %v2424_v17  ;;  %v3190_v62 = vmul.f32 %v3062_v37, %v4996_v56  ;;  %v5051_v50 = vmul.f32 %v1402_v16, %v1402_v16  ;;  %v5054_v38 = vmul.f32 %v1401_v47, %v1401_v47 }
 0x26e   :  { %v2933_v0 = vmul.f32 %v2805_v54, %v5004_v20  ;;  %v2295_v63 = vadd.f32 60.242462, %v2167_v41  ;;  %v1404_v7 = vsub.f32 %v1020_v44, %v1276_v60  ;;  %v1275_v4 = vfloor.f32 %v1147_v51 }
 0x26f   :  { %v2680_v2 = vmul.f32 %v2552_v58, %v5016_v36  ;;  %v3318_v61 = vadd.f32 1.0, %v3190_v62  ;;  %v1658_v6 = vmul.f32 -1.4609046, %v5051_v50  ;;  %v1657_v56 = vmul.f32 -1.4609046, %v5054_v38 }
 0x270   :  { %v3061_v8 = vadd.f32 -19.739208, %v2933_v0  ;;  %v2423_v12 = vmul.f32 %v2295_v63, %v5027_v14  ;;  %v5059_v18 = vmul.f32 %v1404_v7, %v1404_v7  ;;  %v1403_v57 = vsub.f32 %v1019_v52, %v1275_v4 }
 0x271   :  { %v2808_v11 = vadd.f32 64.93939, %v2680_v2  ;;  %3446 = vst [vmem:[#allocation2 + $0x2f8] sm:$0xff] %v3318_v61  ;;  %v1786_v19 = vadd.f32 7.806575, %v1658_v6  ;;  %v890_v22 = vmul.f32 %v4972_v32, %v659_v59  ;;  %v889_v28 = vmul.f32 %v4972_v32, %v654_v3  ;;  %v664_v59 = vpop.permute.xlu0 %663 }
 0x272   :  { %v3189_v21 = vmul.f32 %v3061_v8, %v5004_v20  ;;  %v2551_v13 = vadd.f32 -85.45669, %v2423_v12  ;;  %v1785_v30 = vadd.f32 7.806575, %v1657_v56  ;;  %v1660_v42 = vmul.f32 -1.4609046, %v5059_v18 }
 0x273   :  { %v2936_v9 = vmul.f32 %v2808_v11, %v5016_v36  ;;  %v5065_v23 = vmul.f32 %v1403_v57, %v1403_v57  ;;  %v1914_v24 = vmul.f32 %v1786_v19, %v5051_v50  ;;  %v1022_v53 = vadd.f32 %v3747_v5, %v890_v22 }
 0x274   :  { %v3317_v26 = vadd.f32 1.0, %v3189_v21  ;;  %v2679_v31 = vmul.f32 %v2551_v13, %v5027_v14  ;;  %v1913_v40 = vmul.f32 %v1785_v30, %v5054_v38  ;;  %v1788_v27 = vadd.f32 7.806575, %v1660_v42 }
 0x275   :  { %v3064_v20 = vadd.f32 -19.739208, %v2936_v9  ;;  %v1659_v55 = vmul.f32 -1.4609046, %v5065_v23  ;;  %v2042_v39 = vadd.f32 -26.406752, %v1914_v24  ;;  %v1021_v46 = vadd.f32 %v3747_v5, %v889_v28 }
 0x276   :  { %3445 = vst [vmem:[#allocation2 + $0x2f0] sm:$0xff] %v3317_v26  ;;  %v2807_v10 = vadd.f32 64.93939, %v2679_v31  ;;  %v1150_v35 = vadd.f32 0.5, %v1022_v53  ;;  %v2041_v29 = vadd.f32 -26.406752, %v1913_v40  ;;  %v1916_v43 = vmul.f32 %v1788_v27, %v5059_v18 }
 0x277   :  { %v3192_v25 = vmul.f32 %v3064_v20, %v5016_v36  ;;  %v1787_v33 = vadd.f32 7.806575, %v1659_v55  ;;  %v2170_v45 = vmul.f32 %v2042_v39, %v5051_v50  ;;  %v1149_v54 = vadd.f32 0.5, %v1021_v46 }
 0x278   :  { %v2935_v44 = vmul.f32 %v2807_v10, %v5027_v14  ;;  %v1278_v15 = vfloor.f32 %v1150_v35  ;;  %v2169_v17 = vmul.f32 %v2041_v29, %v5054_v38  ;;  %v2044_v49 = vadd.f32 -26.406752, %v1916_v43 }
 0x279   :  { %v3320_v1 = vadd.f32 1.0, %v3192_v25  ;;  %v1915_v48 = vmul.f32 %v1787_v33, %v5065_v23  ;;  %v2298_v36 = vadd.f32 60.242462, %v2170_v45  ;;  %v892_v47 = vmul.f32 %v4972_v32, %v669_v34  ;;  %v679_v34 = vpop.permute.xlu1 %678 }
 0x27a   :  { %v3063_v52 = vadd.f32 -19.739208, %v2935_v44  ;;  %v1406_v37 = vsub.f32 %v1022_v53, %v1278_v15  ;;  %v2297_v41 = vadd.f32 60.242462, %v2169_v17  ;;  %v2172_v16 = vmul.f32 %v2044_v49, %v5059_v18 }
 0x27b   :  { %3448 = vst [vmem:[#allocation2 + $0x308] sm:$0xff] %v3320_v1  ;;  %v2043_v58 = vadd.f32 -26.406752, %v1915_v48  ;;  %v2426_v51 = vmul.f32 %v2298_v36, %v5051_v50  ;;  %v1277_v0 = vfloor.f32 %v1149_v54  ;;  %v1024_v4 = vadd.f32 %v3747_v5, %v892_v47 }
 0x27c   :  { %v3191_v60 = vmul.f32 %v3063_v52, %v5027_v14  ;;  %v5084_v62 = vmul.f32 %v1406_v37, %v1406_v37  ;;  %v2425_v63 = vmul.f32 %v2297_v41, %v5054_v38  ;;  %v2300_v2 = vadd.f32 60.242462, %v2172_v16  ;;  %v674_v41 = vpop.permute.xlu0 %673 }
 0x27d   :  { %v2171_v7 = vmul.f32 %v2043_v58, %v5065_v23  ;;  %v2554_v8 = vadd.f32 -85.45669, %v2426_v51  ;;  %v1405_v6 = vsub.f32 %v1021_v46, %v1277_v0  ;;  %v1152_v57 = vadd.f32 0.5, %v1024_v4 }
 0x27e   :  { %v3319_v61 = vadd.f32 1.0, %v3191_v60  ;;  %v1662_v12 = vmul.f32 -1.4609046, %v5084_v62  ;;  %v2553_v11 = vadd.f32 -85.45669, %v2425_v63  ;;  %v2428_v14 = vmul.f32 %v2300_v2, %v5059_v18 }
 0x27f   :  { %v2299_v56 = vadd.f32 60.242462, %v2171_v7  ;;  %v2682_v21 = vmul.f32 %v2554_v8, %v5051_v50  ;;  %v5092_v19 = vmul.f32 %v1405_v6, %v1405_v6  ;;  %v891_v22 = vmul.f32 %v4972_v32, %v664_v59  ;;  %v689_v6 = vpop.permute.xlu1 %688 }
 0x280   :  { %3447 = vst [vmem:[#allocation2 + $0x300] sm:$0xff] %v3319_v61  ;;  %v1790_v13 = vadd.f32 7.806575, %v1662_v12  ;;  %v2681_v9 = vmul.f32 %v2553_v11, %v5054_v38  ;;  %v2556_v30 = vadd.f32 -85.45669, %v2428_v14  ;;  %v1280_v3 = vfloor.f32 %v1152_v57 }
 0x281   :  { %v2427_v42 = vmul.f32 %v2299_v56, %v5065_v23  ;;  %v2810_v26 = vadd.f32 64.93939, %v2682_v21  ;;  %v1661_v24 = vmul.f32 -1.4609046, %v5092_v19  ;;  %v1023_v53 = vadd.f32 %v3747_v5, %v891_v22 }
 0x282   :  { %v1918_v31 = vmul.f32 %v1790_v13, %v5084_v62  ;;  %v2809_v20 = vadd.f32 64.93939, %v2681_v9  ;;  %v2684_v40 = vmul.f32 %v2556_v30, %v5059_v18  ;;  %v1408_v55 = vsub.f32 %v1024_v4, %v1280_v3  ;;  %v684_v9 = vpop.permute.xlu0 %683 }
 0x283   :  { %v2555_v27 = vadd.f32 -85.45669, %v2427_v42  ;;  %v2938_v10 = vmul.f32 %v2810_v26, %v5051_v50  ;;  %v1789_v35 = vadd.f32 7.806575, %v1661_v24  ;;  %v1151_v28 = vadd.f32 0.5, %v1023_v53 }
 0x284   :  { %v2046_v39 = vadd.f32 -26.406752, %v1918_v31  ;;  %v2937_v25 = vmul.f32 %v2809_v20, %v5054_v38  ;;  %v2812_v29 = vadd.f32 64.93939, %v2684_v40  ;;  %v5104_v33 = vmul.f32 %v1408_v55, %v1408_v55 }
 0x285   :  { %v2683_v43 = vmul.f32 %v2555_v27, %v5065_v23  ;;  %v3066_v44 = vadd.f32 -19.739208, %v2938_v10  ;;  %v1917_v15 = vmul.f32 %v1789_v35, %v5092_v19  ;;  %v1279_v46 = vfloor.f32 %v1151_v28 }
 0x286   :  { %v2174_v45 = vmul.f32 %v2046_v39, %v5084_v62  ;;  %v3065_v1 = vadd.f32 -19.739208, %v2937_v25  ;;  %v2940_v17 = vmul.f32 %v2812_v29, %v5059_v18  ;;  %v1664_v48 = vmul.f32 -1.4609046, %v5104_v33 }
 0x287   :  { %v2811_v49 = vadd.f32 64.93939, %v2683_v43  ;;  %v3194_v52 = vmul.f32 %v3066_v44, %v5051_v50  ;;  %v2045_v37 = vadd.f32 -26.406752, %v1917_v15  ;;  %v1407_v54 = vsub.f32 %v1023_v53, %v1279_v46 }
 0x288   :  { %v2302_v36 = vadd.f32 60.242462, %v2174_v45  ;;  %v3193_v16 = vmul.f32 %v3065_v1, %v5054_v38  ;;  %v3068_v58 = vadd.f32 -19.739208, %v2940_v17  ;;  %v1792_v60 = vadd.f32 7.806575, %v1664_v48 }
 0x289   :  { %v2939_v47 = vmul.f32 %v2811_v49, %v5065_v23  ;;  %v3322_v51 = vadd.f32 1.0, %v3194_v52  ;;  %v2173_v63 = vmul.f32 %v2045_v37, %v5092_v19  ;;  %v5115_v2 = vmul.f32 %v1407_v54, %v1407_v54 }
 0x28a   :  { %v2430_v0 = vmul.f32 %v2302_v36, %v5084_v62  ;;  %v3321_v7 = vadd.f32 1.0, %v3193_v16  ;;  %v3196_v50 = vmul.f32 %v3068_v58, %v5059_v18  ;;  %v1920_v59 = vmul.f32 %v1792_v60, %v5104_v33  ;;  %v699_v60 = vpop.permute.xlu1 %698 }
 0x28b   :  { %v3067_v4 = vadd.f32 -19.739208, %v2939_v47  ;;  %3450 = vst [vmem:[#allocation2 + $0x318] sm:$0xff] %v3322_v51  ;;  %v2301_v38 = vadd.f32 60.242462, %v2173_v63  ;;  %v894_v12 = vmul.f32 %v4972_v32, %v679_v34  ;;  %v893_v57 = vmul.f32 %v4972_v32, %v674_v41 }
 0x28c   :  { %v2558_v61 = vadd.f32 -85.45669, %v2430_v0  ;;  %v1663_v8 = vmul.f32 -1.4609046, %v5115_v2  ;;  %3449 = vst [vmem:[#allocation2 + $0x310] sm:$0xff] %v3321_v7  ;;  %v3324_v11 = vadd.f32 1.0, %v3196_v50  ;;  %v896_v26 = vmul.f32 %v4972_v32, %v689_v6 }
 0x28d   :  { %v3195_v14 = vmul.f32 %v3067_v4, %v5065_v23  ;;  %v2048_v56 = vadd.f32 -26.406752, %v1920_v59  ;;  %v2429_v21 = vmul.f32 %v2301_v38, %v5092_v19  ;;  %v1026_v22 = vadd.f32 %v3747_v5, %v894_v12 }
 0x28e   :  { %v2686_v18 = vmul.f32 %v2558_v61, %v5084_v62  ;;  %v1791_v13 = vadd.f32 7.806575, %v1663_v8  ;;  %3452 = vst [vmem:[#allocation2 + $0x328] sm:$0xff] %v3324_v11  ;;  %v1025_v3 = vadd.f32 %v3747_v5, %v893_v57  ;;  %v1028_v27 = vadd.f32 %v3747_v5, %v896_v26  ;;  %v694_v57 = vpop.permute.xlu0 %693 }
 0x28f   :  { %v3323_v30 = vadd.f32 1.0, %v3195_v14  ;;  %v2176_v42 = vmul.f32 %v2048_v56, %v5104_v33  ;;  %v2557_v31 = vadd.f32 -85.45669, %v2429_v21  ;;  %v1154_v53 = vadd.f32 0.5, %v1026_v22 }
 0x290   :  { %v2814_v23 = vadd.f32 64.93939, %v2686_v18  ;;  %v1919_v24 = vmul.f32 %v1791_v13, %v5115_v2  ;;  %v1153_v40 = vadd.f32 0.5, %v1025_v3  ;;  %v895_v55 = vmul.f32 %v4972_v32, %v684_v9 }
 0x291   :  { %3451 = vst [vmem:[#allocation2 + $0x320] sm:$0xff] %v3323_v30  ;;  %v2304_v20 = vadd.f32 60.242462, %v2176_v42  ;;  %v2685_v39 = vmul.f32 %v2557_v31, %v5092_v19  ;;  %v1282_v28 = vfloor.f32 %v1154_v53  ;;  %v1156_v43 = vadd.f32 0.5, %v1028_v27 }
 0x292   :  { %v2942_v10 = vmul.f32 %v2814_v23, %v5084_v62  ;;  %v2047_v35 = vadd.f32 -26.406752, %v1919_v24  ;;  %v1281_v29 = vfloor.f32 %v1153_v40  ;;  %v1027_v44 = vadd.f32 %v3747_v5, %v895_v55 }
 0x293   :  { %v2432_v25 = vmul.f32 %v2304_v20, %v5104_v33  ;;  %v2813_v15 = vadd.f32 64.93939, %v2685_v39  ;;  %v1410_v34 = vsub.f32 %v1026_v22, %v1282_v28  ;;  %v1284_v49 = vfloor.f32 %v1156_v43 }
 0x294   :  { %v3070_v45 = vadd.f32 -19.739208, %v2942_v10  ;;  %v2175_v46 = vmul.f32 %v2047_v35, %v5115_v2  ;;  %v1409_v17 = vsub.f32 %v1025_v3, %v1281_v29  ;;  %v1155_v48 = vadd.f32 0.5, %v1027_v44  ;;  %v709_v35 = vpop.permute.xlu1 %708 }
 0x295   :  { %v2560_v1 = vadd.f32 -85.45669, %v2432_v25  ;;  %v2941_v36 = vmul.f32 %v2813_v15, %v5092_v19  ;;  %v5139_v54 = vmul.f32 %v1410_v34, %v1410_v34  ;;  %v1412_v58 = vsub.f32 %v1028_v27, %v1284_v49 }
 0x296   :  { %v3198_v52 = vmul.f32 %v3070_v45, %v5084_v62  ;;  %v2303_v37 = vadd.f32 60.242462, %v2175_v46  ;;  %v5142_v16 = vmul.f32 %v1409_v17, %v1409_v17  ;;  %v1283_v47 = vfloor.f32 %v1155_v48 }
 0x297   :  { %v2688_v41 = vmul.f32 %v2560_v1, %v5104_v33  ;;  %v3069_v0 = vadd.f32 -19.739208, %v2941_v36  ;;  %v1666_v7 = vmul.f32 -1.4609046, %v5139_v54  ;;  %v5147_v4 = vmul.f32 %v1412_v58, %v1412_v58 }
 0x298   :  { %v3326_v51 = vadd.f32 1.0, %v3198_v52  ;;  %v2431_v63 = vmul.f32 %v2303_v37, %v5115_v2  ;;  %v1665_v62 = vmul.f32 -1.4609046, %v5142_v16  ;;  %v1411_v59 = vsub.f32 %v1027_v44, %v1283_v47 }
 0x299   :  { %v2816_v50 = vadd.f32 64.93939, %v2688_v41  ;;  %v3197_v61 = vmul.f32 %v3069_v0, %v5092_v19  ;;  %v1794_v8 = vadd.f32 7.806575, %v1666_v7  ;;  %v898_v12 = vmul.f32 %v4972_v32, %v699_v60  ;;  %v704_v60 = vpop.permute.xlu0 %703 }
 0x29a   :  { %3454 = vst [vmem:[#allocation2 + $0x338] sm:$0xff] %v3326_v51  ;;  %v2559_v38 = vadd.f32 -85.45669, %v2431_v63  ;;  %v1793_v11 = vadd.f32 7.806575, %v1665_v62  ;;  %v5153_v56 = vmul.f32 %v1411_v59, %v1411_v59  ;;  %v897_v31 = vmul.f32 %v4972_v32, %v694_v57 }
 0x29b   :  { %v2944_v6 = vmul.f32 %v2816_v50, %v5104_v33  ;;  %v1668_v14 = vmul.f32 -1.4609046, %v5147_v4  ;;  %v3325_v18 = vadd.f32 1.0, %v3197_v61  ;;  %v1922_v13 = vmul.f32 %v1794_v8, %v5139_v54 }
 0x29c   :  { %v2687_v21 = vmul.f32 %v2559_v38, %v5115_v2  ;;  %v1030_v22 = vadd.f32 %v3747_v5, %v898_v12  ;;  %v1921_v9 = vmul.f32 %v1793_v11, %v5142_v16  ;;  %v1667_v42 = vmul.f32 -1.4609046, %v5153_v56 }
 0x29d   :  { %v3072_v19 = vadd.f32 -19.739208, %v2944_v6  ;;  %v1796_v30 = vadd.f32 7.806575, %v1668_v14  ;;  %3453 = vst [vmem:[#allocation2 + $0x330] sm:$0xff] %v3325_v18  ;;  %v1029_v39 = vadd.f32 %v3747_v5, %v897_v31  ;;  %v900_v17 = vmul.f32 %v4972_v32, %v709_v35  ;;  %v719_v35 = vpop.permute.xlu1 %718 }
 0x29e   :  { %v2815_v3 = vadd.f32 64.93939, %v2687_v21  ;;  %v2050_v26 = vadd.f32 -26.406752, %v1922_v13  ;;  %v1158_v23 = vadd.f32 0.5, %v1030_v22  ;;  %v899_v12 = vmul.f32 %v4972_v32, %v704_v60 }
 0x29f   :  { %v3200_v24 = vmul.f32 %v3072_v19, %v5104_v33  ;;  %v2049_v53 = vadd.f32 -26.406752, %v1921_v9  ;;  %v1924_v20 = vmul.f32 %v1796_v30, %v5147_v4  ;;  %v1795_v40 = vadd.f32 7.806575, %v1667_v42 }
 0x2a0   :  { %v2943_v27 = vmul.f32 %v2815_v3, %v5115_v2  ;;  %v2178_v55 = vmul.f32 %v2050_v26, %v5139_v54  ;;  %v1286_v10 = vfloor.f32 %v1158_v23  ;;  %v1157_v15 = vadd.f32 0.5, %v1029_v39 }
 0x2a1   :  { %v3328_v28 = vadd.f32 1.0, %v3200_v24  ;;  %v2177_v25 = vmul.f32 %v2049_v53, %v5142_v16  ;;  %v2052_v29 = vadd.f32 -26.406752, %v1924_v20  ;;  %v1923_v43 = vmul.f32 %v1795_v40, %v5153_v56 }
 0x2a2   :  { %v3071_v44 = vadd.f32 -19.739208, %v2943_v27  ;;  %v2306_v33 = vadd.f32 60.242462, %v2178_v55  ;;  %v1414_v45 = vsub.f32 %v1030_v22, %v1286_v10  ;;  %v1285_v36 = vfloor.f32 %v1157_v15 }
 0x2a3   :  { %3456 = vst [vmem:[#allocation2 + $0x348] sm:$0xff] %v3328_v28  ;;  %v2305_v46 = vadd.f32 60.242462, %v2177_v25  ;;  %v2180_v34 = vmul.f32 %v2052_v29, %v5147_v4  ;;  %v2051_v1 = vadd.f32 -26.406752, %v1923_v43  ;;  %v1032_v47 = vadd.f32 %v3747_v5, %v900_v17 }
 0x2a4   :  { %v3199_v49 = vmul.f32 %v3071_v44, %v5115_v2  ;;  %v2434_v48 = vmul.f32 %v2306_v33, %v5139_v54  ;;  %v5172_v52 = vmul.f32 %v1414_v45, %v1414_v45  ;;  %v1413_v7 = vsub.f32 %v1029_v39, %v1285_v36 }
 0x2a5   :  { %v2433_v37 = vmul.f32 %v2305_v46, %v5142_v16  ;;  %v2308_v41 = vadd.f32 60.242462, %v2180_v34  ;;  %v2179_v58 = vmul.f32 %v2051_v1, %v5153_v56  ;;  %v1160_v59 = vadd.f32 0.5, %v1032_v47  ;;  %v714_v46 = vpop.permute.xlu0 %713 }
 0x2a6   :  { %v3327_v51 = vadd.f32 1.0, %v3199_v49  ;;  %v2562_v0 = vadd.f32 -85.45669, %v2434_v48  ;;  %v1670_v63 = vmul.f32 -1.4609046, %v5172_v52  ;;  %v5180_v8 = vmul.f32 %v1413_v7, %v1413_v7  ;;  %v729_v7 = vpop.permute.xlu1 %728 }
 0x2a7   :  { %v2561_v50 = vadd.f32 -85.45669, %v2433_v37  ;;  %v2436_v2 = vmul.f32 %v2308_v41, %v5147_v4  ;;  %v2307_v62 = vadd.f32 60.242462, %v2179_v58  ;;  %v1288_v57 = vfloor.f32 %v1160_v59 }
 0x2a8   :  { %3455 = vst [vmem:[#allocation2 + $0x340] sm:$0xff] %v3327_v51  ;;  %v2690_v61 = vmul.f32 %v2562_v0, %v5139_v54  ;;  %v1798_v38 = vadd.f32 7.806575, %v1670_v63  ;;  %v1669_v13 = vmul.f32 -1.4609046, %v5180_v8  ;;  %v1031_v22 = vadd.f32 %v3747_v5, %v899_v12 }
 0x2a9   :  { %v2689_v6 = vmul.f32 %v2561_v50, %v5142_v16  ;;  %v2564_v11 = vadd.f32 -85.45669, %v2436_v2  ;;  %v2435_v14 = vmul.f32 %v2307_v62, %v5153_v56  ;;  %v1416_v42 = vsub.f32 %v1032_v47, %v1288_v57 }
 0x2aa   :  { %v2818_v18 = vadd.f32 64.93939, %v2690_v61  ;;  %v1926_v21 = vmul.f32 %v1798_v38, %v5172_v52  ;;  %v1797_v23 = vadd.f32 7.806575, %v1669_v13  ;;  %v1159_v31 = vadd.f32 0.5, %v1031_v22 }
 0x2ab   :  { %v2817_v19 = vadd.f32 64.93939, %v2689_v6  ;;  %v2692_v9 = vmul.f32 %v2564_v11, %v5147_v4  ;;  %v2563_v30 = vadd.f32 -85.45669, %v2435_v14  ;;  %v5192_v40 = vmul.f32 %v1416_v42, %v1416_v42  ;;  %v724_v6 = vpop.permute.xlu0 %723 }
 0x2ac   :  { %v2946_v3 = vmul.f32 %v2818_v18, %v5139_v54  ;;  %v2054_v26 = vadd.f32 -26.406752, %v1926_v21  ;;  %v1925_v10 = vmul.f32 %v1797_v23, %v5180_v8  ;;  %v1287_v39 = vfloor.f32 %v1159_v31 }
 0x2ad   :  { %v2945_v24 = vmul.f32 %v2817_v19, %v5142_v16  ;;  %v2820_v53 = vadd.f32 64.93939, %v2692_v9  ;;  %v2691_v20 = vmul.f32 %v2563_v30, %v5153_v56  ;;  %v1672_v43 = vmul.f32 -1.4609046, %v5192_v40 }
 0x2ae   :  { %v3074_v27 = vadd.f32 -19.739208, %v2946_v3  ;;  %v2182_v55 = vmul.f32 %v2054_v26, %v5172_v52  ;;  %v2053_v45 = vadd.f32 -26.406752, %v1925_v10  ;;  %v1415_v15 = vsub.f32 %v1031_v22, %v1287_v39 }
 0x2af   :  { %v3073_v28 = vadd.f32 -19.739208, %v2945_v24  ;;  %v2948_v25 = vmul.f32 %v2820_v53, %v5147_v4  ;;  %v2819_v29 = vadd.f32 64.93939, %v2691_v20  ;;  %v1800_v49 = vadd.f32 7.806575, %v1672_v43 }
 0x2b0   :  { %v3202_v44 = vmul.f32 %v3074_v27, %v5139_v54  ;;  %v2310_v33 = vadd.f32 60.242462, %v2182_v55  ;;  %v2181_v37 = vmul.f32 %v2053_v45, %v5180_v8  ;;  %v5203_v41 = vmul.f32 %v1415_v15, %v1415_v15 }
 0x2b1   :  { %v3201_v34 = vmul.f32 %v3073_v28, %v5142_v16  ;;  %v3076_v1 = vadd.f32 -19.739208, %v2948_v25  ;;  %v2947_v17 = vmul.f32 %v2819_v29, %v5153_v56  ;;  %v1928_v60 = vmul.f32 %v1800_v49, %v5192_v40 }
 0x2b2   :  { %v3330_v48 = vadd.f32 1.0, %v3202_v44  ;;  %v2438_v36 = vmul.f32 %v2310_v33, %v5172_v52  ;;  %v2309_v16 = vadd.f32 60.242462, %v2181_v37  ;;  %v1671_v0 = vmul.f32 -1.4609046, %v5203_v41 }
 0x2b3   :  { %v3329_v58 = vadd.f32 1.0, %v3201_v34  ;;  %v3204_v54 = vmul.f32 %v3076_v1, %v5147_v4  ;;  %v3075_v47 = vadd.f32 -19.739208, %v2947_v17  ;;  %v902_v63 = vmul.f32 %v4972_v32, %v719_v35  ;;  %v739_v17 = vpop.permute.xlu1 %738 }
 0x2b4   :  { %3458 = vst [vmem:[#allocation2 + $0x358] sm:$0xff] %v3330_v48  ;;  %v2566_v51 = vadd.f32 -85.45669, %v2438_v36  ;;  %v2056_v62 = vadd.f32 -26.406752, %v1928_v60  ;;  %v901_v59 = vmul.f32 %v4972_v32, %v714_v46  ;;  %v2437_v61 = vmul.f32 %v2309_v16, %v5180_v8 }
 0x2b5   :  { %3457 = vst [vmem:[#allocation2 + $0x350] sm:$0xff] %v3329_v58  ;;  %v3332_v50 = vadd.f32 1.0, %v3204_v54  ;;  %v3203_v2 = vmul.f32 %v3075_v47, %v5153_v56  ;;  %v1799_v38 = vadd.f32 7.806575, %v1671_v0  ;;  %v1034_v12 = vadd.f32 %v3747_v5, %v902_v63  ;;  %v5241_v0 = vld [vmem:[%s5381_s1] ss:$0 sm:$0xff] }
 0x2b6   :  { %v2694_v4 = vmul.f32 %v2566_v51, %v5172_v52  ;;  %v2184_v14 = vmul.f32 %v2056_v62, %v5192_v40  ;;  %v1033_v57 = vadd.f32 %v3747_v5, %v901_v59  ;;  %v904_v18 = vmul.f32 %v4972_v32, %v729_v7  ;;  %v734_v59 = vpop.permute.xlu0 %733  ;;  %s3532_s1 = smov [#allocation2]  }
 0x2b7   :  { %3460 = vst [vmem:[#allocation2 + $0x368] sm:$0xff] %v3332_v50  ;;  %v3331_v11 = vadd.f32 1.0, %v3203_v2  ;;  %v2565_v21 = vadd.f32 -85.45669, %v2437_v61  ;;  %v1927_v13 = vmul.f32 %v1799_v38, %v5203_v41  ;;  %v1162_v22 = vadd.f32 0.5, %v1034_v12  ;;  %s3484_s24 = sshll.u32 %s3532_s1, 4  ;;  %s3485_s24 = int_to_ptr.vmem [resolvable:$true] %s3484_s24 }
 0x2b8   :  { %v2822_v56 = vadd.f32 64.93939, %v2694_v4  ;;  %v2312_v19 = vadd.f32 60.242462, %v2184_v14  ;;  %v1161_v9 = vadd.f32 0.5, %v1033_v57  ;;  %v1036_v30 = vadd.f32 %v3747_v5, %v904_v18  ;;  %s3508_s25 = scalar_lea.vmem %s3485_s24, 16384  ;;  %p3513_p1 = scmp.lt.s32.totalorder %s3485_s24, %s3485_s24 }
 0x2b9   :  { %3459 = vst [vmem:[#allocation2 + $0x360] sm:$0xff] %v3331_v11  ;;  %v903_v42 = vmul.f32 %v4972_v32, %v724_v6  ;;  %v2693_v26 = vmul.f32 %v2565_v21, %v5180_v8  ;;  %v2055_v23 = vadd.f32 -26.406752, %v1927_v13  ;;  %v1290_v31 = vfloor.f32 %v1162_v22  ;;  %p3509_p0 = scmp.ne.s32.totalorder %s3485_s24, %s3508_s25  ;;  %p3514_p2 = scmp.lt.s32.totalorder %s3508_s25, %s3508_s25 }
 0x2ba   :  { %v2950_v3 = vmul.f32 %v2822_v56, %v5172_v52  ;;  %v2440_v24 = vmul.f32 %v2312_v19, %v5192_v40  ;;  %v1289_v53 = vfloor.f32 %v1161_v9  ;;  %v1164_v20 = vadd.f32 0.5, %v1036_v30 }
 0x2bb   :  { %v1035_v27 = vadd.f32 %v3747_v5, %v903_v42  ;;  %v2821_v10 = vadd.f32 64.93939, %v2693_v26  ;;  %v2183_v39 = vmul.f32 %v2055_v23, %v5203_v41  ;;  %v1418_v35 = vsub.f32 %v1034_v12, %v1290_v31  ;;  %v749_v23 = vpop.permute.xlu1 %748  ;;  %p3515_p3 = por %p3514_p2, %p3513_p1 }
 0x2bc   :  { %v3078_v55 = vadd.f32 -19.739208, %v2950_v3  ;;  %v2568_v28 = vadd.f32 -85.45669, %v2440_v24  ;;  %v1417_v25 = vsub.f32 %v1033_v57, %v1289_v53  ;;  %v1292_v32 = vfloor.f32 %v1164_v20 }
 0x2bd   :  { %v1163_v29 = vadd.f32 0.5, %v1035_v27  ;;  %v2949_v44 = vmul.f32 %v2821_v10, %v5180_v8  ;;  %v2311_v33 = vadd.f32 60.242462, %v2183_v39  ;;  %v5227_v45 = vmul.f32 %v1418_v35, %v1418_v35  ;;  %p3516_p4 = pnand %p3515_p3, %p3509_p0 }
 0x2be   :  { %v3206_v43 = vmul.f32 %v3078_v55, %v5172_v52  ;;  %v2696_v15 = vmul.f32 %v2568_v28, %v5192_v40  ;;  %v5230_v46 = vmul.f32 %v1417_v25, %v1417_v25  ;;  %v1420_v34 = vsub.f32 %v1036_v30, %v1292_v32 }
 0x2bf   :  { %v1291_v1 = vfloor.f32 %v1163_v29  ;;  %v3077_v48 = vadd.f32 -19.739208, %v2949_v44  ;;  %v2439_v36 = vmul.f32 %v2311_v33, %v5203_v41  ;;  %v1674_v37 = vmul.f32 -1.4609046, %v5227_v45 }
 0x2c0   :  { %v3334_v49 = vadd.f32 1.0, %v3206_v43  ;;  %v2824_v58 = vadd.f32 64.93939, %v2696_v15  ;;  %v1673_v52 = vmul.f32 -1.4609046, %v5230_v46  ;;  %v5235_v54 = vmul.f32 %v1420_v34, %v1420_v34 }
 0x2c1   :  { %v1419_v47 = vsub.f32 %v1035_v27, %v1291_v1  ;;  %v3205_v60 = vmul.f32 %v3077_v48, %v5180_v8  ;;  %v2567_v51 = vadd.f32 -85.45669, %v2439_v36  ;;  %v1802_v16 = vadd.f32 7.806575, %v1674_v37 }
 0x2c2   :  { %3462 = vst [vmem:[#allocation2 + $0x378] sm:$0xff] %v3334_v49  ;;  %v906_v63 = vmul.f32 %v5241_v0, %v739_v17  ;;  %v2952_v7 = vmul.f32 %v2824_v58, %v5192_v40  ;;  %v1801_v50 = vadd.f32 7.806575, %v1673_v52  ;;  %v1676_v2 = vmul.f32 -1.4609046, %v5235_v54  ;;  %v744_v17 = vpop.permute.xlu0 %743 }
 0x2c3   :  { %v5246_v62 = vmul.f32 %v1419_v47, %v1419_v47  ;;  %v3333_v4 = vadd.f32 1.0, %v3205_v60  ;;  %v2695_v8 = vmul.f32 %v2567_v51, %v5203_v41  ;;  %v1930_v61 = vmul.f32 %v1802_v16, %v5227_v45 }
 0x2c4   :  { %v1038_v38 = vadd.f32 %v3747_v5, %v906_v63  ;;  %v3080_v12 = vadd.f32 -19.739208, %v2952_v7  ;;  %v1929_v6 = vmul.f32 %v1801_v50, %v5230_v46  ;;  %v1804_v11 = vadd.f32 7.806575, %v1676_v2 }
 0x2c5   :  { %v1675_v14 = vmul.f32 -1.4609046, %v5246_v62  ;;  %3461 = vst [vmem:[#allocation2 + $0x370] sm:$0xff] %v3333_v4  ;;  %v2823_v57 = vadd.f32 64.93939, %v2695_v8  ;;  %v905_v21 = vmul.f32 %v5241_v0, %v734_v59  ;;  %v908_v25 = vmul.f32 %v5241_v0, %v749_v23  ;;  %v759_v23 = vpop.permute.xlu1 %758 }
 0x2c6   :  { %v2058_v18 = vadd.f32 -26.406752, %v1930_v61  ;;  %v1166_v56 = vadd.f32 0.5, %v1038_v38  ;;  %v3208_v13 = vmul.f32 %v3080_v12, %v5192_v40  ;;  %v2057_v22 = vadd.f32 -26.406752, %v1929_v6 }
 0x2c7   :  { %v1932_v19 = vmul.f32 %v1804_v11, %v5235_v54  ;;  %v1803_v9 = vadd.f32 7.806575, %v1675_v14  ;;  %v2951_v30 = vmul.f32 %v2823_v57, %v5203_v41  ;;  %v1037_v26 = vadd.f32 %v3747_v5, %v905_v21 }
 0x2c8   :  { %v2186_v42 = vmul.f32 %v2058_v18, %v5227_v45  ;;  %v1294_v3 = vfloor.f32 %v1166_v56  ;;  %v3336_v31 = vadd.f32 1.0, %v3208_v13  ;;  %v2185_v24 = vmul.f32 %v2057_v22, %v5230_v46 }
 0x2c9   :  { %v2060_v53 = vadd.f32 -26.406752, %v1932_v19  ;;  %v1931_v20 = vmul.f32 %v1803_v9, %v5246_v62  ;;  %v3079_v27 = vadd.f32 -19.739208, %v2951_v30  ;;  %v1165_v10 = vadd.f32 0.5, %v1037_v26 }
 0x2ca   :  { %v2314_v40 = vadd.f32 60.242462, %v2186_v42  ;;  %v1422_v55 = vsub.f32 %v1038_v38, %v1294_v3  ;;  %3464 = vst [vmem:[#allocation2 + $0x388] sm:$0xff] %v3336_v31  ;;  %v2313_v39 = vadd.f32 60.242462, %v2185_v24  ;;  %v1040_v1 = vadd.f32 %v3747_v5, %v908_v25 }
 0x2cb   :  { %v2188_v35 = vmul.f32 %v2060_v53, %v5235_v54  ;;  %v2059_v28 = vadd.f32 -26.406752, %v1931_v20  ;;  %v3207_v32 = vmul.f32 %v3079_v27, %v5203_v41  ;;  %v1293_v44 = vfloor.f32 %v1165_v10 }
 0x2cc   :  { %v2442_v29 = vmul.f32 %v2314_v40, %v5227_v45  ;;  %v5265_v43 = vmul.f32 %v1422_v55, %v1422_v55  ;;  %v2441_v33 = vmul.f32 %v2313_v39, %v5230_v46  ;;  %v1168_v47 = vadd.f32 0.5, %v1040_v1  ;;  %v754_v39 = vpop.permute.xlu0 %753 }
 0x2cd   :  { %v2316_v15 = vadd.f32 60.242462, %v2188_v35  ;;  %v2187_v34 = vmul.f32 %v2059_v28, %v5246_v62  ;;  %v3335_v49 = vadd.f32 1.0, %v3207_v32  ;;  %v1421_v37 = vsub.f32 %v1037_v26, %v1293_v44 }
 0x2ce   :  { %v2570_v48 = vadd.f32 -85.45669, %v2442_v29  ;;  %v1678_v36 = vmul.f32 -1.4609046, %v5265_v43  ;;  %v2569_v58 = vadd.f32 -85.45669, %v2441_v33  ;;  %v907_v63 = vmul.f32 %v5241_v0, %v744_v17 }
 0x2cf   :  { %v2444_v41 = vmul.f32 %v2316_v15, %v5235_v54  ;;  %v2315_v52 = vadd.f32 60.242462, %v2187_v34  ;;  %3463 = vst [vmem:[#allocation2 + $0x380] sm:$0xff] %v3335_v49  ;;  %v5273_v16 = vmul.f32 %v1421_v37, %v1421_v37  ;;  %v1296_v59 = vfloor.f32 %v1168_v47  ;;  %v769_v37 = vpop.permute.xlu1 %768 }
 0x2d0   :  { %v2698_v60 = vmul.f32 %v2570_v48, %v5227_v45  ;;  %v1806_v51 = vadd.f32 7.806575, %v1678_v36  ;;  %v2697_v7 = vmul.f32 %v2569_v58, %v5230_v46  ;;  %v1039_v38 = vadd.f32 %v3747_v5, %v907_v63 }
 0x2d1   :  { %v2572_v50 = vadd.f32 -85.45669, %v2444_v41  ;;  %v2443_v2 = vmul.f32 %v2315_v52, %v5246_v62  ;;  %v1677_v61 = vmul.f32 -1.4609046, %v5273_v16  ;;  %v1424_v14 = vsub.f32 %v1040_v1, %v1296_v59 }
 0x2d2   :  { %v2826_v4 = vadd.f32 64.93939, %v2698_v60  ;;  %v1934_v8 = vmul.f32 %v1806_v51, %v5265_v43  ;;  %v2825_v12 = vadd.f32 64.93939, %v2697_v7  ;;  %v1167_v21 = vadd.f32 0.5, %v1039_v38  ;;  %v764_v7 = vpop.permute.xlu0 %763 }
 0x2d3   :  { %v2700_v6 = vmul.f32 %v2572_v50, %v5235_v54  ;;  %v2571_v11 = vadd.f32 -85.45669, %v2443_v2  ;;  %v1805_v56 = vadd.f32 7.806575, %v1677_v61  ;;  %v5285_v9 = vmul.f32 %v1424_v14, %v1424_v14 }
 0x2d4   :  { %v2954_v57 = vmul.f32 %v2826_v4, %v5227_v45  ;;  %v2062_v18 = vadd.f32 -26.406752, %v1934_v8  ;;  %v2953_v13 = vmul.f32 %v2825_v12, %v5230_v46  ;;  %v1295_v26 = vfloor.f32 %v1167_v21 }
 0x2d5   :  { %v2828_v22 = vadd.f32 64.93939, %v2700_v6  ;;  %v2699_v19 = vmul.f32 %v2571_v11, %v5246_v62  ;;  %v1933_v3 = vmul.f32 %v1805_v56, %v5273_v16  ;;  %v1680_v20 = vmul.f32 -1.4609046, %v5285_v9 }
 0x2d6   :  { %v3082_v30 = vadd.f32 -19.739208, %v2954_v57  ;;  %v2190_v42 = vmul.f32 %v2062_v18, %v5265_v43  ;;  %v3081_v31 = vadd.f32 -19.739208, %v2953_v13  ;;  %v1423_v10 = vsub.f32 %v1039_v38, %v1295_v26 }
 0x2d7   :  { %v2956_v24 = vmul.f32 %v2828_v22, %v5235_v54  ;;  %v2827_v53 = vadd.f32 64.93939, %v2699_v19  ;;  %v2061_v55 = vadd.f32 -26.406752, %v1933_v3  ;;  %v1808_v32 = vadd.f32 7.806575, %v1680_v20 }
 0x2d8   :  { %v3210_v27 = vmul.f32 %v3082_v30, %v5227_v45  ;;  %v2318_v40 = vadd.f32 60.242462, %v2190_v42  ;;  %v3209_v35 = vmul.f32 %v3081_v31, %v5230_v46  ;;  %v5296_v15 = vmul.f32 %v1423_v10, %v1423_v10 }
 0x2d9   :  { %v3084_v28 = vadd.f32 -19.739208, %v2956_v24  ;;  %v2955_v25 = vmul.f32 %v2827_v53, %v5246_v62  ;;  %v2189_v33 = vmul.f32 %v2061_v55, %v5273_v16  ;;  %v1936_v17 = vmul.f32 %v1808_v32, %v5285_v9  ;;  %v779_v32 = vpop.permute.xlu1 %778 }
 0x2da   :  { %v3338_v29 = vadd.f32 1.0, %v3210_v27  ;;  %v2446_v44 = vmul.f32 %v2318_v40, %v5265_v43  ;;  %v3337_v34 = vadd.f32 1.0, %v3209_v35  ;;  %v1679_v48 = vmul.f32 -1.4609046, %v5296_v15 }
 0x2db   :  { %v3212_v45 = vmul.f32 %v3084_v28, %v5235_v54  ;;  %v3083_v1 = vadd.f32 -19.739208, %v2955_v25  ;;  %v2317_v46 = vadd.f32 60.242462, %v2189_v33  ;;  %v910_v36 = vmul.f32 %v5241_v0, %v759_v23 }
 0x2dc   :  { %3466 = vst [vmem:[#allocation2 + $0x398] sm:$0xff] %v3338_v29  ;;  %v2574_v49 = vadd.f32 -85.45669, %v2446_v44  ;;  %3465 = vst [vmem:[#allocation2 + $0x390] sm:$0xff] %v3337_v34  ;;  %v2064_v52 = vadd.f32 -26.406752, %v1936_v17  ;;  %v909_v47 = vmul.f32 %v5241_v0, %v754_v39  ;;  %v912_v4 = vmul.f32 %v5241_v0, %v769_v37 }
 0x2dd   :  { %v3340_v58 = vadd.f32 1.0, %v3212_v45  ;;  %v3211_v41 = vmul.f32 %v3083_v1, %v5246_v62  ;;  %v2445_v60 = vmul.f32 %v2317_v46, %v5273_v16  ;;  %v1807_v51 = vadd.f32 7.806575, %v1679_v48 }
 0x2de   :  { %v2702_v54 = vmul.f32 %v2574_v49, %v5265_v43  ;;  %v1042_v63 = vadd.f32 %v3747_v5, %v910_v36  ;;  %v2192_v2 = vmul.f32 %v2064_v52, %v5285_v9  ;;  %v1041_v59 = vadd.f32 %v3747_v5, %v909_v47  ;;  %v774_v47 = vpop.permute.xlu0 %773 }
 0x2df   :  { %3468 = vst [vmem:[#allocation2 + $0x3a8] sm:$0xff] %v3340_v58  ;;  %v3339_v50 = vadd.f32 1.0, %v3211_v41  ;;  %v2573_v8 = vadd.f32 -85.45669, %v2445_v60  ;;  %v1935_v61 = vmul.f32 %v1807_v51, %v5296_v15  ;;  %v1044_v11 = vadd.f32 %v3747_v5, %v912_v4 }
 0x2e0   :  { %v2830_v62 = vadd.f32 64.93939, %v2702_v54  ;;  %v1170_v38 = vadd.f32 0.5, %v1042_v63  ;;  %v2320_v12 = vadd.f32 60.242462, %v2192_v2  ;;  %v1169_v6 = vadd.f32 0.5, %v1041_v59 }
 0x2e1   :  { %3467 = vst [vmem:[#allocation2 + $0x3a0] sm:$0xff] %v3339_v50  ;;  %v911_v14 = vmul.f32 %v5241_v0, %v764_v7  ;;  %v2701_v18 = vmul.f32 %v2573_v8, %v5273_v16  ;;  %v2063_v56 = vadd.f32 -26.406752, %v1935_v61  ;;  %v1172_v19 = vadd.f32 0.5, %v1044_v11 }
 0x2e2   :  { %v2958_v57 = vmul.f32 %v2830_v62, %v5265_v43  ;;  %v1298_v21 = vfloor.f32 %v1170_v38  ;;  %v2448_v13 = vmul.f32 %v2320_v12, %v5285_v9  ;;  %v1297_v22 = vfloor.f32 %v1169_v6 }
 0x2e3   :  { %v1043_v30 = vadd.f32 %v3747_v5, %v911_v14  ;;  %v2829_v3 = vadd.f32 64.93939, %v2701_v18  ;;  %v2191_v26 = vmul.f32 %v2063_v56, %v5296_v15  ;;  %v1300_v53 = vfloor.f32 %v1172_v19 }
 0x2e4   :  { %v3086_v42 = vadd.f32 -19.739208, %v2958_v57  ;;  %v1426_v23 = vsub.f32 %v1042_v63, %v1298_v21  ;;  %v2576_v31 = vadd.f32 -85.45669, %v2448_v13  ;;  %v1425_v24 = vsub.f32 %v1041_v59, %v1297_v22 }
 0x2e5   :  { %v1171_v20 = vadd.f32 0.5, %v1043_v30  ;;  %v2957_v40 = vmul.f32 %v2829_v3, %v5273_v16  ;;  %v2319_v55 = vadd.f32 60.242462, %v2191_v26  ;;  %v1428_v28 = vsub.f32 %v1044_v11, %v1300_v53 }
 0x2e6   :  { %v3214_v27 = vmul.f32 %v3086_v42, %v5265_v43  ;;  %v5320_v10 = vmul.f32 %v1426_v23, %v1426_v23  ;;  %v2704_v39 = vmul.f32 %v2576_v31, %v5285_v9  ;;  %v5323_v35 = vmul.f32 %v1425_v24, %v1425_v24 }
 0x2e7   :  { %v1299_v25 = vfloor.f32 %v1171_v20  ;;  %v3085_v44 = vadd.f32 -19.739208, %v2957_v40  ;;  %v2447_v33 = vmul.f32 %v2319_v55, %v5296_v15  ;;  %v5328_v1 = vmul.f32 %v1428_v28, %v1428_v28 }
 0x2e8   :  { %v3342_v29 = vadd.f32 1.0, %v3214_v27  ;;  %v1682_v34 = vmul.f32 -1.4609046, %v5320_v10  ;;  %v2832_v45 = vadd.f32 64.93939, %v2704_v39  ;;  %v914_v36 = vmul.f32 %v5241_v0, %v779_v32 }
 0x2e9   :  { %v1681_v43 = vmul.f32 -1.4609046, %v5323_v35  ;;  %v1427_v17 = vsub.f32 %v1043_v30, %v1299_v25  ;;  %v3213_v49 = vmul.f32 %v3085_v44, %v5273_v16  ;;  %v2575_v46 = vadd.f32 -85.45669, %v2447_v33 }
 0x2ea   :  { %3470 = vst [vmem:[#allocation2 + $0x3b8] sm:$0xff] %v3342_v29  ;;  %v1810_v48 = vadd.f32 7.806575, %v1682_v34  ;;  %v2960_v37 = vmul.f32 %v2832_v45, %v5285_v9  ;;  %v1684_v41 = vmul.f32 -1.4609046, %v5328_v1  ;;  %v1046_v63 = vadd.f32 %v3747_v5, %v914_v36 }
 0x2eb   :  { %v1809_v58 = vadd.f32 7.806575, %v1681_v43  ;;  %v5334_v52 = vmul.f32 %v1427_v17, %v1427_v17  ;;  %v3341_v54 = vadd.f32 1.0, %v3213_v49  ;;  %v2703_v60 = vmul.f32 %v2575_v46, %v5296_v15 }
 0x2ec   :  { %v1938_v51 = vmul.f32 %v1810_v48, %v5320_v10  ;;  %v3088_v16 = vadd.f32 -19.739208, %v2960_v37  ;;  %v1812_v50 = vadd.f32 7.806575, %v1684_v41  ;;  %v1174_v62 = vadd.f32 0.5, %v1046_v63 }
 0x2ed   :  { %v1937_v7 = vmul.f32 %v1809_v58, %v5323_v35  ;;  %v1683_v2 = vmul.f32 -1.4609046, %v5334_v52  ;;  %3469 = vst [vmem:[#allocation2 + $0x3b0] sm:$0xff] %v3341_v54  ;;  %v2831_v59 = vadd.f32 64.93939, %v2703_v60  ;;  %v913_v8 = vmul.f32 %v5241_v0, %v774_v47 }
 0x2ee   :  { %v2066_v4 = vadd.f32 -26.406752, %v1938_v51  ;;  %v3216_v61 = vmul.f32 %v3088_v16, %v5285_v9  ;;  %v1940_v12 = vmul.f32 %v1812_v50, %v5328_v1  ;;  %v1302_v57 = vfloor.f32 %v1174_v62 }
 0x2ef   :  { %v2065_v38 = vadd.f32 -26.406752, %v1937_v7  ;;  %v1811_v6 = vadd.f32 7.806575, %v1683_v2  ;;  %v2959_v11 = vmul.f32 %v2831_v59, %v5296_v15  ;;  %v1045_v18 = vadd.f32 %v3747_v5, %v913_v8 }
 0x2f0   :  { %v2194_v14 = vmul.f32 %v2066_v4, %v5320_v10  ;;  %v3344_v56 = vadd.f32 1.0, %v3216_v61  ;;  %v2068_v13 = vadd.f32 -26.406752, %v1940_v12  ;;  %v1430_v9 = vsub.f32 %v1046_v63, %v1302_v57 }
 0x2f1   :  { %v2193_v21 = vmul.f32 %v2065_v38, %v5323_v35  ;;  %v1939_v22 = vmul.f32 %v1811_v6, %v5334_v52  ;;  %v3087_v0 = vadd.f32 -19.739208, %v2959_v11  ;;  %v1173_v30 = vadd.f32 0.5, %v1045_v18 }
 0x2f2   :  { %v2322_v19 = vadd.f32 60.242462, %v2194_v14  ;;  %3472 = vst [vmem:[#allocation2 + $0x3c8] sm:$0xff] %v3344_v56  ;;  %v2196_v3 = vmul.f32 %v2068_v13, %v5328_v1  ;;  %v5352_v5 = vmul.f32 %v1430_v9, %v1430_v9 }
 0x2f3   :  { %v2321_v42 = vadd.f32 60.242462, %v2193_v21  ;;  %v2067_v26 = vadd.f32 -26.406752, %v1939_v22  ;;  %v3215_v23 = vmul.f32 %v3087_v0, %v5296_v15  ;;  %v1301_v24 = vfloor.f32 %v1173_v30 }
 0x2f4   :  { %v2450_v31 = vmul.f32 %v2322_v19, %v5320_v10  ;;  %v2324_v20 = vadd.f32 60.242462, %v2196_v3  ;;  %v1686_v39 = vmul.f32 -1.4609046, %v5352_v5 }
 0x2f5   :  { %v2449_v53 = vmul.f32 %v2321_v42, %v5323_v35  ;;  %v2195_v27 = vmul.f32 %v2067_v26, %v5334_v52  ;;  %v3343_v40 = vadd.f32 1.0, %v3215_v23  ;;  %v1429_v28 = vsub.f32 %v1045_v18, %v1301_v24 }
 0x2f6   :  { %v2578_v55 = vadd.f32 -85.45669, %v2450_v31  ;;  %v2452_v32 = vmul.f32 %v2324_v20, %v5328_v1  ;;  %v1814_v44 = vadd.f32 7.806575, %v1686_v39 }
 0x2f7   :  { %v2577_v25 = vadd.f32 -85.45669, %v2449_v53  ;;  %v2323_v29 = vadd.f32 60.242462, %v2195_v27  ;;  %3471 = vst [vmem:[#allocation2 + $0x3c0] sm:$0xff] %v3343_v40  ;;  %v1557_v33 = vmul.f32 %v1429_v28, %v1429_v28 }
 0x2f8   :  { %v2706_v15 = vmul.f32 %v2578_v55, %v5320_v10  ;;  %v2580_v45 = vadd.f32 -85.45669, %v2452_v32  ;;  %v1942_v49 = vmul.f32 %v1814_v44, %v5352_v5 }
 0x2f9   :  { %v2705_v34 = vmul.f32 %v2577_v25, %v5323_v35  ;;  %v2451_v43 = vmul.f32 %v2323_v29, %v5334_v52  ;;  %v1685_v46 = vmul.f32 -1.4609046, %v1557_v33 }
 0x2fa   :  { %v2834_v17 = vadd.f32 64.93939, %v2706_v15  ;;  %v2708_v36 = vmul.f32 %v2580_v45, %v5328_v1  ;;  %v2070_v41 = vadd.f32 -26.406752, %v1942_v49 }
 0x2fb   :  { %v2833_v48 = vadd.f32 64.93939, %v2705_v34  ;;  %v2579_v37 = vadd.f32 -85.45669, %v2451_v43  ;;  %v1813_v47 = vadd.f32 7.806575, %v1685_v46 }
 0x2fc   :  { %v2962_v58 = vmul.f32 %v2834_v17, %v5320_v10  ;;  %v2836_v60 = vadd.f32 64.93939, %v2708_v36  ;;  %v2198_v16 = vmul.f32 %v2070_v41, %v5352_v5 }
 0x2fd   :  { %v2961_v54 = vmul.f32 %v2833_v48, %v5323_v35  ;;  %v2707_v51 = vmul.f32 %v2579_v37, %v5334_v52  ;;  %v1941_v7 = vmul.f32 %v1813_v47, %v1557_v33 }
 0x2fe   :  { %v3090_v63 = vadd.f32 -19.739208, %v2962_v58  ;;  %v2964_v2 = vmul.f32 %v2836_v60, %v5328_v1  ;;  %v2326_v62 = vadd.f32 60.242462, %v2198_v16 }
 0x2ff   :  { %v3089_v50 = vadd.f32 -19.739208, %v2961_v54  ;;  %v2835_v59 = vadd.f32 64.93939, %v2707_v51  ;;  %v2069_v8 = vadd.f32 -26.406752, %v1941_v7 }
 0x300   :  { %v3218_v4 = vmul.f32 %v3090_v63, %v5320_v10  ;;  %v3092_v38 = vadd.f32 -19.739208, %v2964_v2  ;;  %v2454_v11 = vmul.f32 %v2326_v62, %v5352_v5 }
 0x301   :  { %v3217_v61 = vmul.f32 %v3089_v50, %v5323_v35  ;;  %v2963_v12 = vmul.f32 %v2835_v59, %v5334_v52  ;;  %v2197_v14 = vmul.f32 %v2069_v8, %v1557_v33 }
 0x302   :  { %v3346_v6 = vadd.f32 1.0, %v3218_v4  ;;  %v3220_v18 = vmul.f32 %v3092_v38, %v5328_v1  ;;  %v2582_v21 = vadd.f32 -85.45669, %v2454_v11 }
 0x303   :  { %v3345_v57 = vadd.f32 1.0, %v3217_v61  ;;  %v3091_v56 = vadd.f32 -19.739208, %v2963_v12  ;;  %v2325_v13 = vadd.f32 60.242462, %v2197_v14 }
 0x304   :  { %3474 = vst [vmem:[#allocation2 + $0x3d8] sm:$0xff] %v3346_v6  ;;  %v3348_v10 = vadd.f32 1.0, %v3220_v18  ;;  %v2710_v35 = vmul.f32 %v2582_v21, %v5352_v5 }
 0x305   :  { %3473 = vst [vmem:[#allocation2 + $0x3d0] sm:$0xff] %v3345_v57  ;;  %v3219_v22 = vmul.f32 %v3091_v56, %v5334_v52  ;;  %v2453_v0 = vmul.f32 %v2325_v13, %v1557_v33 }
 0x306   :  { %3476 = vst [vmem:[#allocation2 + $0x3e8] sm:$0xff] %v3348_v10  ;;  %v2838_v9 = vadd.f32 64.93939, %v2710_v35 }
 0x307   :  { %v3347_v19 = vadd.f32 1.0, %v3219_v22  ;;  %v2581_v30 = vadd.f32 -85.45669, %v2453_v0 }
 0x308   :  { %v2966_v42 = vmul.f32 %v2838_v9, %v5352_v5 }
 0x309   :  { %3475 = vst [vmem:[#allocation2 + $0x3e0] sm:$0xff] %v3347_v19  ;;  %v2709_v3 = vmul.f32 %v2581_v30, %v1557_v33 }
 0x30a   :  { %v3094_v1 = vadd.f32 -19.739208, %v2966_v42 }
 0x30b   :  { %v2837_v26 = vadd.f32 64.93939, %v2709_v3 }
 0x30c   :  { %v3222_v23 = vmul.f32 %v3094_v1, %v5352_v5 }
 0x30d   :  { %v2965_v31 = vmul.f32 %v2837_v26, %v1557_v33 }
 0x30e   :  { %v3350_v24 = vadd.f32 1.0, %v3222_v23 }
 0x30f   :  { %v3093_v53 = vadd.f32 -19.739208, %v2965_v31 }
 0x310   :  { %3478 = vst [vmem:[#allocation2 + $0x3f8] sm:$0xff] %v3350_v24 }
 0x311   :  { %v3221_v52 = vmul.f32 %v3093_v53, %v1557_v33 }
 0x313   :  { %v3349_v20 = vadd.f32 1.0, %v3221_v52 }
 0x315   :  { %3477 = vst [vmem:[#allocation2 + $0x3f0] sm:$0xff] %v3349_v20 }
 0x316   :  { %3519 = shalt.err (!%p3516_p4)
}
 0x317   :  { %s3533_s26 = smov 128   ;;  %s3534_s27 = smov 8  }
 0x318   :  { %3490 = dma.vmem_to_hbm [thread:$0]  %s3485_s24, 16384, %s5382_s2, [#allocation3], %s3533_s26, %s3533_s26, %s3534_s27  }
 0x319   :  { %3528 = dma.done.wait [#allocation3], 16384  }
 0x31a   :  { %3529 = vsyncadd [#allocation3], 4294950912 }
 0x31b   :  { %3494 = vsyncpa [#allocation3], 1 }

</bundles_post_ra>
